<compile_context>
chip_gen: v7x
topology: tpu7x:2x2x1
jax: 0.10.0
libtpu: 0.0.40
codegen_flags: <defaults>
</compile_context>

<pallas_src>
import math

import jax
import jax.numpy as jnp
from jax.experimental import pallas as pl
from jax.experimental.pallas import tpu as pltpu

# ---- small synthetic config (google/vit-base-patch16-224, scaled down) ----
IMAGE_SIZE   = 16
PATCH_SIZE   = 4
NUM_CHANNELS = 3
HIDDEN       = 32
NUM_LAYERS   = 2
NUM_HEADS    = 4
HEAD_DIM     = HIDDEN // NUM_HEADS
INTERMEDIATE = 4 * HIDDEN
NUM_CLASSES  = 5
LN_EPS       = 1e-12                      # HF ViTConfig.layer_norm_eps
NUM_PATCHES  = (IMAGE_SIZE // PATCH_SIZE) ** 2
SEQ          = NUM_PATCHES + 1            # +1 for [CLS]
CPP          = NUM_CHANNELS * PATCH_SIZE * PATCH_SIZE   # flattened patch length
ATTN_SCALE   = 1.0 / math.sqrt(HEAD_DIM)
SQRT_HALF    = 1.0 / math.sqrt(2.0)


# ----------------------------- in-kernel helpers ----------------------------

def _erf(z):
    # Abramowitz & Stegun 7.1.26 polynomial erf (|err| < 1.5e-7 ~= f32 eps).  Used in-kernel
    # because lax.erf has no guaranteed Mosaic lowering; in float32 this is indistinguishable
    # from the exact erf-GELU of HF ViT ("gelu", approximate='none').
    p = 0.3275911
    a1, a2, a3, a4, a5 = 0.254829592, -0.284496736, 1.421413741, -1.453152027, 1.061405429
    za = jnp.abs(z)
    t = 1.0 / (1.0 + p * za)
    poly = ((((a5 * t + a4) * t + a3) * t + a2) * t + a1) * t
    e = 1.0 - poly * jnp.exp(-za * za)
    return jnp.where(z < 0.0, -e, e)


def _gelu(x):
    return 0.5 * x * (1.0 + _erf(x * SQRT_HALF))


def _layer_norm(x, g, b):
    mean = jnp.mean(x, axis=-1, keepdims=True)
    var = jnp.mean(jnp.square(x - mean), axis=-1, keepdims=True)
    return (x - mean) * jax.lax.rsqrt(var + LN_EPS) * g + b


# ------------------------------ fused ViT kernel ----------------------------

def _vit_fused_kernel(
    patches_ref,                       # (1, NUM_PATCHES, CPP)   current batch element
    patch_w_ref, patch_b_ref,          # (CPP, H), (1, H)
    cls_ref, pos_ref,                  # (1, H), (SEQ, H)
    ln1_g_ref, ln1_b_ref,              # (L, 1, H)
    wqkv_ref, bqkv_ref,                # (L, H, 3H), (L, 1, 3H)
    wo_ref, bo_ref,                    # (L, H, H), (L, 1, H)
    ln2_g_ref, ln2_b_ref,              # (L, 1, H)
    w1_ref, b1_ref,                    # (L, H, I), (L, 1, I)
    w2_ref, b2_ref,                    # (L, I, H), (L, 1, H)
    lnf_g_ref, lnf_b_ref,              # (1, H)
    pooler_w_ref, pooler_b_ref,        # (H, H), (1, H)
    head_w_ref, head_b_ref,            # (H, NC), (1, NC)
    o_ref,                             # (1, 1, NC) output logits for this batch element
    h_scr,                             # VMEM scratch (SEQ, H)
):
    f32 = jnp.float32

    # --- ViTFeatureExtractor normalization (mean=std=0.5) + patch-embedding matmul ---
    patches = patches_ref[0].astype(f32) * 2.0 - 1.0                     # (P^2, CPP)
    emb = jnp.dot(patches, patch_w_ref[...], preferred_element_type=f32) + patch_b_ref[...]

    # --- [CLS] prepend + positional embedding, assembled in a VMEM scratch slab ---
    h_scr[0:1, :] = cls_ref[...] + pos_ref[0:1, :]
    h_scr[1:SEQ, :] = emb + pos_ref[1:SEQ, :]
    h = h_scr[...]                                                       # (SEQ, H)

    # lane-index row used to build per-head masks (keeps attention lane-dense)
    lane = jax.lax.broadcasted_iota(jnp.int32, (1, HIDDEN), 1)

    for l in range(NUM_LAYERS):                                          # static unroll
        # ----- self-attention block (pre-LN) -----
        ln1 = _layer_norm(h, ln1_g_ref[l], ln1_b_ref[l])
        qkv = jnp.dot(ln1, wqkv_ref[l], preferred_element_type=f32) + bqkv_ref[l]  # (SEQ, 3H)
        q = qkv[:, 0:HIDDEN]
        k = qkv[:, HIDDEN:2 * HIDDEN]
        v = qkv[:, 2 * HIDDEN:3 * HIDDEN]

        ctx = jnp.zeros((SEQ, HIDDEN), f32)
        for hh in range(NUM_HEADS):
            head_mask = jnp.where(
                (lane >= hh * HEAD_DIM) & (lane < (hh + 1) * HEAD_DIM), 1.0, 0.0)
            # (Q * mask_h) @ K^T contracts only over head hh's lanes == Q_h K_h^T, so every
            # matmul stays (SEQ, H)/(SEQ, SEQ)-shaped; no head_dim=8 tiles, no transposes.
            s = jax.lax.dot_general(q * head_mask, k, (((1,), (1,)), ((), ())),
                                    preferred_element_type=f32) * ATTN_SCALE
            s = s - jnp.max(s, axis=-1, keepdims=True)
            p = jnp.exp(s)
            p = p / jnp.sum(p, axis=-1, keepdims=True)
            # P_h @ (V * mask_h) writes exactly head hh's output columns; sum over heads.
            ctx = ctx + jnp.dot(p, v * head_mask, preferred_element_type=f32)

        attn_out = jnp.dot(ctx, wo_ref[l], preferred_element_type=f32) + bo_ref[l]
        h = attn_out + h                                                 # residual 1

        # ----- MLP block (pre-LN) -----
        ln2 = _layer_norm(h, ln2_g_ref[l], ln2_b_ref[l])
        mid = jnp.dot(ln2, w1_ref[l], preferred_element_type=f32) + b1_ref[l]      # (SEQ, I)
        mid = _gelu(mid)
        out = jnp.dot(mid, w2_ref[l], preferred_element_type=f32) + b2_ref[l]
        h = out + h                                                      # residual 2

    # --- final LayerNorm, pooler (dense + tanh on [CLS]) and detection head ---
    hf = _layer_norm(h, lnf_g_ref[...], lnf_b_ref[...])
    cls_tok = hf[0:1, :]                                                 # (1, H)
    pooled = jnp.tanh(jnp.dot(cls_tok, pooler_w_ref[...],
                              preferred_element_type=f32) + pooler_b_ref[...])
    logits = jnp.dot(pooled, head_w_ref[...],
                     preferred_element_type=f32) + head_b_ref[...]       # (1, NC)
    o_ref[0] = logits.astype(o_ref.dtype)


# ------------------------------ model forward -------------------------------

def _replicated_spec(arr):
    nd = arr.ndim
    return pl.BlockSpec(arr.shape, lambda b, nd=nd: (0,) * nd)


def vit_forward(images, params):
    B = images.shape[0]
    L = NUM_LAYERS
    lyrs = params["layers"]

    # Patch extraction (pure layout work; negligible at 16x16 images).  Normalization and
    # the patch-embedding matmul happen inside the fused kernel.
    # TODO(synk): for large IMAGE_SIZE, feed patches via a BlockSpec index_map over (nh, nw)
    # instead of this XLA 6-D transpose; bilinear resize of arbitrary-size images (the
    # ViTFeatureExtractor step) is also omitted — inputs are already model-sized.
    nh = nw = IMAGE_SIZE // PATCH_SIZE
    patches = images.reshape(B, NUM_CHANNELS, nh, PATCH_SIZE, nw, PATCH_SIZE)
    patches = patches.transpose(0, 2, 4, 1, 3, 5).reshape(B, NUM_PATCHES, CPP)

    def stack(name, shape):
        return jnp.stack([lyr[name] for lyr in lyrs]).reshape((L,) + shape)

    weight_args = [
        params["patch_w"].reshape(HIDDEN, CPP).T,                        # (CPP, H), (c,kh,kw)
        params["patch_b"].reshape(1, HIDDEN),
        params["cls_token"].reshape(1, HIDDEN),
        params["pos_emb"].reshape(SEQ, HIDDEN),
        stack("ln1_g", (1, HIDDEN)), stack("ln1_b", (1, HIDDEN)),
        jnp.stack([jnp.concatenate([lyr["wq"], lyr["wk"], lyr["wv"]], axis=1)
                   for lyr in lyrs]),                                    # (L, H, 3H) fused QKV
        jnp.stack([jnp.concatenate([lyr["bq"], lyr["bk"], lyr["bv"]])
                   for lyr in lyrs]).reshape(L, 1, 3 * HIDDEN),
        stack("wo", (HIDDEN, HIDDEN)), stack("bo", (1, HIDDEN)),
        stack("ln2_g", (1, HIDDEN)), stack("ln2_b", (1, HIDDEN)),
        stack("w1", (HIDDEN, INTERMEDIATE)), stack("b1", (1, INTERMEDIATE)),
        stack("w2", (INTERMEDIATE, HIDDEN)), stack("b2", (1, HIDDEN)),
        params["lnf_g"].reshape(1, HIDDEN), params["lnf_b"].reshape(1, HIDDEN),
        params["pooler_w"], params["pooler_b"].reshape(1, HIDDEN),
        params["head_w"], params["head_b"].reshape(1, NUM_CLASSES),
    ]

    in_specs = ([pl.BlockSpec((1, NUM_PATCHES, CPP), lambda b: (b, 0, 0))]
                + [_replicated_spec(a) for a in weight_args])

    logits = pl.pallas_call(
        _vit_fused_kernel,
        out_shape=jax.ShapeDtypeStruct((B, 1, NUM_CLASSES), jnp.float32),
        grid=(B,),
        in_specs=in_specs,
        out_specs=pl.BlockSpec((1, 1, NUM_CLASSES), lambda b: (b, 0, 0)),
        scratch_shapes=[pltpu.VMEM((SEQ, HIDDEN), jnp.float32)],
        compiler_params=pltpu.CompilerParams(dimension_semantics=("parallel",)),
    )(patches, *weight_args)
    return logits.reshape(B, NUM_CLASSES)


# --------------------------- pure-JAX reference ------------------------------

def vit_forward_ref(images, params):
    B = images.shape[0]
    x = (images - 0.5) / 0.5
    nh = nw = IMAGE_SIZE // PATCH_SIZE
    patches = x.reshape(B, NUM_CHANNELS, nh, PATCH_SIZE, nw, PATCH_SIZE)
    patches = patches.transpose(0, 2, 4, 1, 3, 5).reshape(B, NUM_PATCHES, CPP)
    patch_w = params["patch_w"].reshape(HIDDEN, CPP).T
    emb = patches @ patch_w + params["patch_b"]
    cls = jnp.broadcast_to(params["cls_token"], (B, 1, HIDDEN))
    h = jnp.concatenate([cls, emb], axis=1) + params["pos_emb"]

    def ln(t, g, b):
        m = jnp.mean(t, axis=-1, keepdims=True)
        v = jnp.mean(jnp.square(t - m), axis=-1, keepdims=True)
        return (t - m) * jax.lax.rsqrt(v + LN_EPS) * g + b

    def split(t):
        return t.reshape(B, SEQ, NUM_HEADS, HEAD_DIM).transpose(0, 2, 1, 3)

    for layer in params["layers"]:
        x1 = ln(h, layer["ln1_g"], layer["ln1_b"])
        q = split(x1 @ layer["wq"] + layer["bq"])
        k = split(x1 @ layer["wk"] + layer["bk"])
        v = split(x1 @ layer["wv"] + layer["bv"])
        s = jnp.einsum("bhqd,bhkd->bhqk", q, k) * ATTN_SCALE
        p = jax.nn.softmax(s, axis=-1)
        ctx = jnp.einsum("bhqk,bhkd->bhqd", p, v).transpose(0, 2, 1, 3).reshape(B, SEQ, HIDDEN)
        h = ctx @ layer["wo"] + layer["bo"] + h
        x2 = ln(h, layer["ln2_g"], layer["ln2_b"])
        mid = jax.nn.gelu(x2 @ layer["w1"] + layer["b1"], approximate=False)
        h = mid @ layer["w2"] + layer["b2"] + h

    hf = ln(h, params["lnf_g"], params["lnf_b"])
    pooled = jnp.tanh(hf[:, 0, :] @ params["pooler_w"] + params["pooler_b"])
    return pooled @ params["head_w"] + params["head_b"]


# ------------------------------- parameters ----------------------------------

def init_params(key):
    def nrm(k, shape):
        return jax.random.normal(k, shape, jnp.float32) * 0.02

    keys = iter(jax.random.split(key, 8 + 5 * NUM_LAYERS + 2))
    params = {
        "patch_w": nrm(next(keys), (HIDDEN, NUM_CHANNELS, PATCH_SIZE, PATCH_SIZE)),
        "patch_b": jnp.zeros((HIDDEN,), jnp.float32),
        "cls_token": nrm(next(keys), (1, 1, HIDDEN)),
        "pos_emb": nrm(next(keys), (1, SEQ, HIDDEN)),
        "lnf_g": jnp.ones((HIDDEN,), jnp.float32),
        "lnf_b": jnp.zeros((HIDDEN,), jnp.float32),
        "pooler_w": nrm(next(keys), (HIDDEN, HIDDEN)),
        "pooler_b": jnp.zeros((HIDDEN,), jnp.float32),
        "head_w": nrm(next(keys), (HIDDEN, NUM_CLASSES)),
        "head_b": jnp.zeros((NUM_CLASSES,), jnp.float32),
        "layers": [],
    }
    for _ in range(NUM_LAYERS):
        params["layers"].append({
            "ln1_g": jnp.ones((HIDDEN,), jnp.float32),
            "ln1_b": jnp.zeros((HIDDEN,), jnp.float32),
            "wq": nrm(next(keys), (HIDDEN, HIDDEN)), "bq": jnp.zeros((HIDDEN,), jnp.float32),
            "wk": nrm(next(keys), (HIDDEN, HIDDEN)), "bk": jnp.zeros((HIDDEN,), jnp.float32),
            "wv": nrm(next(keys), (HIDDEN, HIDDEN)), "bv": jnp.zeros((HIDDEN,), jnp.float32),
            "wo": nrm(next(keys), (HIDDEN, HIDDEN)), "bo": jnp.zeros((HIDDEN,), jnp.float32),
            "ln2_g": jnp.ones((HIDDEN,), jnp.float32),
            "ln2_b": jnp.zeros((HIDDEN,), jnp.float32),
            "w1": nrm(next(keys), (HIDDEN, INTERMEDIATE)),
            "b1": jnp.zeros((INTERMEDIATE,), jnp.float32),
            "w2": nrm(next(keys), (INTERMEDIATE, HIDDEN)),
            "b2": jnp.zeros((HIDDEN,), jnp.float32),
        })
    return params


# ---------------------------------- main --------------------------------------

if __name__ == "__main__":
    key = jax.random.PRNGKey(0)
    pkey, ikey = jax.random.split(key)
    params = init_params(pkey)
    # images in [0, 1], NCHW (like PyTorch tensors fed to the feature extractor)
    images = jax.random.uniform(ikey, (2, NUM_CHANNELS, IMAGE_SIZE, IMAGE_SIZE),
                                dtype=jnp.float32)

    logits = jax.jit(vit_forward)(images, params)
    logits = jax.block_until_ready(logits)
    assert logits.shape == (2, NUM_CLASSES) and logits.dtype == jnp.float32

    # Numerical sanity check against a pure-JAX (high matmul precision) reference.
    with jax.default_matmul_precision("float32"):
        ref = vit_forward_ref(images, params)
    assert jnp.allclose(logits, ref, atol=2e-3), (
        f"max abs err {jnp.max(jnp.abs(logits - ref)):.3e}")

    print("KERNEL_OK")
</pallas_src>

<mosaic_0001>
module attributes {stable_mosaic.version = 11 : i64} {
  func.func @_vit_fused_kernel(%arg0: i32, %arg1: memref<1x16x48xf32, #tpu.memory_space<vmem>>, %arg2: memref<48x32xf32, #tpu.memory_space<vmem>>, %arg3: memref<1x32xf32, #tpu.memory_space<vmem>>, %arg4: memref<1x32xf32, #tpu.memory_space<vmem>>, %arg5: memref<17x32xf32, #tpu.memory_space<vmem>>, %arg6: memref<2x1x32xf32, #tpu.memory_space<vmem>>, %arg7: memref<2x1x32xf32, #tpu.memory_space<vmem>>, %arg8: memref<2x32x96xf32, #tpu.memory_space<vmem>>, %arg9: memref<2x1x96xf32, #tpu.memory_space<vmem>>, %arg10: memref<2x32x32xf32, #tpu.memory_space<vmem>>, %arg11: memref<2x1x32xf32, #tpu.memory_space<vmem>>, %arg12: memref<2x1x32xf32, #tpu.memory_space<vmem>>, %arg13: memref<2x1x32xf32, #tpu.memory_space<vmem>>, %arg14: memref<2x32x128xf32, #tpu.memory_space<vmem>>, %arg15: memref<2x1x128xf32, #tpu.memory_space<vmem>>, %arg16: memref<2x128x32xf32, #tpu.memory_space<vmem>>, %arg17: memref<2x1x32xf32, #tpu.memory_space<vmem>>, %arg18: memref<1x32xf32, #tpu.memory_space<vmem>>, %arg19: memref<1x32xf32, #tpu.memory_space<vmem>>, %arg20: memref<32x32xf32, #tpu.memory_space<vmem>>, %arg21: memref<1x32xf32, #tpu.memory_space<vmem>>, %arg22: memref<32x5xf32, #tpu.memory_space<vmem>>, %arg23: memref<1x5xf32, #tpu.memory_space<vmem>>, %arg24: memref<1x1x5xf32, #tpu.memory_space<vmem>>, %arg25: memref<17x32xf32, #tpu.memory_space<vmem>>) attributes {dimension_semantics = [#tpu.dimension_semantics<parallel>], iteration_bounds = array<i64: 2>, scalar_prefetch = 0 : i64, scratch_operands = 1 : i64, tpu.core_type = #tpu.core_type<tc>, window_params = [{transform_indices = @transform_0, window_bounds = array<i64: 1, 16, 48>}, {pipeline_mode = #tpu.pipeline_mode<synchronous>, transform_indices = @transform_1, window_bounds = array<i64: 48, 32>}, {pipeline_mode = #tpu.pipeline_mode<synchronous>, transform_indices = @transform_2, window_bounds = array<i64: 1, 32>}, {pipeline_mode = #tpu.pipeline_mode<synchronous>, transform_indices = @transform_3, window_bounds = array<i64: 1, 32>}, {pipeline_mode = #tpu.pipeline_mode<synchronous>, transform_indices = @transform_4, window_bounds = array<i64: 17, 32>}, {pipeline_mode = #tpu.pipeline_mode<synchronous>, transform_indices = @transform_5, window_bounds = array<i64: 2, 1, 32>}, {pipeline_mode = #tpu.pipeline_mode<synchronous>, transform_indices = @transform_6, window_bounds = array<i64: 2, 1, 32>}, {pipeline_mode = #tpu.pipeline_mode<synchronous>, transform_indices = @transform_7, window_bounds = array<i64: 2, 32, 96>}, {pipeline_mode = #tpu.pipeline_mode<synchronous>, transform_indices = @transform_8, window_bounds = array<i64: 2, 1, 96>}, {pipeline_mode = #tpu.pipeline_mode<synchronous>, transform_indices = @transform_9, window_bounds = array<i64: 2, 32, 32>}, {pipeline_mode = #tpu.pipeline_mode<synchronous>, transform_indices = @transform_10, window_bounds = array<i64: 2, 1, 32>}, {pipeline_mode = #tpu.pipeline_mode<synchronous>, transform_indices = @transform_11, window_bounds = array<i64: 2, 1, 32>}, {pipeline_mode = #tpu.pipeline_mode<synchronous>, transform_indices = @transform_12, window_bounds = array<i64: 2, 1, 32>}, {pipeline_mode = #tpu.pipeline_mode<synchronous>, transform_indices = @transform_13, window_bounds = array<i64: 2, 32, 128>}, {pipeline_mode = #tpu.pipeline_mode<synchronous>, transform_indices = @transform_14, window_bounds = array<i64: 2, 1, 128>}, {pipeline_mode = #tpu.pipeline_mode<synchronous>, transform_indices = @transform_15, window_bounds = array<i64: 2, 128, 32>}, {pipeline_mode = #tpu.pipeline_mode<synchronous>, transform_indices = @transform_16, window_bounds = array<i64: 2, 1, 32>}, {pipeline_mode = #tpu.pipeline_mode<synchronous>, transform_indices = @transform_17, window_bounds = array<i64: 1, 32>}, {pipeline_mode = #tpu.pipeline_mode<synchronous>, transform_indices = @transform_18, window_bounds = array<i64: 1, 32>}, {pipeline_mode = #tpu.pipeline_mode<synchronous>, transform_indices = @transform_19, window_bounds = array<i64: 32, 32>}, {pipeline_mode = #tpu.pipeline_mode<synchronous>, transform_indices = @transform_20, window_bounds = array<i64: 1, 32>}, {pipeline_mode = #tpu.pipeline_mode<synchronous>, transform_indices = @transform_21, window_bounds = array<i64: 32, 5>}, {pipeline_mode = #tpu.pipeline_mode<synchronous>, transform_indices = @transform_22, window_bounds = array<i64: 1, 5>}, {transform_indices = @transform_23, window_bounds = array<i64: 1, 1, 5>}]} {
    %c0 = arith.constant 0 : index
    %c0_0 = arith.constant 0 : index
    %c0_1 = arith.constant 0 : index
    %0 = vector.load %arg1[%c0, %c0_0, %c0_1] : memref<1x16x48xf32, #tpu.memory_space<vmem>>, vector<1x16x48xf32>
    %1 = vector.shape_cast %0 : vector<1x16x48xf32> to vector<16x48xf32>
    %cst = arith.constant 2.000000e+00 : f32
    %2 = vector.broadcast %cst : f32 to vector<16x48xf32>
    %3 = arith.mulf %1, %2 : vector<16x48xf32>
    %cst_2 = arith.constant 1.000000e+00 : f32
    %4 = vector.broadcast %cst_2 : f32 to vector<16x48xf32>
    %5 = arith.subf %3, %4 : vector<16x48xf32>
    %c0_3 = arith.constant 0 : index
    %c0_4 = arith.constant 0 : index
    %6 = vector.load %arg2[%c0_3, %c0_4] : memref<48x32xf32, #tpu.memory_space<vmem>>, vector<48x32xf32>
    %cst_5 = arith.constant dense<0.000000e+00> : vector<16x32xf32>
    %7 = tpu.matmul %5, %6, %cst_5 {dimension_numbers = #tpu.dot_dimension_numbers<[1], [0], [0], [1], [0, 0, 1, 1], [], []>} : vector<16x48xf32>, vector<48x32xf32>, vector<16x32xf32> -> vector<16x32xf32>
    %c0_6 = arith.constant 0 : index
    %c0_7 = arith.constant 0 : index
    %8 = vector.load %arg3[%c0_6, %c0_7] : memref<1x32xf32, #tpu.memory_space<vmem>>, vector<1x32xf32>
    %9 = vector.broadcast %8 : vector<1x32xf32> to vector<16x32xf32>
    %10 = arith.addf %7, %9 : vector<16x32xf32>
    %c0_8 = arith.constant 0 : index
    %c0_9 = arith.constant 0 : index
    %11 = vector.load %arg4[%c0_8, %c0_9] : memref<1x32xf32, #tpu.memory_space<vmem>>, vector<1x32xf32>
    %c0_10 = arith.constant 0 : index
    %c0_11 = arith.constant 0 : index
    %12 = vector.load %arg5[%c0_10, %c0_11] : memref<17x32xf32, #tpu.memory_space<vmem>>, vector<1x32xf32>
    %13 = arith.addf %11, %12 : vector<1x32xf32>
    %c0_12 = arith.constant 0 : index
    %c0_13 = arith.constant 0 : index
    %14 = vector.load %arg25[%c0_12, %c0_13] : memref<17x32xf32, #tpu.memory_space<vmem>>, vector<1x32xf32>
    tpu.vector_store %arg25[%c0_12, %c0_13], %13 {strides = array<i32>} : memref<17x32xf32, #tpu.memory_space<vmem>>, vector<1x32xf32>,
    %c1 = arith.constant 1 : index
    %c0_14 = arith.constant 0 : index
    %15 = vector.load %arg5[%c1, %c0_14] : memref<17x32xf32, #tpu.memory_space<vmem>>, vector<16x32xf32>
    %16 = arith.addf %10, %15 : vector<16x32xf32>
    %c1_15 = arith.constant 1 : index
    %c0_16 = arith.constant 0 : index
    %17 = vector.load %arg25[%c1_15, %c0_16] : memref<17x32xf32, #tpu.memory_space<vmem>>, vector<16x32xf32>
    tpu.vector_store %arg25[%c1_15, %c0_16], %16 {strides = array<i32>} : memref<17x32xf32, #tpu.memory_space<vmem>>, vector<16x32xf32>,
    %c0_17 = arith.constant 0 : index
    %c0_18 = arith.constant 0 : index
    %18 = vector.load %arg25[%c0_17, %c0_18] : memref<17x32xf32, #tpu.memory_space<vmem>>, vector<17x32xf32>
    %19 = tpu.iota {dimensions = array<i32: 1>} : vector<1x32xi32>
    %c0_19 = arith.constant 0 : index
    %c0_20 = arith.constant 0 : index
    %c0_21 = arith.constant 0 : index
    %20 = vector.load %arg6[%c0_19, %c0_20, %c0_21] : memref<2x1x32xf32, #tpu.memory_space<vmem>>, vector<1x1x32xf32>
    %21 = vector.shape_cast %20 : vector<1x1x32xf32> to vector<1x32xf32>
    %c0_22 = arith.constant 0 : index
    %c0_23 = arith.constant 0 : index
    %c0_24 = arith.constant 0 : index
    %22 = vector.load %arg7[%c0_22, %c0_23, %c0_24] : memref<2x1x32xf32, #tpu.memory_space<vmem>>, vector<1x1x32xf32>
    %23 = vector.shape_cast %22 : vector<1x1x32xf32> to vector<1x32xf32>
    %cst_25 = arith.constant dense<0.000000e+00> : vector<17xf32>
    %24 = vector.multi_reduction <add>, %18, %cst_25 [1] : vector<17x32xf32> to vector<17xf32>
    %25 = vector.shape_cast %24 : vector<17xf32> to vector<17x1xf32>
    %cst_26 = arith.constant 3.200000e+01 : f32
    %26 = vector.broadcast %cst_26 : f32 to vector<17x1xf32>
    %27 = arith.divf %25, %26 : vector<17x1xf32>
    %28 = vector.broadcast %27 : vector<17x1xf32> to vector<17x32xf32>
    %29 = arith.subf %18, %28 : vector<17x32xf32>
    %30 = arith.mulf %29, %29 : vector<17x32xf32>
    %cst_27 = arith.constant dense<0.000000e+00> : vector<17xf32>
    %31 = vector.multi_reduction <add>, %30, %cst_27 [1] : vector<17x32xf32> to vector<17xf32>
    %32 = vector.shape_cast %31 : vector<17xf32> to vector<17x1xf32>
    %cst_28 = arith.constant 3.200000e+01 : f32
    %33 = vector.broadcast %cst_28 : f32 to vector<17x1xf32>
    %34 = arith.divf %32, %33 : vector<17x1xf32>
    %35 = vector.broadcast %27 : vector<17x1xf32> to vector<17x32xf32>
    %36 = arith.subf %18, %35 : vector<17x32xf32>
    %cst_29 = arith.constant 9.99999996E-13 : f32
    %37 = vector.broadcast %cst_29 : f32 to vector<17x1xf32>
    %38 = arith.addf %34, %37 : vector<17x1xf32>
    %39 = math.rsqrt %38 : vector<17x1xf32>
    %40 = vector.broadcast %39 : vector<17x1xf32> to vector<17x32xf32>
    %41 = arith.mulf %36, %40 : vector<17x32xf32>
    %42 = vector.broadcast %21 : vector<1x32xf32> to vector<17x32xf32>
    %43 = arith.mulf %41, %42 : vector<17x32xf32>
    %44 = vector.broadcast %23 : vector<1x32xf32> to vector<17x32xf32>
    %45 = arith.addf %43, %44 : vector<17x32xf32>
    %c0_30 = arith.constant 0 : index
    %c0_31 = arith.constant 0 : index
    %c0_32 = arith.constant 0 : index
    %46 = vector.load %arg8[%c0_30, %c0_31, %c0_32] : memref<2x32x96xf32, #tpu.memory_space<vmem>>, vector<1x32x96xf32>
    %47 = vector.shape_cast %46 : vector<1x32x96xf32> to vector<32x96xf32>
    %cst_33 = arith.constant dense<0.000000e+00> : vector<17x96xf32>
    %48 = tpu.matmul %45, %47, %cst_33 {dimension_numbers = #tpu.dot_dimension_numbers<[1], [0], [0], [1], [0, 0, 1, 1], [], []>} : vector<17x32xf32>, vector<32x96xf32>, vector<17x96xf32> -> vector<17x96xf32>
    %c0_34 = arith.constant 0 : index
    %c0_35 = arith.constant 0 : index
    %c0_36 = arith.constant 0 : index
    %49 = vector.load %arg9[%c0_34, %c0_35, %c0_36] : memref<2x1x96xf32, #tpu.memory_space<vmem>>, vector<1x1x96xf32>
    %50 = vector.shape_cast %49 : vector<1x1x96xf32> to vector<1x96xf32>
    %51 = vector.broadcast %50 : vector<1x96xf32> to vector<17x96xf32>
    %52 = arith.addf %48, %51 : vector<17x96xf32>
    %53 = vector.extract_strided_slice %52 {offsets = [0, 0], sizes = [17, 32], strides = [1, 1]} : vector<17x96xf32> to vector<17x32xf32>
    %54 = vector.extract_strided_slice %52 {offsets = [0, 32], sizes = [17, 32], strides = [1, 1]} : vector<17x96xf32> to vector<17x32xf32>
    %55 = vector.extract_strided_slice %52 {offsets = [0, 64], sizes = [17, 32], strides = [1, 1]} : vector<17x96xf32> to vector<17x32xf32>
    %cst_37 = arith.constant 0.000000e+00 : f32
    %56 = vector.broadcast %cst_37 : f32 to vector<17x32xf32>
    %c0_i32 = arith.constant 0 : i32
    %57 = vector.broadcast %c0_i32 : i32 to vector<1x32xi32>
    %58 = arith.cmpi sge, %19, %57 : vector<1x32xi32>
    %c8_i32 = arith.constant 8 : i32
    %59 = vector.broadcast %c8_i32 : i32 to vector<1x32xi32>
    %60 = arith.cmpi slt, %19, %59 : vector<1x32xi32>
    %61 = arith.andi %58, %60 : vector<1x32xi1>
    %cst_38 = arith.constant 1.000000e+00 : f32
    %cst_39 = arith.constant 0.000000e+00 : f32
    %62 = vector.broadcast %cst_38 : f32 to vector<1x32xf32>
    %63 = vector.broadcast %cst_39 : f32 to vector<1x32xf32>
    %64 = arith.select %61, %62, %63 : vector<1x32xi1>, vector<1x32xf32>
    %65 = vector.broadcast %64 : vector<1x32xf32> to vector<17x32xf32>
    %66 = arith.mulf %53, %65 : vector<17x32xf32>
    %cst_40 = arith.constant dense<0.000000e+00> : vector<17x17xf32>
    %67 = tpu.matmul %66, %54, %cst_40 {dimension_numbers = #tpu.dot_dimension_numbers<[1], [1], [0], [0], [0, 0, 1, 0], [], []>} : vector<17x32xf32>, vector<17x32xf32>, vector<17x17xf32> -> vector<17x17xf32>
    %cst_41 = arith.constant 0.353553385 : f32
    %68 = vector.broadcast %cst_41 : f32 to vector<17x17xf32>
    %69 = arith.mulf %67, %68 : vector<17x17xf32>
    %cst_42 = arith.constant dense<0xFF800000> : vector<17xf32>
    %70 = vector.multi_reduction <maximumf>, %69, %cst_42 [1] : vector<17x17xf32> to vector<17xf32>
    %71 = vector.shape_cast %70 : vector<17xf32> to vector<17x1xf32>
    %72 = vector.broadcast %71 : vector<17x1xf32> to vector<17x17xf32>
    %73 = arith.subf %69, %72 : vector<17x17xf32>
    %74 = math.exp %73 : vector<17x17xf32>
    %cst_43 = arith.constant dense<0.000000e+00> : vector<17xf32>
    %75 = vector.multi_reduction <add>, %74, %cst_43 [1] : vector<17x17xf32> to vector<17xf32>
    %76 = vector.shape_cast %75 : vector<17xf32> to vector<17x1xf32>
    %77 = vector.broadcast %76 : vector<17x1xf32> to vector<17x17xf32>
    %78 = arith.divf %74, %77 : vector<17x17xf32>
    %79 = vector.broadcast %64 : vector<1x32xf32> to vector<17x32xf32>
    %80 = arith.mulf %55, %79 : vector<17x32xf32>
    %cst_44 = arith.constant dense<0.000000e+00> : vector<17x32xf32>
    %81 = tpu.matmul %78, %80, %cst_44 {dimension_numbers = #tpu.dot_dimension_numbers<[1], [0], [0], [1], [0, 0, 1, 1], [], []>} : vector<17x17xf32>, vector<17x32xf32>, vector<17x32xf32> -> vector<17x32xf32>
    %82 = arith.addf %56, %81 : vector<17x32xf32>
    %c8_i32_45 = arith.constant 8 : i32
    %83 = vector.broadcast %c8_i32_45 : i32 to vector<1x32xi32>
    %84 = arith.cmpi sge, %19, %83 : vector<1x32xi32>
    %c16_i32 = arith.constant 16 : i32
    %85 = vector.broadcast %c16_i32 : i32 to vector<1x32xi32>
    %86 = arith.cmpi slt, %19, %85 : vector<1x32xi32>
    %87 = arith.andi %84, %86 : vector<1x32xi1>
    %cst_46 = arith.constant 1.000000e+00 : f32
    %cst_47 = arith.constant 0.000000e+00 : f32
    %88 = vector.broadcast %cst_46 : f32 to vector<1x32xf32>
    %89 = vector.broadcast %cst_47 : f32 to vector<1x32xf32>
    %90 = arith.select %87, %88, %89 : vector<1x32xi1>, vector<1x32xf32>
    %91 = vector.broadcast %90 : vector<1x32xf32> to vector<17x32xf32>
    %92 = arith.mulf %53, %91 : vector<17x32xf32>
    %cst_48 = arith.constant dense<0.000000e+00> : vector<17x17xf32>
    %93 = tpu.matmul %92, %54, %cst_48 {dimension_numbers = #tpu.dot_dimension_numbers<[1], [1], [0], [0], [0, 0, 1, 0], [], []>} : vector<17x32xf32>, vector<17x32xf32>, vector<17x17xf32> -> vector<17x17xf32>
    %cst_49 = arith.constant 0.353553385 : f32
    %94 = vector.broadcast %cst_49 : f32 to vector<17x17xf32>
    %95 = arith.mulf %93, %94 : vector<17x17xf32>
    %cst_50 = arith.constant dense<0xFF800000> : vector<17xf32>
    %96 = vector.multi_reduction <maximumf>, %95, %cst_50 [1] : vector<17x17xf32> to vector<17xf32>
    %97 = vector.shape_cast %96 : vector<17xf32> to vector<17x1xf32>
    %98 = vector.broadcast %97 : vector<17x1xf32> to vector<17x17xf32>
    %99 = arith.subf %95, %98 : vector<17x17xf32>
    %100 = math.exp %99 : vector<17x17xf32>
    %cst_51 = arith.constant dense<0.000000e+00> : vector<17xf32>
    %101 = vector.multi_reduction <add>, %100, %cst_51 [1] : vector<17x17xf32> to vector<17xf32>
    %102 = vector.shape_cast %101 : vector<17xf32> to vector<17x1xf32>
    %103 = vector.broadcast %102 : vector<17x1xf32> to vector<17x17xf32>
    %104 = arith.divf %100, %103 : vector<17x17xf32>
    %105 = vector.broadcast %90 : vector<1x32xf32> to vector<17x32xf32>
    %106 = arith.mulf %55, %105 : vector<17x32xf32>
    %cst_52 = arith.constant dense<0.000000e+00> : vector<17x32xf32>
    %107 = tpu.matmul %104, %106, %cst_52 {dimension_numbers = #tpu.dot_dimension_numbers<[1], [0], [0], [1], [0, 0, 1, 1], [], []>} : vector<17x17xf32>, vector<17x32xf32>, vector<17x32xf32> -> vector<17x32xf32>
    %108 = arith.addf %82, %107 : vector<17x32xf32>
    %c16_i32_53 = arith.constant 16 : i32
    %109 = vector.broadcast %c16_i32_53 : i32 to vector<1x32xi32>
    %110 = arith.cmpi sge, %19, %109 : vector<1x32xi32>
    %c24_i32 = arith.constant 24 : i32
    %111 = vector.broadcast %c24_i32 : i32 to vector<1x32xi32>
    %112 = arith.cmpi slt, %19, %111 : vector<1x32xi32>
    %113 = arith.andi %110, %112 : vector<1x32xi1>
    %cst_54 = arith.constant 1.000000e+00 : f32
    %cst_55 = arith.constant 0.000000e+00 : f32
    %114 = vector.broadcast %cst_54 : f32 to vector<1x32xf32>
    %115 = vector.broadcast %cst_55 : f32 to vector<1x32xf32>
    %116 = arith.select %113, %114, %115 : vector<1x32xi1>, vector<1x32xf32>
    %117 = vector.broadcast %116 : vector<1x32xf32> to vector<17x32xf32>
    %118 = arith.mulf %53, %117 : vector<17x32xf32>
    %cst_56 = arith.constant dense<0.000000e+00> : vector<17x17xf32>
    %119 = tpu.matmul %118, %54, %cst_56 {dimension_numbers = #tpu.dot_dimension_numbers<[1], [1], [0], [0], [0, 0, 1, 0], [], []>} : vector<17x32xf32>, vector<17x32xf32>, vector<17x17xf32> -> vector<17x17xf32>
    %cst_57 = arith.constant 0.353553385 : f32
    %120 = vector.broadcast %cst_57 : f32 to vector<17x17xf32>
    %121 = arith.mulf %119, %120 : vector<17x17xf32>
    %cst_58 = arith.constant dense<0xFF800000> : vector<17xf32>
    %122 = vector.multi_reduction <maximumf>, %121, %cst_58 [1] : vector<17x17xf32> to vector<17xf32>
    %123 = vector.shape_cast %122 : vector<17xf32> to vector<17x1xf32>
    %124 = vector.broadcast %123 : vector<17x1xf32> to vector<17x17xf32>
    %125 = arith.subf %121, %124 : vector<17x17xf32>
    %126 = math.exp %125 : vector<17x17xf32>
    %cst_59 = arith.constant dense<0.000000e+00> : vector<17xf32>
    %127 = vector.multi_reduction <add>, %126, %cst_59 [1] : vector<17x17xf32> to vector<17xf32>
    %128 = vector.shape_cast %127 : vector<17xf32> to vector<17x1xf32>
    %129 = vector.broadcast %128 : vector<17x1xf32> to vector<17x17xf32>
    %130 = arith.divf %126, %129 : vector<17x17xf32>
    %131 = vector.broadcast %116 : vector<1x32xf32> to vector<17x32xf32>
    %132 = arith.mulf %55, %131 : vector<17x32xf32>
    %cst_60 = arith.constant dense<0.000000e+00> : vector<17x32xf32>
    %133 = tpu.matmul %130, %132, %cst_60 {dimension_numbers = #tpu.dot_dimension_numbers<[1], [0], [0], [1], [0, 0, 1, 1], [], []>} : vector<17x17xf32>, vector<17x32xf32>, vector<17x32xf32> -> vector<17x32xf32>
    %134 = arith.addf %108, %133 : vector<17x32xf32>
    %c24_i32_61 = arith.constant 24 : i32
    %135 = vector.broadcast %c24_i32_61 : i32 to vector<1x32xi32>
    %136 = arith.cmpi sge, %19, %135 : vector<1x32xi32>
    %c32_i32 = arith.constant 32 : i32
    %137 = vector.broadcast %c32_i32 : i32 to vector<1x32xi32>
    %138 = arith.cmpi slt, %19, %137 : vector<1x32xi32>
    %139 = arith.andi %136, %138 : vector<1x32xi1>
    %cst_62 = arith.constant 1.000000e+00 : f32
    %cst_63 = arith.constant 0.000000e+00 : f32
    %140 = vector.broadcast %cst_62 : f32 to vector<1x32xf32>
    %141 = vector.broadcast %cst_63 : f32 to vector<1x32xf32>
    %142 = arith.select %139, %140, %141 : vector<1x32xi1>, vector<1x32xf32>
    %143 = vector.broadcast %142 : vector<1x32xf32> to vector<17x32xf32>
    %144 = arith.mulf %53, %143 : vector<17x32xf32>
    %cst_64 = arith.constant dense<0.000000e+00> : vector<17x17xf32>
    %145 = tpu.matmul %144, %54, %cst_64 {dimension_numbers = #tpu.dot_dimension_numbers<[1], [1], [0], [0], [0, 0, 1, 0], [], []>} : vector<17x32xf32>, vector<17x32xf32>, vector<17x17xf32> -> vector<17x17xf32>
    %cst_65 = arith.constant 0.353553385 : f32
    %146 = vector.broadcast %cst_65 : f32 to vector<17x17xf32>
    %147 = arith.mulf %145, %146 : vector<17x17xf32>
    %cst_66 = arith.constant dense<0xFF800000> : vector<17xf32>
    %148 = vector.multi_reduction <maximumf>, %147, %cst_66 [1] : vector<17x17xf32> to vector<17xf32>
    %149 = vector.shape_cast %148 : vector<17xf32> to vector<17x1xf32>
    %150 = vector.broadcast %149 : vector<17x1xf32> to vector<17x17xf32>
    %151 = arith.subf %147, %150 : vector<17x17xf32>
    %152 = math.exp %151 : vector<17x17xf32>
    %cst_67 = arith.constant dense<0.000000e+00> : vector<17xf32>
    %153 = vector.multi_reduction <add>, %152, %cst_67 [1] : vector<17x17xf32> to vector<17xf32>
    %154 = vector.shape_cast %153 : vector<17xf32> to vector<17x1xf32>
    %155 = vector.broadcast %154 : vector<17x1xf32> to vector<17x17xf32>
    %156 = arith.divf %152, %155 : vector<17x17xf32>
    %157 = vector.broadcast %142 : vector<1x32xf32> to vector<17x32xf32>
    %158 = arith.mulf %55, %157 : vector<17x32xf32>
    %cst_68 = arith.constant dense<0.000000e+00> : vector<17x32xf32>
    %159 = tpu.matmul %156, %158, %cst_68 {dimension_numbers = #tpu.dot_dimension_numbers<[1], [0], [0], [1], [0, 0, 1, 1], [], []>} : vector<17x17xf32>, vector<17x32xf32>, vector<17x32xf32> -> vector<17x32xf32>
    %160 = arith.addf %134, %159 : vector<17x32xf32>
    %c0_69 = arith.constant 0 : index
    %c0_70 = arith.constant 0 : index
    %c0_71 = arith.constant 0 : index
    %161 = vector.load %arg10[%c0_69, %c0_70, %c0_71] : memref<2x32x32xf32, #tpu.memory_space<vmem>>, vector<1x32x32xf32>
    %162 = vector.shape_cast %161 : vector<1x32x32xf32> to vector<32x32xf32>
    %cst_72 = arith.constant dense<0.000000e+00> : vector<17x32xf32>
    %163 = tpu.matmul %160, %162, %cst_72 {dimension_numbers = #tpu.dot_dimension_numbers<[1], [0], [0], [1], [0, 0, 1, 1], [], []>} : vector<17x32xf32>, vector<32x32xf32>, vector<17x32xf32> -> vector<17x32xf32>
    %c0_73 = arith.constant 0 : index
    %c0_74 = arith.constant 0 : index
    %c0_75 = arith.constant 0 : index
    %164 = vector.load %arg11[%c0_73, %c0_74, %c0_75] : memref<2x1x32xf32, #tpu.memory_space<vmem>>, vector<1x1x32xf32>
    %165 = vector.shape_cast %164 : vector<1x1x32xf32> to vector<1x32xf32>
    %166 = vector.broadcast %165 : vector<1x32xf32> to vector<17x32xf32>
    %167 = arith.addf %163, %166 : vector<17x32xf32>
    %168 = arith.addf %167, %18 : vector<17x32xf32>
    %c0_76 = arith.constant 0 : index
    %c0_77 = arith.constant 0 : index
    %c0_78 = arith.constant 0 : index
    %169 = vector.load %arg12[%c0_76, %c0_77, %c0_78] : memref<2x1x32xf32, #tpu.memory_space<vmem>>, vector<1x1x32xf32>
    %170 = vector.shape_cast %169 : vector<1x1x32xf32> to vector<1x32xf32>
    %c0_79 = arith.constant 0 : index
    %c0_80 = arith.constant 0 : index
    %c0_81 = arith.constant 0 : index
    %171 = vector.load %arg13[%c0_79, %c0_80, %c0_81] : memref<2x1x32xf32, #tpu.memory_space<vmem>>, vector<1x1x32xf32>
    %172 = vector.shape_cast %171 : vector<1x1x32xf32> to vector<1x32xf32>
    %cst_82 = arith.constant dense<0.000000e+00> : vector<17xf32>
    %173 = vector.multi_reduction <add>, %168, %cst_82 [1] : vector<17x32xf32> to vector<17xf32>
    %174 = vector.shape_cast %173 : vector<17xf32> to vector<17x1xf32>
    %cst_83 = arith.constant 3.200000e+01 : f32
    %175 = vector.broadcast %cst_83 : f32 to vector<17x1xf32>
    %176 = arith.divf %174, %175 : vector<17x1xf32>
    %177 = vector.broadcast %176 : vector<17x1xf32> to vector<17x32xf32>
    %178 = arith.subf %168, %177 : vector<17x32xf32>
    %179 = arith.mulf %178, %178 : vector<17x32xf32>
    %cst_84 = arith.constant dense<0.000000e+00> : vector<17xf32>
    %180 = vector.multi_reduction <add>, %179, %cst_84 [1] : vector<17x32xf32> to vector<17xf32>
    %181 = vector.shape_cast %180 : vector<17xf32> to vector<17x1xf32>
    %cst_85 = arith.constant 3.200000e+01 : f32
    %182 = vector.broadcast %cst_85 : f32 to vector<17x1xf32>
    %183 = arith.divf %181, %182 : vector<17x1xf32>
    %184 = vector.broadcast %176 : vector<17x1xf32> to vector<17x32xf32>
    %185 = arith.subf %168, %184 : vector<17x32xf32>
    %cst_86 = arith.constant 9.99999996E-13 : f32
    %186 = vector.broadcast %cst_86 : f32 to vector<17x1xf32>
    %187 = arith.addf %183, %186 : vector<17x1xf32>
    %188 = math.rsqrt %187 : vector<17x1xf32>
    %189 = vector.broadcast %188 : vector<17x1xf32> to vector<17x32xf32>
    %190 = arith.mulf %185, %189 : vector<17x32xf32>
    %191 = vector.broadcast %170 : vector<1x32xf32> to vector<17x32xf32>
    %192 = arith.mulf %190, %191 : vector<17x32xf32>
    %193 = vector.broadcast %172 : vector<1x32xf32> to vector<17x32xf32>
    %194 = arith.addf %192, %193 : vector<17x32xf32>
    %c0_87 = arith.constant 0 : index
    %c0_88 = arith.constant 0 : index
    %c0_89 = arith.constant 0 : index
    %195 = vector.load %arg14[%c0_87, %c0_88, %c0_89] : memref<2x32x128xf32, #tpu.memory_space<vmem>>, vector<1x32x128xf32>
    %196 = vector.shape_cast %195 : vector<1x32x128xf32> to vector<32x128xf32>
    %cst_90 = arith.constant dense<0.000000e+00> : vector<17x128xf32>
    %197 = tpu.matmul %194, %196, %cst_90 {dimension_numbers = #tpu.dot_dimension_numbers<[1], [0], [0], [1], [0, 0, 1, 1], [], []>} : vector<17x32xf32>, vector<32x128xf32>, vector<17x128xf32> -> vector<17x128xf32>
    %c0_91 = arith.constant 0 : index
    %c0_92 = arith.constant 0 : index
    %c0_93 = arith.constant 0 : index
    %198 = vector.load %arg15[%c0_91, %c0_92, %c0_93] : memref<2x1x128xf32, #tpu.memory_space<vmem>>, vector<1x1x128xf32>
    %199 = vector.shape_cast %198 : vector<1x1x128xf32> to vector<1x128xf32>
    %200 = vector.broadcast %199 : vector<1x128xf32> to vector<17x128xf32>
    %201 = arith.addf %197, %200 : vector<17x128xf32>
    %cst_94 = arith.constant 5.000000e-01 : f32
    %202 = vector.broadcast %cst_94 : f32 to vector<17x128xf32>
    %203 = arith.mulf %202, %201 : vector<17x128xf32>
    %cst_95 = arith.constant 0.707106769 : f32
    %204 = vector.broadcast %cst_95 : f32 to vector<17x128xf32>
    %205 = arith.mulf %201, %204 : vector<17x128xf32>
    %206 = math.absf %205 : vector<17x128xf32>
    %cst_96 = arith.constant 0.327591091 : f32
    %207 = vector.broadcast %cst_96 : f32 to vector<17x128xf32>
    %208 = arith.mulf %207, %206 : vector<17x128xf32>
    %cst_97 = arith.constant 1.000000e+00 : f32
    %209 = vector.broadcast %cst_97 : f32 to vector<17x128xf32>
    %210 = arith.addf %209, %208 : vector<17x128xf32>
    %cst_98 = arith.constant 1.000000e+00 : f32
    %211 = vector.broadcast %cst_98 : f32 to vector<17x128xf32>
    %212 = arith.divf %211, %210 : vector<17x128xf32>
    %cst_99 = arith.constant 1.06140542 : f32
    %213 = vector.broadcast %cst_99 : f32 to vector<17x128xf32>
    %214 = arith.mulf %213, %212 : vector<17x128xf32>
    %cst_100 = arith.constant -1.45315206 : f32
    %215 = vector.broadcast %cst_100 : f32 to vector<17x128xf32>
    %216 = arith.addf %214, %215 : vector<17x128xf32>
    %217 = arith.mulf %216, %212 : vector<17x128xf32>
    %cst_101 = arith.constant 1.42141378 : f32
    %218 = vector.broadcast %cst_101 : f32 to vector<17x128xf32>
    %219 = arith.addf %217, %218 : vector<17x128xf32>
    %220 = arith.mulf %219, %212 : vector<17x128xf32>
    %cst_102 = arith.constant -0.284496725 : f32
    %221 = vector.broadcast %cst_102 : f32 to vector<17x128xf32>
    %222 = arith.addf %220, %221 : vector<17x128xf32>
    %223 = arith.mulf %222, %212 : vector<17x128xf32>
    %cst_103 = arith.constant 0.254829586 : f32
    %224 = vector.broadcast %cst_103 : f32 to vector<17x128xf32>
    %225 = arith.addf %223, %224 : vector<17x128xf32>
    %226 = arith.mulf %225, %212 : vector<17x128xf32>
    %cst_104 = arith.constant 0.000000e+00 : f32
    %227 = vector.broadcast %cst_104 : f32 to vector<17x128xf32>
    %228 = arith.subf %227, %206 : vector<17x128xf32>
    %229 = arith.mulf %228, %206 : vector<17x128xf32>
    %230 = math.exp %229 : vector<17x128xf32>
    %231 = arith.mulf %226, %230 : vector<17x128xf32>
    %cst_105 = arith.constant 1.000000e+00 : f32
    %232 = vector.broadcast %cst_105 : f32 to vector<17x128xf32>
    %233 = arith.subf %232, %231 : vector<17x128xf32>
    %cst_106 = arith.constant 0.000000e+00 : f32
    %234 = vector.broadcast %cst_106 : f32 to vector<17x128xf32>
    %235 = arith.cmpf olt, %205, %234 : vector<17x128xf32>
    %cst_107 = arith.constant 0.000000e+00 : f32
    %236 = vector.broadcast %cst_107 : f32 to vector<17x128xf32>
    %237 = arith.subf %236, %233 : vector<17x128xf32>
    %238 = arith.select %235, %237, %233 : vector<17x128xi1>, vector<17x128xf32>
    %cst_108 = arith.constant 1.000000e+00 : f32
    %239 = vector.broadcast %cst_108 : f32 to vector<17x128xf32>
    %240 = arith.addf %239, %238 : vector<17x128xf32>
    %241 = arith.mulf %203, %240 : vector<17x128xf32>
    %c0_109 = arith.constant 0 : index
    %c0_110 = arith.constant 0 : index
    %c0_111 = arith.constant 0 : index
    %242 = vector.load %arg16[%c0_109, %c0_110, %c0_111] : memref<2x128x32xf32, #tpu.memory_space<vmem>>, vector<1x128x32xf32>
    %243 = vector.shape_cast %242 : vector<1x128x32xf32> to vector<128x32xf32>
    %cst_112 = arith.constant dense<0.000000e+00> : vector<17x32xf32>
    %244 = tpu.matmul %241, %243, %cst_112 {dimension_numbers = #tpu.dot_dimension_numbers<[1], [0], [0], [1], [0, 0, 1, 1], [], []>} : vector<17x128xf32>, vector<128x32xf32>, vector<17x32xf32> -> vector<17x32xf32>
    %c0_113 = arith.constant 0 : index
    %c0_114 = arith.constant 0 : index
    %c0_115 = arith.constant 0 : index
    %245 = vector.load %arg17[%c0_113, %c0_114, %c0_115] : memref<2x1x32xf32, #tpu.memory_space<vmem>>, vector<1x1x32xf32>
    %246 = vector.shape_cast %245 : vector<1x1x32xf32> to vector<1x32xf32>
    %247 = vector.broadcast %246 : vector<1x32xf32> to vector<17x32xf32>
    %248 = arith.addf %244, %247 : vector<17x32xf32>
    %249 = arith.addf %248, %168 : vector<17x32xf32>
    %c1_116 = arith.constant 1 : index
    %c0_117 = arith.constant 0 : index
    %c0_118 = arith.constant 0 : index
    %250 = vector.load %arg6[%c1_116, %c0_117, %c0_118] : memref<2x1x32xf32, #tpu.memory_space<vmem>>, vector<1x1x32xf32>
    %251 = vector.shape_cast %250 : vector<1x1x32xf32> to vector<1x32xf32>
    %c1_119 = arith.constant 1 : index
    %c0_120 = arith.constant 0 : index
    %c0_121 = arith.constant 0 : index
    %252 = vector.load %arg7[%c1_119, %c0_120, %c0_121] : memref<2x1x32xf32, #tpu.memory_space<vmem>>, vector<1x1x32xf32>
    %253 = vector.shape_cast %252 : vector<1x1x32xf32> to vector<1x32xf32>
    %cst_122 = arith.constant dense<0.000000e+00> : vector<17xf32>
    %254 = vector.multi_reduction <add>, %249, %cst_122 [1] : vector<17x32xf32> to vector<17xf32>
    %255 = vector.shape_cast %254 : vector<17xf32> to vector<17x1xf32>
    %cst_123 = arith.constant 3.200000e+01 : f32
    %256 = vector.broadcast %cst_123 : f32 to vector<17x1xf32>
    %257 = arith.divf %255, %256 : vector<17x1xf32>
    %258 = vector.broadcast %257 : vector<17x1xf32> to vector<17x32xf32>
    %259 = arith.subf %249, %258 : vector<17x32xf32>
    %260 = arith.mulf %259, %259 : vector<17x32xf32>
    %cst_124 = arith.constant dense<0.000000e+00> : vector<17xf32>
    %261 = vector.multi_reduction <add>, %260, %cst_124 [1] : vector<17x32xf32> to vector<17xf32>
    %262 = vector.shape_cast %261 : vector<17xf32> to vector<17x1xf32>
    %cst_125 = arith.constant 3.200000e+01 : f32
    %263 = vector.broadcast %cst_125 : f32 to vector<17x1xf32>
    %264 = arith.divf %262, %263 : vector<17x1xf32>
    %265 = vector.broadcast %257 : vector<17x1xf32> to vector<17x32xf32>
    %266 = arith.subf %249, %265 : vector<17x32xf32>
    %cst_126 = arith.constant 9.99999996E-13 : f32
    %267 = vector.broadcast %cst_126 : f32 to vector<17x1xf32>
    %268 = arith.addf %264, %267 : vector<17x1xf32>
    %269 = math.rsqrt %268 : vector<17x1xf32>
    %270 = vector.broadcast %269 : vector<17x1xf32> to vector<17x32xf32>
    %271 = arith.mulf %266, %270 : vector<17x32xf32>
    %272 = vector.broadcast %251 : vector<1x32xf32> to vector<17x32xf32>
    %273 = arith.mulf %271, %272 : vector<17x32xf32>
    %274 = vector.broadcast %253 : vector<1x32xf32> to vector<17x32xf32>
    %275 = arith.addf %273, %274 : vector<17x32xf32>
    %c1_127 = arith.constant 1 : index
    %c0_128 = arith.constant 0 : index
    %c0_129 = arith.constant 0 : index
    %276 = vector.load %arg8[%c1_127, %c0_128, %c0_129] : memref<2x32x96xf32, #tpu.memory_space<vmem>>, vector<1x32x96xf32>
    %277 = vector.shape_cast %276 : vector<1x32x96xf32> to vector<32x96xf32>
    %cst_130 = arith.constant dense<0.000000e+00> : vector<17x96xf32>
    %278 = tpu.matmul %275, %277, %cst_130 {dimension_numbers = #tpu.dot_dimension_numbers<[1], [0], [0], [1], [0, 0, 1, 1], [], []>} : vector<17x32xf32>, vector<32x96xf32>, vector<17x96xf32> -> vector<17x96xf32>
    %c1_131 = arith.constant 1 : index
    %c0_132 = arith.constant 0 : index
    %c0_133 = arith.constant 0 : index
    %279 = vector.load %arg9[%c1_131, %c0_132, %c0_133] : memref<2x1x96xf32, #tpu.memory_space<vmem>>, vector<1x1x96xf32>
    %280 = vector.shape_cast %279 : vector<1x1x96xf32> to vector<1x96xf32>
    %281 = vector.broadcast %280 : vector<1x96xf32> to vector<17x96xf32>
    %282 = arith.addf %278, %281 : vector<17x96xf32>
    %283 = vector.extract_strided_slice %282 {offsets = [0, 0], sizes = [17, 32], strides = [1, 1]} : vector<17x96xf32> to vector<17x32xf32>
    %284 = vector.extract_strided_slice %282 {offsets = [0, 32], sizes = [17, 32], strides = [1, 1]} : vector<17x96xf32> to vector<17x32xf32>
    %285 = vector.extract_strided_slice %282 {offsets = [0, 64], sizes = [17, 32], strides = [1, 1]} : vector<17x96xf32> to vector<17x32xf32>
    %cst_134 = arith.constant 0.000000e+00 : f32
    %286 = vector.broadcast %cst_134 : f32 to vector<17x32xf32>
    %c0_i32_135 = arith.constant 0 : i32
    %287 = vector.broadcast %c0_i32_135 : i32 to vector<1x32xi32>
    %288 = arith.cmpi sge, %19, %287 : vector<1x32xi32>
    %c8_i32_136 = arith.constant 8 : i32
    %289 = vector.broadcast %c8_i32_136 : i32 to vector<1x32xi32>
    %290 = arith.cmpi slt, %19, %289 : vector<1x32xi32>
    %291 = arith.andi %288, %290 : vector<1x32xi1>
    %cst_137 = arith.constant 1.000000e+00 : f32
    %cst_138 = arith.constant 0.000000e+00 : f32
    %292 = vector.broadcast %cst_137 : f32 to vector<1x32xf32>
    %293 = vector.broadcast %cst_138 : f32 to vector<1x32xf32>
    %294 = arith.select %291, %292, %293 : vector<1x32xi1>, vector<1x32xf32>
    %295 = vector.broadcast %294 : vector<1x32xf32> to vector<17x32xf32>
    %296 = arith.mulf %283, %295 : vector<17x32xf32>
    %cst_139 = arith.constant dense<0.000000e+00> : vector<17x17xf32>
    %297 = tpu.matmul %296, %284, %cst_139 {dimension_numbers = #tpu.dot_dimension_numbers<[1], [1], [0], [0], [0, 0, 1, 0], [], []>} : vector<17x32xf32>, vector<17x32xf32>, vector<17x17xf32> -> vector<17x17xf32>
    %cst_140 = arith.constant 0.353553385 : f32
    %298 = vector.broadcast %cst_140 : f32 to vector<17x17xf32>
    %299 = arith.mulf %297, %298 : vector<17x17xf32>
    %cst_141 = arith.constant dense<0xFF800000> : vector<17xf32>
    %300 = vector.multi_reduction <maximumf>, %299, %cst_141 [1] : vector<17x17xf32> to vector<17xf32>
    %301 = vector.shape_cast %300 : vector<17xf32> to vector<17x1xf32>
    %302 = vector.broadcast %301 : vector<17x1xf32> to vector<17x17xf32>
    %303 = arith.subf %299, %302 : vector<17x17xf32>
    %304 = math.exp %303 : vector<17x17xf32>
    %cst_142 = arith.constant dense<0.000000e+00> : vector<17xf32>
    %305 = vector.multi_reduction <add>, %304, %cst_142 [1] : vector<17x17xf32> to vector<17xf32>
    %306 = vector.shape_cast %305 : vector<17xf32> to vector<17x1xf32>
    %307 = vector.broadcast %306 : vector<17x1xf32> to vector<17x17xf32>
    %308 = arith.divf %304, %307 : vector<17x17xf32>
    %309 = vector.broadcast %294 : vector<1x32xf32> to vector<17x32xf32>
    %310 = arith.mulf %285, %309 : vector<17x32xf32>
    %cst_143 = arith.constant dense<0.000000e+00> : vector<17x32xf32>
    %311 = tpu.matmul %308, %310, %cst_143 {dimension_numbers = #tpu.dot_dimension_numbers<[1], [0], [0], [1], [0, 0, 1, 1], [], []>} : vector<17x17xf32>, vector<17x32xf32>, vector<17x32xf32> -> vector<17x32xf32>
    %312 = arith.addf %286, %311 : vector<17x32xf32>
    %c8_i32_144 = arith.constant 8 : i32
    %313 = vector.broadcast %c8_i32_144 : i32 to vector<1x32xi32>
    %314 = arith.cmpi sge, %19, %313 : vector<1x32xi32>
    %c16_i32_145 = arith.constant 16 : i32
    %315 = vector.broadcast %c16_i32_145 : i32 to vector<1x32xi32>
    %316 = arith.cmpi slt, %19, %315 : vector<1x32xi32>
    %317 = arith.andi %314, %316 : vector<1x32xi1>
    %cst_146 = arith.constant 1.000000e+00 : f32
    %cst_147 = arith.constant 0.000000e+00 : f32
    %318 = vector.broadcast %cst_146 : f32 to vector<1x32xf32>
    %319 = vector.broadcast %cst_147 : f32 to vector<1x32xf32>
    %320 = arith.select %317, %318, %319 : vector<1x32xi1>, vector<1x32xf32>
    %321 = vector.broadcast %320 : vector<1x32xf32> to vector<17x32xf32>
    %322 = arith.mulf %283, %321 : vector<17x32xf32>
    %cst_148 = arith.constant dense<0.000000e+00> : vector<17x17xf32>
    %323 = tpu.matmul %322, %284, %cst_148 {dimension_numbers = #tpu.dot_dimension_numbers<[1], [1], [0], [0], [0, 0, 1, 0], [], []>} : vector<17x32xf32>, vector<17x32xf32>, vector<17x17xf32> -> vector<17x17xf32>
    %cst_149 = arith.constant 0.353553385 : f32
    %324 = vector.broadcast %cst_149 : f32 to vector<17x17xf32>
    %325 = arith.mulf %323, %324 : vector<17x17xf32>
    %cst_150 = arith.constant dense<0xFF800000> : vector<17xf32>
    %326 = vector.multi_reduction <maximumf>, %325, %cst_150 [1] : vector<17x17xf32> to vector<17xf32>
    %327 = vector.shape_cast %326 : vector<17xf32> to vector<17x1xf32>
    %328 = vector.broadcast %327 : vector<17x1xf32> to vector<17x17xf32>
    %329 = arith.subf %325, %328 : vector<17x17xf32>
    %330 = math.exp %329 : vector<17x17xf32>
    %cst_151 = arith.constant dense<0.000000e+00> : vector<17xf32>
    %331 = vector.multi_reduction <add>, %330, %cst_151 [1] : vector<17x17xf32> to vector<17xf32>
    %332 = vector.shape_cast %331 : vector<17xf32> to vector<17x1xf32>
    %333 = vector.broadcast %332 : vector<17x1xf32> to vector<17x17xf32>
    %334 = arith.divf %330, %333 : vector<17x17xf32>
    %335 = vector.broadcast %320 : vector<1x32xf32> to vector<17x32xf32>
    %336 = arith.mulf %285, %335 : vector<17x32xf32>
    %cst_152 = arith.constant dense<0.000000e+00> : vector<17x32xf32>
    %337 = tpu.matmul %334, %336, %cst_152 {dimension_numbers = #tpu.dot_dimension_numbers<[1], [0], [0], [1], [0, 0, 1, 1], [], []>} : vector<17x17xf32>, vector<17x32xf32>, vector<17x32xf32> -> vector<17x32xf32>
    %338 = arith.addf %312, %337 : vector<17x32xf32>
    %c16_i32_153 = arith.constant 16 : i32
    %339 = vector.broadcast %c16_i32_153 : i32 to vector<1x32xi32>
    %340 = arith.cmpi sge, %19, %339 : vector<1x32xi32>
    %c24_i32_154 = arith.constant 24 : i32
    %341 = vector.broadcast %c24_i32_154 : i32 to vector<1x32xi32>
    %342 = arith.cmpi slt, %19, %341 : vector<1x32xi32>
    %343 = arith.andi %340, %342 : vector<1x32xi1>
    %cst_155 = arith.constant 1.000000e+00 : f32
    %cst_156 = arith.constant 0.000000e+00 : f32
    %344 = vector.broadcast %cst_155 : f32 to vector<1x32xf32>
    %345 = vector.broadcast %cst_156 : f32 to vector<1x32xf32>
    %346 = arith.select %343, %344, %345 : vector<1x32xi1>, vector<1x32xf32>
    %347 = vector.broadcast %346 : vector<1x32xf32> to vector<17x32xf32>
    %348 = arith.mulf %283, %347 : vector<17x32xf32>
    %cst_157 = arith.constant dense<0.000000e+00> : vector<17x17xf32>
    %349 = tpu.matmul %348, %284, %cst_157 {dimension_numbers = #tpu.dot_dimension_numbers<[1], [1], [0], [0], [0, 0, 1, 0], [], []>} : vector<17x32xf32>, vector<17x32xf32>, vector<17x17xf32> -> vector<17x17xf32>
    %cst_158 = arith.constant 0.353553385 : f32
    %350 = vector.broadcast %cst_158 : f32 to vector<17x17xf32>
    %351 = arith.mulf %349, %350 : vector<17x17xf32>
    %cst_159 = arith.constant dense<0xFF800000> : vector<17xf32>
    %352 = vector.multi_reduction <maximumf>, %351, %cst_159 [1] : vector<17x17xf32> to vector<17xf32>
    %353 = vector.shape_cast %352 : vector<17xf32> to vector<17x1xf32>
    %354 = vector.broadcast %353 : vector<17x1xf32> to vector<17x17xf32>
    %355 = arith.subf %351, %354 : vector<17x17xf32>
    %356 = math.exp %355 : vector<17x17xf32>
    %cst_160 = arith.constant dense<0.000000e+00> : vector<17xf32>
    %357 = vector.multi_reduction <add>, %356, %cst_160 [1] : vector<17x17xf32> to vector<17xf32>
    %358 = vector.shape_cast %357 : vector<17xf32> to vector<17x1xf32>
    %359 = vector.broadcast %358 : vector<17x1xf32> to vector<17x17xf32>
    %360 = arith.divf %356, %359 : vector<17x17xf32>
    %361 = vector.broadcast %346 : vector<1x32xf32> to vector<17x32xf32>
    %362 = arith.mulf %285, %361 : vector<17x32xf32>
    %cst_161 = arith.constant dense<0.000000e+00> : vector<17x32xf32>
    %363 = tpu.matmul %360, %362, %cst_161 {dimension_numbers = #tpu.dot_dimension_numbers<[1], [0], [0], [1], [0, 0, 1, 1], [], []>} : vector<17x17xf32>, vector<17x32xf32>, vector<17x32xf32> -> vector<17x32xf32>
    %364 = arith.addf %338, %363 : vector<17x32xf32>
    %c24_i32_162 = arith.constant 24 : i32
    %365 = vector.broadcast %c24_i32_162 : i32 to vector<1x32xi32>
    %366 = arith.cmpi sge, %19, %365 : vector<1x32xi32>
    %c32_i32_163 = arith.constant 32 : i32
    %367 = vector.broadcast %c32_i32_163 : i32 to vector<1x32xi32>
    %368 = arith.cmpi slt, %19, %367 : vector<1x32xi32>
    %369 = arith.andi %366, %368 : vector<1x32xi1>
    %cst_164 = arith.constant 1.000000e+00 : f32
    %cst_165 = arith.constant 0.000000e+00 : f32
    %370 = vector.broadcast %cst_164 : f32 to vector<1x32xf32>
    %371 = vector.broadcast %cst_165 : f32 to vector<1x32xf32>
    %372 = arith.select %369, %370, %371 : vector<1x32xi1>, vector<1x32xf32>
    %373 = vector.broadcast %372 : vector<1x32xf32> to vector<17x32xf32>
    %374 = arith.mulf %283, %373 : vector<17x32xf32>
    %cst_166 = arith.constant dense<0.000000e+00> : vector<17x17xf32>
    %375 = tpu.matmul %374, %284, %cst_166 {dimension_numbers = #tpu.dot_dimension_numbers<[1], [1], [0], [0], [0, 0, 1, 0], [], []>} : vector<17x32xf32>, vector<17x32xf32>, vector<17x17xf32> -> vector<17x17xf32>
    %cst_167 = arith.constant 0.353553385 : f32
    %376 = vector.broadcast %cst_167 : f32 to vector<17x17xf32>
    %377 = arith.mulf %375, %376 : vector<17x17xf32>
    %cst_168 = arith.constant dense<0xFF800000> : vector<17xf32>
    %378 = vector.multi_reduction <maximumf>, %377, %cst_168 [1] : vector<17x17xf32> to vector<17xf32>
    %379 = vector.shape_cast %378 : vector<17xf32> to vector<17x1xf32>
    %380 = vector.broadcast %379 : vector<17x1xf32> to vector<17x17xf32>
    %381 = arith.subf %377, %380 : vector<17x17xf32>
    %382 = math.exp %381 : vector<17x17xf32>
    %cst_169 = arith.constant dense<0.000000e+00> : vector<17xf32>
    %383 = vector.multi_reduction <add>, %382, %cst_169 [1] : vector<17x17xf32> to vector<17xf32>
    %384 = vector.shape_cast %383 : vector<17xf32> to vector<17x1xf32>
    %385 = vector.broadcast %384 : vector<17x1xf32> to vector<17x17xf32>
    %386 = arith.divf %382, %385 : vector<17x17xf32>
    %387 = vector.broadcast %372 : vector<1x32xf32> to vector<17x32xf32>
    %388 = arith.mulf %285, %387 : vector<17x32xf32>
    %cst_170 = arith.constant dense<0.000000e+00> : vector<17x32xf32>
    %389 = tpu.matmul %386, %388, %cst_170 {dimension_numbers = #tpu.dot_dimension_numbers<[1], [0], [0], [1], [0, 0, 1, 1], [], []>} : vector<17x17xf32>, vector<17x32xf32>, vector<17x32xf32> -> vector<17x32xf32>
    %390 = arith.addf %364, %389 : vector<17x32xf32>
    %c1_171 = arith.constant 1 : index
    %c0_172 = arith.constant 0 : index
    %c0_173 = arith.constant 0 : index
    %391 = vector.load %arg10[%c1_171, %c0_172, %c0_173] : memref<2x32x32xf32, #tpu.memory_space<vmem>>, vector<1x32x32xf32>
    %392 = vector.shape_cast %391 : vector<1x32x32xf32> to vector<32x32xf32>
    %cst_174 = arith.constant dense<0.000000e+00> : vector<17x32xf32>
    %393 = tpu.matmul %390, %392, %cst_174 {dimension_numbers = #tpu.dot_dimension_numbers<[1], [0], [0], [1], [0, 0, 1, 1], [], []>} : vector<17x32xf32>, vector<32x32xf32>, vector<17x32xf32> -> vector<17x32xf32>
    %c1_175 = arith.constant 1 : index
    %c0_176 = arith.constant 0 : index
    %c0_177 = arith.constant 0 : index
    %394 = vector.load %arg11[%c1_175, %c0_176, %c0_177] : memref<2x1x32xf32, #tpu.memory_space<vmem>>, vector<1x1x32xf32>
    %395 = vector.shape_cast %394 : vector<1x1x32xf32> to vector<1x32xf32>
    %396 = vector.broadcast %395 : vector<1x32xf32> to vector<17x32xf32>
    %397 = arith.addf %393, %396 : vector<17x32xf32>
    %398 = arith.addf %397, %249 : vector<17x32xf32>
    %c1_178 = arith.constant 1 : index
    %c0_179 = arith.constant 0 : index
    %c0_180 = arith.constant 0 : index
    %399 = vector.load %arg12[%c1_178, %c0_179, %c0_180] : memref<2x1x32xf32, #tpu.memory_space<vmem>>, vector<1x1x32xf32>
    %400 = vector.shape_cast %399 : vector<1x1x32xf32> to vector<1x32xf32>
    %c1_181 = arith.constant 1 : index
    %c0_182 = arith.constant 0 : index
    %c0_183 = arith.constant 0 : index
    %401 = vector.load %arg13[%c1_181, %c0_182, %c0_183] : memref<2x1x32xf32, #tpu.memory_space<vmem>>, vector<1x1x32xf32>
    %402 = vector.shape_cast %401 : vector<1x1x32xf32> to vector<1x32xf32>
    %cst_184 = arith.constant dense<0.000000e+00> : vector<17xf32>
    %403 = vector.multi_reduction <add>, %398, %cst_184 [1] : vector<17x32xf32> to vector<17xf32>
    %404 = vector.shape_cast %403 : vector<17xf32> to vector<17x1xf32>
    %cst_185 = arith.constant 3.200000e+01 : f32
    %405 = vector.broadcast %cst_185 : f32 to vector<17x1xf32>
    %406 = arith.divf %404, %405 : vector<17x1xf32>
    %407 = vector.broadcast %406 : vector<17x1xf32> to vector<17x32xf32>
    %408 = arith.subf %398, %407 : vector<17x32xf32>
    %409 = arith.mulf %408, %408 : vector<17x32xf32>
    %cst_186 = arith.constant dense<0.000000e+00> : vector<17xf32>
    %410 = vector.multi_reduction <add>, %409, %cst_186 [1] : vector<17x32xf32> to vector<17xf32>
    %411 = vector.shape_cast %410 : vector<17xf32> to vector<17x1xf32>
    %cst_187 = arith.constant 3.200000e+01 : f32
    %412 = vector.broadcast %cst_187 : f32 to vector<17x1xf32>
    %413 = arith.divf %411, %412 : vector<17x1xf32>
    %414 = vector.broadcast %406 : vector<17x1xf32> to vector<17x32xf32>
    %415 = arith.subf %398, %414 : vector<17x32xf32>
    %cst_188 = arith.constant 9.99999996E-13 : f32
    %416 = vector.broadcast %cst_188 : f32 to vector<17x1xf32>
    %417 = arith.addf %413, %416 : vector<17x1xf32>
    %418 = math.rsqrt %417 : vector<17x1xf32>
    %419 = vector.broadcast %418 : vector<17x1xf32> to vector<17x32xf32>
    %420 = arith.mulf %415, %419 : vector<17x32xf32>
    %421 = vector.broadcast %400 : vector<1x32xf32> to vector<17x32xf32>
    %422 = arith.mulf %420, %421 : vector<17x32xf32>
    %423 = vector.broadcast %402 : vector<1x32xf32> to vector<17x32xf32>
    %424 = arith.addf %422, %423 : vector<17x32xf32>
    %c1_189 = arith.constant 1 : index
    %c0_190 = arith.constant 0 : index
    %c0_191 = arith.constant 0 : index
    %425 = vector.load %arg14[%c1_189, %c0_190, %c0_191] : memref<2x32x128xf32, #tpu.memory_space<vmem>>, vector<1x32x128xf32>
    %426 = vector.shape_cast %425 : vector<1x32x128xf32> to vector<32x128xf32>
    %cst_192 = arith.constant dense<0.000000e+00> : vector<17x128xf32>
    %427 = tpu.matmul %424, %426, %cst_192 {dimension_numbers = #tpu.dot_dimension_numbers<[1], [0], [0], [1], [0, 0, 1, 1], [], []>} : vector<17x32xf32>, vector<32x128xf32>, vector<17x128xf32> -> vector<17x128xf32>
    %c1_193 = arith.constant 1 : index
    %c0_194 = arith.constant 0 : index
    %c0_195 = arith.constant 0 : index
    %428 = vector.load %arg15[%c1_193, %c0_194, %c0_195] : memref<2x1x128xf32, #tpu.memory_space<vmem>>, vector<1x1x128xf32>
    %429 = vector.shape_cast %428 : vector<1x1x128xf32> to vector<1x128xf32>
    %430 = vector.broadcast %429 : vector<1x128xf32> to vector<17x128xf32>
    %431 = arith.addf %427, %430 : vector<17x128xf32>
    %cst_196 = arith.constant 5.000000e-01 : f32
    %432 = vector.broadcast %cst_196 : f32 to vector<17x128xf32>
    %433 = arith.mulf %432, %431 : vector<17x128xf32>
    %cst_197 = arith.constant 0.707106769 : f32
    %434 = vector.broadcast %cst_197 : f32 to vector<17x128xf32>
    %435 = arith.mulf %431, %434 : vector<17x128xf32>
    %436 = math.absf %435 : vector<17x128xf32>
    %cst_198 = arith.constant 0.327591091 : f32
    %437 = vector.broadcast %cst_198 : f32 to vector<17x128xf32>
    %438 = arith.mulf %437, %436 : vector<17x128xf32>
    %cst_199 = arith.constant 1.000000e+00 : f32
    %439 = vector.broadcast %cst_199 : f32 to vector<17x128xf32>
    %440 = arith.addf %439, %438 : vector<17x128xf32>
    %cst_200 = arith.constant 1.000000e+00 : f32
    %441 = vector.broadcast %cst_200 : f32 to vector<17x128xf32>
    %442 = arith.divf %441, %440 : vector<17x128xf32>
    %cst_201 = arith.constant 1.06140542 : f32
    %443 = vector.broadcast %cst_201 : f32 to vector<17x128xf32>
    %444 = arith.mulf %443, %442 : vector<17x128xf32>
    %cst_202 = arith.constant -1.45315206 : f32
    %445 = vector.broadcast %cst_202 : f32 to vector<17x128xf32>
    %446 = arith.addf %444, %445 : vector<17x128xf32>
    %447 = arith.mulf %446, %442 : vector<17x128xf32>
    %cst_203 = arith.constant 1.42141378 : f32
    %448 = vector.broadcast %cst_203 : f32 to vector<17x128xf32>
    %449 = arith.addf %447, %448 : vector<17x128xf32>
    %450 = arith.mulf %449, %442 : vector<17x128xf32>
    %cst_204 = arith.constant -0.284496725 : f32
    %451 = vector.broadcast %cst_204 : f32 to vector<17x128xf32>
    %452 = arith.addf %450, %451 : vector<17x128xf32>
    %453 = arith.mulf %452, %442 : vector<17x128xf32>
    %cst_205 = arith.constant 0.254829586 : f32
    %454 = vector.broadcast %cst_205 : f32 to vector<17x128xf32>
    %455 = arith.addf %453, %454 : vector<17x128xf32>
    %456 = arith.mulf %455, %442 : vector<17x128xf32>
    %cst_206 = arith.constant 0.000000e+00 : f32
    %457 = vector.broadcast %cst_206 : f32 to vector<17x128xf32>
    %458 = arith.subf %457, %436 : vector<17x128xf32>
    %459 = arith.mulf %458, %436 : vector<17x128xf32>
    %460 = math.exp %459 : vector<17x128xf32>
    %461 = arith.mulf %456, %460 : vector<17x128xf32>
    %cst_207 = arith.constant 1.000000e+00 : f32
    %462 = vector.broadcast %cst_207 : f32 to vector<17x128xf32>
    %463 = arith.subf %462, %461 : vector<17x128xf32>
    %cst_208 = arith.constant 0.000000e+00 : f32
    %464 = vector.broadcast %cst_208 : f32 to vector<17x128xf32>
    %465 = arith.cmpf olt, %435, %464 : vector<17x128xf32>
    %cst_209 = arith.constant 0.000000e+00 : f32
    %466 = vector.broadcast %cst_209 : f32 to vector<17x128xf32>
    %467 = arith.subf %466, %463 : vector<17x128xf32>
    %468 = arith.select %465, %467, %463 : vector<17x128xi1>, vector<17x128xf32>
    %cst_210 = arith.constant 1.000000e+00 : f32
    %469 = vector.broadcast %cst_210 : f32 to vector<17x128xf32>
    %470 = arith.addf %469, %468 : vector<17x128xf32>
    %471 = arith.mulf %433, %470 : vector<17x128xf32>
    %c1_211 = arith.constant 1 : index
    %c0_212 = arith.constant 0 : index
    %c0_213 = arith.constant 0 : index
    %472 = vector.load %arg16[%c1_211, %c0_212, %c0_213] : memref<2x128x32xf32, #tpu.memory_space<vmem>>, vector<1x128x32xf32>
    %473 = vector.shape_cast %472 : vector<1x128x32xf32> to vector<128x32xf32>
    %cst_214 = arith.constant dense<0.000000e+00> : vector<17x32xf32>
    %474 = tpu.matmul %471, %473, %cst_214 {dimension_numbers = #tpu.dot_dimension_numbers<[1], [0], [0], [1], [0, 0, 1, 1], [], []>} : vector<17x128xf32>, vector<128x32xf32>, vector<17x32xf32> -> vector<17x32xf32>
    %c1_215 = arith.constant 1 : index
    %c0_216 = arith.constant 0 : index
    %c0_217 = arith.constant 0 : index
    %475 = vector.load %arg17[%c1_215, %c0_216, %c0_217] : memref<2x1x32xf32, #tpu.memory_space<vmem>>, vector<1x1x32xf32>
    %476 = vector.shape_cast %475 : vector<1x1x32xf32> to vector<1x32xf32>
    %477 = vector.broadcast %476 : vector<1x32xf32> to vector<17x32xf32>
    %478 = arith.addf %474, %477 : vector<17x32xf32>
    %479 = arith.addf %478, %398 : vector<17x32xf32>
    %c0_218 = arith.constant 0 : index
    %c0_219 = arith.constant 0 : index
    %480 = vector.load %arg18[%c0_218, %c0_219] : memref<1x32xf32, #tpu.memory_space<vmem>>, vector<1x32xf32>
    %c0_220 = arith.constant 0 : index
    %c0_221 = arith.constant 0 : index
    %481 = vector.load %arg19[%c0_220, %c0_221] : memref<1x32xf32, #tpu.memory_space<vmem>>, vector<1x32xf32>
    %cst_222 = arith.constant dense<0.000000e+00> : vector<17xf32>
    %482 = vector.multi_reduction <add>, %479, %cst_222 [1] : vector<17x32xf32> to vector<17xf32>
    %483 = vector.shape_cast %482 : vector<17xf32> to vector<17x1xf32>
    %cst_223 = arith.constant 3.200000e+01 : f32
    %484 = vector.broadcast %cst_223 : f32 to vector<17x1xf32>
    %485 = arith.divf %483, %484 : vector<17x1xf32>
    %486 = vector.broadcast %485 : vector<17x1xf32> to vector<17x32xf32>
    %487 = arith.subf %479, %486 : vector<17x32xf32>
    %488 = arith.mulf %487, %487 : vector<17x32xf32>
    %cst_224 = arith.constant dense<0.000000e+00> : vector<17xf32>
    %489 = vector.multi_reduction <add>, %488, %cst_224 [1] : vector<17x32xf32> to vector<17xf32>
    %490 = vector.shape_cast %489 : vector<17xf32> to vector<17x1xf32>
    %cst_225 = arith.constant 3.200000e+01 : f32
    %491 = vector.broadcast %cst_225 : f32 to vector<17x1xf32>
    %492 = arith.divf %490, %491 : vector<17x1xf32>
    %493 = vector.broadcast %485 : vector<17x1xf32> to vector<17x32xf32>
    %494 = arith.subf %479, %493 : vector<17x32xf32>
    %cst_226 = arith.constant 9.99999996E-13 : f32
    %495 = vector.broadcast %cst_226 : f32 to vector<17x1xf32>
    %496 = arith.addf %492, %495 : vector<17x1xf32>
    %497 = math.rsqrt %496 : vector<17x1xf32>
    %498 = vector.broadcast %497 : vector<17x1xf32> to vector<17x32xf32>
    %499 = arith.mulf %494, %498 : vector<17x32xf32>
    %500 = vector.broadcast %480 : vector<1x32xf32> to vector<17x32xf32>
    %501 = arith.mulf %499, %500 : vector<17x32xf32>
    %502 = vector.broadcast %481 : vector<1x32xf32> to vector<17x32xf32>
    %503 = arith.addf %501, %502 : vector<17x32xf32>
    %504 = vector.extract_strided_slice %503 {offsets = [0, 0], sizes = [1, 32], strides = [1, 1]} : vector<17x32xf32> to vector<1x32xf32>
    %c0_227 = arith.constant 0 : index
    %c0_228 = arith.constant 0 : index
    %505 = vector.load %arg20[%c0_227, %c0_228] : memref<32x32xf32, #tpu.memory_space<vmem>>, vector<32x32xf32>
    %cst_229 = arith.constant dense<0.000000e+00> : vector<1x32xf32>
    %506 = tpu.matmul %504, %505, %cst_229 {dimension_numbers = #tpu.dot_dimension_numbers<[1], [0], [0], [1], [0, 0, 1, 1], [], []>} : vector<1x32xf32>, vector<32x32xf32>, vector<1x32xf32> -> vector<1x32xf32>
    %c0_230 = arith.constant 0 : index
    %c0_231 = arith.constant 0 : index
    %507 = vector.load %arg21[%c0_230, %c0_231] : memref<1x32xf32, #tpu.memory_space<vmem>>, vector<1x32xf32>
    %508 = arith.addf %506, %507 : vector<1x32xf32>
    %509 = math.tanh %508 : vector<1x32xf32>
    %c0_232 = arith.constant 0 : index
    %c0_233 = arith.constant 0 : index
    %510 = vector.load %arg22[%c0_232, %c0_233] : memref<32x5xf32, #tpu.memory_space<vmem>>, vector<32x5xf32>
    %cst_234 = arith.constant dense<0.000000e+00> : vector<1x5xf32>
    %511 = tpu.matmul %509, %510, %cst_234 {dimension_numbers = #tpu.dot_dimension_numbers<[1], [0], [0], [1], [0, 0, 1, 1], [], []>} : vector<1x32xf32>, vector<32x5xf32>, vector<1x5xf32> -> vector<1x5xf32>
    %c0_235 = arith.constant 0 : index
    %c0_236 = arith.constant 0 : index
    %512 = vector.load %arg23[%c0_235, %c0_236] : memref<1x5xf32, #tpu.memory_space<vmem>>, vector<1x5xf32>
    %513 = arith.addf %511, %512 : vector<1x5xf32>
    %c0_237 = arith.constant 0 : index
    %c0_238 = arith.constant 0 : index
    %c0_239 = arith.constant 0 : index
    %514 = vector.load %arg24[%c0_237, %c0_238, %c0_239] : memref<1x1x5xf32, #tpu.memory_space<vmem>>, vector<1x1x5xf32>
    %515 = vector.shape_cast %514 : vector<1x1x5xf32> to vector<1x5xf32>
    %516 = vector.shape_cast %513 : vector<1x5xf32> to vector<1x1x5xf32>
    tpu.vector_store %arg24[%c0_237, %c0_238, %c0_239], %516 {strides = array<i32>} : memref<1x1x5xf32, #tpu.memory_space<vmem>>, vector<1x1x5xf32>,
    return
  }
  func.func @transform_0(%arg0: i32) -> (i32, i32, i32) {
    %c0_i32 = arith.constant 0 : i32
    %c0_i32_0 = arith.constant 0 : i32
    %c0_i32_1 = arith.constant 0 : i32
    return %arg0, %c0_i32, %c0_i32_0 : i32, i32, i32
  }
  func.func @transform_1(%arg0: i32) -> (i32, i32) {
    %c0_i32 = arith.constant 0 : i32
    %c0_i32_0 = arith.constant 0 : i32
    %c0_i32_1 = arith.constant 0 : i32
    return %c0_i32, %c0_i32_0 : i32, i32
  }
  func.func @transform_2(%arg0: i32) -> (i32, i32) {
    %c0_i32 = arith.constant 0 : i32
    %c0_i32_0 = arith.constant 0 : i32
    %c0_i32_1 = arith.constant 0 : i32
    return %c0_i32, %c0_i32_0 : i32, i32
  }
  func.func @transform_3(%arg0: i32) -> (i32, i32) {
    %c0_i32 = arith.constant 0 : i32
    %c0_i32_0 = arith.constant 0 : i32
    %c0_i32_1 = arith.constant 0 : i32
    return %c0_i32, %c0_i32_0 : i32, i32
  }
  func.func @transform_4(%arg0: i32) -> (i32, i32) {
    %c0_i32 = arith.constant 0 : i32
    %c0_i32_0 = arith.constant 0 : i32
    %c0_i32_1 = arith.constant 0 : i32
    return %c0_i32, %c0_i32_0 : i32, i32
  }
  func.func @transform_5(%arg0: i32) -> (i32, i32, i32) {
    %c0_i32 = arith.constant 0 : i32
    %c0_i32_0 = arith.constant 0 : i32
    %c0_i32_1 = arith.constant 0 : i32
    %c0_i32_2 = arith.constant 0 : i32
    return %c0_i32, %c0_i32_0, %c0_i32_1 : i32, i32, i32
  }
  func.func @transform_6(%arg0: i32) -> (i32, i32, i32) {
    %c0_i32 = arith.constant 0 : i32
    %c0_i32_0 = arith.constant 0 : i32
    %c0_i32_1 = arith.constant 0 : i32
    %c0_i32_2 = arith.constant 0 : i32
    return %c0_i32, %c0_i32_0, %c0_i32_1 : i32, i32, i32
  }
  func.func @transform_7(%arg0: i32) -> (i32, i32, i32) {
    %c0_i32 = arith.constant 0 : i32
    %c0_i32_0 = arith.constant 0 : i32
    %c0_i32_1 = arith.constant 0 : i32
    %c0_i32_2 = arith.constant 0 : i32
    return %c0_i32, %c0_i32_0, %c0_i32_1 : i32, i32, i32
  }
  func.func @transform_8(%arg0: i32) -> (i32, i32, i32) {
    %c0_i32 = arith.constant 0 : i32
    %c0_i32_0 = arith.constant 0 : i32
    %c0_i32_1 = arith.constant 0 : i32
    %c0_i32_2 = arith.constant 0 : i32
    return %c0_i32, %c0_i32_0, %c0_i32_1 : i32, i32, i32
  }
  func.func @transform_9(%arg0: i32) -> (i32, i32, i32) {
    %c0_i32 = arith.constant 0 : i32
    %c0_i32_0 = arith.constant 0 : i32
    %c0_i32_1 = arith.constant 0 : i32
    %c0_i32_2 = arith.constant 0 : i32
    return %c0_i32, %c0_i32_0, %c0_i32_1 : i32, i32, i32
  }
  func.func @transform_10(%arg0: i32) -> (i32, i32, i32) {
    %c0_i32 = arith.constant 0 : i32
    %c0_i32_0 = arith.constant 0 : i32
    %c0_i32_1 = arith.constant 0 : i32
    %c0_i32_2 = arith.constant 0 : i32
    return %c0_i32, %c0_i32_0, %c0_i32_1 : i32, i32, i32
  }
  func.func @transform_11(%arg0: i32) -> (i32, i32, i32) {
    %c0_i32 = arith.constant 0 : i32
    %c0_i32_0 = arith.constant 0 : i32
    %c0_i32_1 = arith.constant 0 : i32
    %c0_i32_2 = arith.constant 0 : i32
    return %c0_i32, %c0_i32_0, %c0_i32_1 : i32, i32, i32
  }
  func.func @transform_12(%arg0: i32) -> (i32, i32, i32) {
    %c0_i32 = arith.constant 0 : i32
    %c0_i32_0 = arith.constant 0 : i32
    %c0_i32_1 = arith.constant 0 : i32
    %c0_i32_2 = arith.constant 0 : i32
    return %c0_i32, %c0_i32_0, %c0_i32_1 : i32, i32, i32
  }
  func.func @transform_13(%arg0: i32) -> (i32, i32, i32) {
    %c0_i32 = arith.constant 0 : i32
    %c0_i32_0 = arith.constant 0 : i32
    %c0_i32_1 = arith.constant 0 : i32
    %c0_i32_2 = arith.constant 0 : i32
    return %c0_i32, %c0_i32_0, %c0_i32_1 : i32, i32, i32
  }
  func.func @transform_14(%arg0: i32) -> (i32, i32, i32) {
    %c0_i32 = arith.constant 0 : i32
    %c0_i32_0 = arith.constant 0 : i32
    %c0_i32_1 = arith.constant 0 : i32
    %c0_i32_2 = arith.constant 0 : i32
    return %c0_i32, %c0_i32_0, %c0_i32_1 : i32, i32, i32
  }
  func.func @transform_15(%arg0: i32) -> (i32, i32, i32) {
    %c0_i32 = arith.constant 0 : i32
    %c0_i32_0 = arith.constant 0 : i32
    %c0_i32_1 = arith.constant 0 : i32
    %c0_i32_2 = arith.constant 0 : i32
    return %c0_i32, %c0_i32_0, %c0_i32_1 : i32, i32, i32
  }
  func.func @transform_16(%arg0: i32) -> (i32, i32, i32) {
    %c0_i32 = arith.constant 0 : i32
    %c0_i32_0 = arith.constant 0 : i32
    %c0_i32_1 = arith.constant 0 : i32
    %c0_i32_2 = arith.constant 0 : i32
    return %c0_i32, %c0_i32_0, %c0_i32_1 : i32, i32, i32
  }
  func.func @transform_17(%arg0: i32) -> (i32, i32) {
    %c0_i32 = arith.constant 0 : i32
    %c0_i32_0 = arith.constant 0 : i32
    %c0_i32_1 = arith.constant 0 : i32
    return %c0_i32, %c0_i32_0 : i32, i32
  }
  func.func @transform_18(%arg0: i32) -> (i32, i32) {
    %c0_i32 = arith.constant 0 : i32
    %c0_i32_0 = arith.constant 0 : i32
    %c0_i32_1 = arith.constant 0 : i32
    return %c0_i32, %c0_i32_0 : i32, i32
  }
  func.func @transform_19(%arg0: i32) -> (i32, i32) {
    %c0_i32 = arith.constant 0 : i32
    %c0_i32_0 = arith.constant 0 : i32
    %c0_i32_1 = arith.constant 0 : i32
    return %c0_i32, %c0_i32_0 : i32, i32
  }
  func.func @transform_20(%arg0: i32) -> (i32, i32) {
    %c0_i32 = arith.constant 0 : i32
    %c0_i32_0 = arith.constant 0 : i32
    %c0_i32_1 = arith.constant 0 : i32
    return %c0_i32, %c0_i32_0 : i32, i32
  }
  func.func @transform_21(%arg0: i32) -> (i32, i32) {
    %c0_i32 = arith.constant 0 : i32
    %c0_i32_0 = arith.constant 0 : i32
    %c0_i32_1 = arith.constant 0 : i32
    return %c0_i32, %c0_i32_0 : i32, i32
  }
  func.func @transform_22(%arg0: i32) -> (i32, i32) {
    %c0_i32 = arith.constant 0 : i32
    %c0_i32_0 = arith.constant 0 : i32
    %c0_i32_1 = arith.constant 0 : i32
    return %c0_i32, %c0_i32_0 : i32, i32
  }
  func.func @transform_23(%arg0: i32) -> (i32, i32, i32) {
    %c0_i32 = arith.constant 0 : i32
    %c0_i32_0 = arith.constant 0 : i32
    %c0_i32_1 = arith.constant 0 : i32
    return %arg0, %c0_i32, %c0_i32_0 : i32, i32, i32
  }
}

</mosaic_0001>

<bundles_post_ra>
// kernel: vit_forward.1
= control target key start
LH: loop header
LB: loop body
LE: loop exit
PB: predicated region body
PF: predicated region fallthrough
CT: control target
= control target key end

     0   :  { %s6964_s0 = inlined_call_operand.vmem [shape: f32[2,16,48], index: 0, kind: input, shape index: {}]   ;;  %s6965_s1 = inlined_call_operand.vmem [shape: f32[48,32], index: 1, kind: input, shape index: {}]   ;;  %s6966_s2 = inlined_call_operand.vmem [shape: f32[1,32], index: 2, kind: input, shape index: {}]   ;;  %s6967_s3 = inlined_call_operand.vmem [shape: f32[1,32], index: 3, kind: input, shape index: {}]   ;;  %s6968_s4 = inlined_call_operand.vmem [shape: f32[17,32], index: 4, kind: input, shape index: {}]   ;;  %s6969_s5 = inlined_call_operand.vmem [shape: f32[2,1,32], index: 5, kind: input, shape index: {}]   ;;  %s6970_s6 = inlined_call_operand.vmem [shape: f32[2,1,32], index: 6, kind: input, shape index: {}]   ;;  %s6971_s7 = inlined_call_operand.vmem [shape: f32[2,32,96], index: 7, kind: input, shape index: {}]   ;;  %s6972_s8 = inlined_call_operand.vmem [shape: f32[2,1,96], index: 8, kind: input, shape index: {}]   ;;  %s6973_s9 = inlined_call_operand.vmem [shape: f32[2,32,32], index: 9, kind: input, shape index: {}]   ;;  %s6974_s10 = inlined_call_operand.vmem [shape: f32[2,1,32], index: 10, kind: input, shape index: {}]   ;;  %s6975_s11 = inlined_call_operand.vmem [shape: f32[2,1,32], index: 11, kind: input, shape index: {}]   ;;  %s6976_s12 = inlined_call_operand.vmem [shape: f32[2,1,32], index: 12, kind: input, shape index: {}]   ;;  %s6977_s13 = inlined_call_operand.vmem [shape: f32[2,32,128], index: 13, kind: input, shape index: {}]   ;;  %s6978_s14 = inlined_call_operand.vmem [shape: f32[2,1,128], index: 14, kind: input, shape index: {}]   ;;  %s6979_s15 = inlined_call_operand.vmem [shape: f32[2,128,32], index: 15, kind: input, shape index: {}]   ;;  %s6980_s16 = inlined_call_operand.vmem [shape: f32[2,1,32], index: 16, kind: input, shape index: {}]   ;;  %s6981_s17 = inlined_call_operand.vmem [shape: f32[1,32], index: 17, kind: input, shape index: {}]   ;;  %s6982_s18 = inlined_call_operand.vmem [shape: f32[1,32], index: 18, kind: input, shape index: {}]   ;;  %s6983_s19 = inlined_call_operand.vmem [shape: f32[32,32], index: 19, kind: input, shape index: {}]   ;;  %s6984_s20 = inlined_call_operand.vmem [shape: f32[1,32], index: 20, kind: input, shape index: {}]   ;;  %s6985_s21 = inlined_call_operand.vmem [shape: f32[32,5], index: 21, kind: input, shape index: {}]   ;;  %s6986_s22 = inlined_call_operand.vmem [shape: f32[1,5], index: 22, kind: input, shape index: {}]   ;;  %s6987_s23 = inlined_call_operand.hbm [shape: f32[2,1,5], index: 23, kind: output, shape index: {}]  }
   0x1   :  { %7005 = sst [smem:[#allocation12_spill]] %s6964_s0 }
   0x2   :  { %7006 = sst [smem:[#allocation13_spill]] %s6965_s1 }
   0x3   :  { %7007 = sst [smem:[#allocation14_spill]] %s6966_s2 }
   0x4   :  { %7008 = sst [smem:[#allocation15_spill]] %s6967_s3 }
   0x5   :  { %7009 = sst [smem:[#allocation16_spill]] %s6968_s4 }
   0x6   :  { %7010 = sst [smem:[#allocation17_spill]] %s6969_s5 }
   0x7   :  { %7011 = sst [smem:[#allocation18_spill]] %s6970_s6 }
   0x8   :  { %7012 = sst [smem:[#allocation19_spill]] %s6971_s7 }
   0x9   :  { %28 = vsyncpa [#allocation4], 0 }
   0xa   :  { %30 = vsyncpa [#allocation4 + $0x1], 0  ;;  %s5714_s4 = smov 0   ;;  %s5716_s30 = smov 0  }
   0xb   :  { %s5718_s24 = smov 0   ;;  %s5720_s25 = smov 0  }
   0xc LB: > { %7013 = sst [smem:[#allocation6_spill]] %s5574_s4  ;;  %s5735_s5 = sadd.s32 4294967295, %s5586_s25   ;;  %s5586_s25 = sphi %s5720_s25, %s7035_s25   ;;  %s5582_s24 = sphi %s5718_s24, %s7037_s24   ;;  %s5578_s30 = sphi %s5716_s30, %s7039_s30   ;;  %s5574_s4 = sphi %s5714_s4, %s7038_s4  }
   0xd   : > { %7014 = sst [smem:[#allocation7_spill]] %s5582_s24  ;;  %s4248_s1 = sadd.s32 4294967294, %s5586_s25  }
   0xe   : > { %7015 = sst [smem:[#allocation8_spill]] %s5586_s25  ;;  %s5739_s26 = sadd.s32 1, %s5586_s25  }
   0xf   : > { %7016 = sst [smem:[#allocation9_spill]] %s5739_s26  ;;  %s531_s2 = sadd.s32 1, %s5582_s24 }
  0x10   : > { %s528_s6 = ssub.s32 %s5586_s25, %s5739_s26  ;;  %p541_p0 = scmp.ne.s32.totalorder %s5582_s24, %s5578_s30 }
  0x11   : > { %p529_p1 = scmp.eq.s32.totalorder %s528_s6, 0  ;;  %p542_p2 = scmp.eq.s32.totalorder %s5735_s5, 1 }
  0x12   : > { %p547_p3 = scmp.ne.s32.totalorder %s5578_s30, %s5574_s4  ;;  %p548_p4 = scmp.eq.s32.totalorder %s4248_s1, 1 }
  0x13   : > { %s5750_s27 = scalar_select %p529_p1, %s5582_s24, %s531_s2  }
  0x14   : > { %p5752_p5 = por %p542_p2, %p541_p0  ;;  %p5756_p6 = por %p548_p4, %p547_p3 }
  0x15   : > { %7017 = sst [smem:[#allocation10_spill]] %s5750_s27  ;;  %p4251_p7 = scmp.ge.s32.totalorder %s5586_s25, 1 }
  0x16   : > { %s7019_s28 = scalar_select %p5756_p6, 1, 0 }
  0x17   : > { %p640_p8 = scmp.lt.s32.totalorder %s5586_s25, 3 }
  0x18   : > { %7020 = sst [smem:[#allocation11_spill]] %s7019_s28 }
  0x19   : > { %p641_p9 = pnand %p4251_p7, %p640_p8 }
  0x1a   : > { %s7021_s0 = sld [smem:[#allocation13_spill]] (!%p641_p9)  ;;  %p703_p10 = scmp.lt.s32.totalorder (!%p641_p9), %s5735_s5, 1  ;;  %vm727_vm0 = vcmask (!%p641_p9), 392192   ;;  %vm812_vm1 = vcmask (!%p641_p9), 253952   ;;  %vm818_vm2 = vcmask (!%p641_p9), 261120   ;;  %v5588_v51 = vmov (!%p641_p9), 0.0|0.0  }
  0x1b   : > { %644 = sbr.rel (%p641_p9) target bundleno = 6030 (0x178e), region = 112  ;;  %s7022_s25 = sld [smem:[#allocation12_spill]] (!%p641_p9)  ;;  %5090 = vmatprep.subr.bf16.mxu1 (!%p641_p9), %v5588_v51  ;;  %vm5589_vm3 = vmmov (!%p641_p9), 0   ;;  %v5590_v55 = vmov (!%p641_p9), 0.0   ;;  %vm5890_vm14 = vmpackc.low (!%p641_p9), %vm818_vm2, %vm818_vm2  ;;  %vm1301_vm15 = vcmask (!%p641_p9), 1040384  }
  0x1c   : > { %s7023_s28 = sld [smem:[#allocation15_spill]] (!%p641_p9)  ;;  %s7025_s2 = sld [smem:[#allocation14_spill]] (!%p641_p9)  ;;  %4649 = vmatprep.mubr.msk.f32.mxu1 (!%p641_p9), %vm5589_vm3, %v5590_v55 }
  0x1d   : > { %s7026_s3 = sld [smem:[#allocation19_spill]] (!%p641_p9)  ;;  %s7027_s29 = sld [smem:[#allocation17_spill]] (!%p641_p9) }
  0x1e   : > { %s6999_s4 = smov (!%p641_p9), 96   ;;  %s5592_s26 = smov (!%p641_p9), 64  }
  0x20   : > { %v714_v0 = vld [vmem:[%s7021_s0] sm:$0xff] (!%p641_p9)  ;;  %v715_v1 = vld [vmem:[%s7021_s0 + $0x8] sm:$0xff] (!%p641_p9)  ;;  %v716_v2 = vld [vmem:[%s7021_s0 + $0x10] sm:$0xff] (!%p641_p9) }
  0x21   : > { %v5072_v3 = vpack.c.bf16 (!%p641_p9), %v715_v1, %v714_v0  ;;  %v717_v4 = vld [vmem:[%s7021_s0 + $0x18] sm:$0xff] (!%p641_p9)  ;;  %v718_v6 = vld [vmem:[%s7021_s0 + $0x20] sm:$0xff] (!%p641_p9)  ;;  %v719_v7 = vld [vmem:[%s7021_s0 + $0x28] sm:$0xff] (!%p641_p9)  ;;  %s7031_s0 = smov (!%p641_p9), 96  }
  0x22   : > { %v5076_v5 = vpack.c.bf16 %v717_v4, %v716_v2  ;;  %s704_s1 = scalar_select %p703_p10, %s5735_s5, 1  ;;  %v5080_v8 = vpack.c.bf16 %v719_v7, %v718_v6  ;;  %v809_v15 = vld [vmem:[%s7023_s28] sm:$0x1] }
  0x23   : > { %5073 = vmatprep.subr.bf16.mxu0 %v5072_v3  ;;  %v4256_v18 = vld [vmem:[%s7025_s2] ss:$0 sm:$0xff]  ;;  %v887_v49 = vld [vmem:[%s7026_s3 + $0x8] sm:$0xff]  ;;  %v888_v52 = vld [vmem:[%s7026_s3 + $0x10] sm:$0xff]  ;;  %s7028_s2 = sld [smem:[#allocation18_spill]] }
  0x24   : > { %5075 = vmatpush3.bf16.msra.mxu0 %v5072_v3  ;;  %s4416_s27 = sshll.u32 %s704_s1, 4  ;;  %s7024_s1 = sld [smem:[#allocation16_spill]]  ;;  %v886_v48 = vld [vmem:[%s7026_s3] sm:$0xff]  ;;  %v889_v53 = vld [vmem:[%s7026_s3 + $0x18] sm:$0xff] }
  0x25   : > { %5077 = vmatprep.subr.bf16.mxu0 %v5076_v5  ;;  %s707_s24 = scalar_lea.vmem %s7022_s25, %s4416_s27  ;;  %v5085_v50 = vpack.c.bf16 %v887_v49, %v886_v48  ;;  %v5088_v54 = vpack.c.bf16 %v889_v53, %v888_v52  ;;  %v4259_v2 = vld [vmem:[%s7027_s29] ss:$0 sm:$0xff] }
  0x26   : > { %v708_v9 = vld [vmem:[%s707_s24] sm:$0xff]  ;;  %v709_v10 = vld [vmem:[%s707_s24 + $0x8] sm:$0xff] }
  0x27   : > { %v710_v11 = vmul.f32 2.0, %v708_v9  ;;  %v711_v12 = vmul.f32 2.0, %v709_v10 }
  0x28   : > { %5079 = vmatpush3.bf16.msra.mxu0 %v5076_v5 }
  0x29   : > { %5081 = vmatprep.subr.bf16.mxu0 %v5080_v8  ;;  %v4254_v13 = vadd.f32 -1.0, %v710_v11  ;;  %v4255_v14 = vadd.f32 -1.0, %v711_v12  ;;  %v4260_v4 = vld [vmem:[%s7028_s2] ss:$0 sm:$0xff] }
  0x2a   : > { %v810_v16 = vld [vmem:[%s7024_s1] sm:$0x1]  ;;  %v815_v20 = vld [vmem:[%s7024_s1 + $0x9] sm:$0xff]  ;;  %v814_v23 = vld [vmem:[%s7024_s1 + $0x1] sm:$0xff] }
  0x2b   : > { %4623 = vmatprep.mubr.msk.f32.mxu0 %vm727_vm0, %v4254_v13  ;;  %v811_v17 = vadd.f32 %v810_v16, %v809_v15  ;;  %v824_v15 = vlaneseq }
  0x2c   : > { %5083 = vmatpush3.bf16.msra.mxu0 %v5080_v8 }
  0x2d   : > { %813 = vst.msk [vmem:[#allocation2] sm:$0x1] %vm812_vm1, %v811_v17  ;;  %5084 = vmatprep.subr.bf16.mxu0 %v5588_v51  ;;  %v825_v16 = vand.u32 127, %v824_v15 }
  0x2f   : > { %4624 = vmatmul.mubr.msk.f32.vlgmr.msra.gmra.mrb[0].mxu0 %vm727_vm0, %v4255_v14  ;;  %vm1486_vm4 = vcmp.ge.s32.totalorder %v825_v16, 16  ;;  %vm1487_vm5 = vcmp.lt.s32.totalorder %v825_v16, 24  ;;  %vm1730_vm6 = vcmp.ge.s32.totalorder %v825_v16, 24  ;;  %vm1731_vm7 = vcmp.lt.s32.totalorder %v825_v16, 32 }
  0x30   : > { %5086 = vmatpush3.bf16.msra.mxu0 %v5085_v50  ;;  %4634 = vmatprep.mubr.msk.f32.mxu0 %vm5589_vm3, %v5590_v55  ;;  %vm1488_vm8 = vmand %vm1486_vm4, %vm1487_vm5  ;;  %vm1142_vm9 = vcmp.ge.s32.totalorder %v825_v16, 8  ;;  %vm1143_vm10 = vcmp.lt.s32.totalorder %v825_v16, 16  ;;  %vm987_vm12 = vcmp.lt.s32.totalorder %v825_v16, 8  ;;  %vm1100_vm0 = vcmask 138240  }
  0x31   : > { %5087 = vmatprep.subr.bf16.mxu0 %v5588_v51  ;;  %vm1732_vm11 = vmand %vm1730_vm6, %vm1731_vm7  ;;  %vm1107_vm4 = vcmask 131072  }
  0x32   : > { %vm1144_vm13 = vmand %vm1142_vm9, %vm1143_vm10 }
  0x34   : > { %5089 = vmatpush3.bf16.msra.mxu0 %v5088_v54 }
  0x35   : > { %5094 = vmatprep.subr.bf16.mxu0 %v5588_v51 }
 0x102   : > { %v4625_v19 = vpop.f32.mrb[0].mxu0 }
 0x103   : > { %v806_v21 = vadd.f32 %v4625_v19, %v4256_v18  ;;  %v800_v22 = vpop.f32.mrb[1].mxu0  ;;  %v4261_v19 = vld [vmem:[%s6972_s8] ss:$0 sm:$0xff] }
 0x104   : > { %v801_v24 = vadd.f32 %v4256_v18, %v800_v22 }
 0x105   : > { %v817_v25 = vadd.f32 %v815_v20, %v806_v21 }
 0x106   : > { %v816_v26 = vadd.f32 %v814_v23, %v801_v24 }
 0x107   : > { %820 = vst.msk [vmem:[#allocation2 + $0x9] sm:$0xff] %vm818_vm2, %v817_v25 }
 0x108   : > { %819 = vst.msk [vmem:[#allocation2 + $0x1] sm:$0xff] %vm818_vm2, %v816_v26  ;;  %v5866_v26 = vsel %vm1488_vm8, 1.0, %v5590_v55 }
 0x10e   : > { %v5803_v27 = vld [vmem:[#allocation2 + $0x10] sm:$0x1] }
 0x10f   : > { %v834_v28 = vsel %vm812_vm1, %v5803_v27, 0.0  ;;  %v5807_v29 = vld [vmem:[#allocation2] sm:$0xff]  ;;  %v5811_v31 = vld [vmem:[#allocation2 + $0x8] sm:$0xff] }
 0x110   : > { %835 = vadd.xlane.f32.xlu1 %v834_v28  ;;  %v828_v30 = vsel %vm818_vm2, %v5807_v29, 0.0  ;;  %v831_v32 = vsel %vm818_vm2, %v5811_v31, 0.0  ;;  %v5869_v28 = vsel %vm1732_vm11, 1.0, %v5590_v55 }
 0x111   : > { %829 = vadd.xlane.f32.xlu0 %v828_v30 }
 0x115   : > { %832 = vadd.xlane.f32.xlu0 %v831_v32 }
 0x19d   : > { %v836_v33 = vpop.xlane.xlu1 %835 }
 0x19e   : > { %v840_v34 = vmul.f32 0.03125, %v836_v33  ;;  %v830_v35 = vpop.xlane.xlu0 %829  ;;  %v5326_v33 = vpack.i.bf16 %v5869_v28, %v5866_v26 }
 0x19f   : > { %v838_v36 = vmul.f32 0.03125, %v830_v35  ;;  %v5880_v35 = vsel %vm1144_vm13, 1.0, %v5590_v55 }
 0x1a0   : > { %v843_v37 = vsub.f32 %v5803_v27, %v840_v34  ;;  %v5877_v34 = vsel %vm987_vm12, 1.0, %v5590_v55 }
 0x1a1   : > { %v841_v38 = vsub.f32 %v5807_v29, %v838_v36  ;;  %v5321_v36 = vpack.i.bf16 %v5877_v34, %v5880_v35 }
 0x1a2   : > { %v833_v39 = vpop.xlane.xlu0 %832  ;;  %v846_v44 = vmul.f32 %v843_v37, %v843_v37 }
 0x1a3   : > { %v839_v40 = vmul.f32 0.03125, %v833_v39  ;;  %v844_v41 = vmul.f32 %v841_v38, %v841_v38 }
 0x1a4   : > { %v853_v46 = vsel %vm812_vm1, %v846_v44, 0.0 }
 0x1a5   : > { %v842_v42 = vsub.f32 %v5811_v31, %v839_v40  ;;  %v847_v43 = vsel %vm818_vm2, %v844_v41, 0.0 }
 0x1a6   : > { %848 = vadd.xlane.f32.xlu1 %v847_v43 }
 0x1a7   : > { %v845_v45 = vmul.f32 %v842_v42, %v842_v42 }
 0x1a9   : > { %v850_v47 = vsel %vm818_vm2, %v845_v45, 0.0 }
 0x1aa   : > { %854 = vadd.xlane.f32.xlu1 %v853_v46  ;;  %851 = vadd.xlane.f32.xlu0 %v850_v47 }
 0x233   : > { %v849_v56 = vpop.xlane.xlu1 %848 }
 0x234   : > { %v856_v57 = vmul.f32 0.03125, %v849_v56 }
 0x236   : > { %v859_v58 = vadd.f32 1e-12, %v856_v57 }
 0x237   : > { %v855_v59 = vpop.xlane.xlu1 %854  ;;  %v852_v60 = vpop.xlane.xlu0 %851 }
 0x238   : > { %5376 = vrsqrt.f32 %v859_v58  ;;  %v858_v61 = vmul.f32 0.03125, %v855_v59  ;;  %v857_v62 = vmul.f32 0.03125, %v852_v60 }
 0x23a   : > { %v861_v63 = vadd.f32 1e-12, %v858_v61  ;;  %v860_v0 = vadd.f32 1e-12, %v857_v62 }
 0x23c   : > { %5378 = vrsqrt.f32 %v861_v63 }
 0x23d   : > { %5380 = vrsqrt.f32 %v860_v0 }
 0x242   : > { %v5377_v1 = vpop.eup %5376 }
 0x243   : > { %v865_v3 = vmul.f32 %v5377_v1, %v841_v38 }
 0x245   : > { %v874_v5 = vmul.f32 %v4259_v2, %v865_v3 }
 0x246   : > { %v5379_v6 = vpop.eup %5378 }
 0x247   : > { %v5381_v7 = vpop.eup %5380  ;;  %v883_v8 = vadd.f32 %v4260_v4, %v874_v5  ;;  %v867_v10 = vmul.f32 %v5379_v6, %v843_v37 }
 0x248   : > { %v866_v9 = vmul.f32 %v5381_v7, %v842_v42 }
 0x249   : > { %4635 = vmatmul.mubr.msk.f32.vlgmr.msra.gmra.mrb[2].mxu0 %vm818_vm2, %v883_v8  ;;  %v876_v13 = vmul.f32 %v4259_v2, %v867_v10 }
 0x24a   : > { %4637 = vmatprep.mubr.msk.f32.mxu0 %vm5589_vm3, %v5590_v55  ;;  %v875_v11 = vmul.f32 %v4259_v2, %v866_v9 }
 0x24b   : > { %v885_v14 = vadd.f32 %v4260_v4, %v876_v13 }
 0x24c   : > { %v884_v12 = vadd.f32 %v4260_v4, %v875_v11 }
 0x24e   : > { %4638 = vmatmul.mubr.msk.f32.gmra.mrb[4].mxu0 %vm818_vm2, %v884_v12 }
 0x24f   : > { %4640 = vmatprep.mubr.msk.f32.mxu0 %vm5589_vm3, %v5590_v55 }
 0x252   : > { %4641 = vmatmul.mubr.msk.f32.gmra.mrb[6].mxu0 %vm818_vm2, %v885_v14 }
 0x253   : > { %4664 = vmatprep.mubr.msk.f32.mxu0 %vm5589_vm3, %v5590_v55 }
 0x31c   : > { %v972_v17 = vpop.f32.mrb[2].mxu0 }
 0x31d   : > { %v4636_v18 = vpop.f32.mrb[3].mxu0  ;;  %v5859_v21 = vadd.f32 %v4261_v19, %v972_v17 }
 0x31f   : > { %v990_v49 = vmul.f32 %v5877_v34, %v5859_v21  ;;  %v1146_v50 = vmul.f32 %v5880_v35, %v5859_v21  ;;  %v1490_v57 = vmul.f32 %v5866_v26, %v5859_v21  ;;  %v1734_v60 = vmul.f32 %v5869_v28, %v5859_v21 }
 0x321   : > { %v977_v20 = vpop.f32.mrb[4].mxu0 }
 0x322   : > { %v5861_v22 = vadd.f32 %v4261_v19, %v977_v20  ;;  %v4639_v23 = vpop.f32.mrb[5].mxu0 }
 0x324   : > { %v5316_v24 = vpack.i.bf16 %v5861_v22, %v5859_v21  ;;  %v991_v52 = vmul.f32 %v5877_v34, %v5861_v22  ;;  %v1147_v53 = vmul.f32 %v5880_v35, %v5861_v22  ;;  %v1491_v58 = vmul.f32 %v5866_v26, %v5861_v22 }
 0x325   : > { %v982_v25 = vpop.f32.mrb[6].mxu0  ;;  %v1735_v61 = vmul.f32 %v5869_v28, %v5861_v22 }
 0x326   : > { %v5871_v30 = vadd.f32 %v4261_v19, %v982_v25  ;;  %5317 = vrot.lane.b32.xlu0 %v5316_v24, %s6999_s4  ;;  %v4642_v32 = vpop.f32.mrb[7].mxu0 }
 0x328   : > { %1000 = vrot.lane.b32.xlu1 %v5871_v30, %s6999_s4  ;;  %v992_v54 = vmul.f32 %v5877_v34, %v5871_v30  ;;  %v1148_v56 = vmul.f32 %v5880_v35, %v5871_v30  ;;  %v1492_v59 = vmul.f32 %v5866_v26, %v5871_v30  ;;  %v1736_v62 = vmul.f32 %v5869_v28, %v5871_v30  ;;  %s4413_s4 = sshll.u32 %s5735_s5, 4  ;;  %s5593_s5 = smov [#allocation3]  }
 0x329   : > { %s6922_s24 = scalar_lea.hbm %s6987_s23, %s4413_s4 }
 0x32a   : > { %5327 = vrot.lane.b32.xlu0 %v5326_v33, %s5592_s26 }
 0x32c   : > { %5322 = vrot.lane.b32.xlu1 %v5321_v36, %s5592_s26 }
 0x398   : > { %v5318_v37 = vpop.permute.xlu0 %5317 }
 0x399   : > { %v5320_v38 = vunpack.i.h.bf16 %v5318_v37  ;;  %v5319_v39 = vunpack.i.l.bf16 %v5318_v37 }
 0x39a   : > { %v1001_v40 = vpop.permute.xlu1 %1000 }
 0x39b   : > { %v5091_v42 = vpack.c.bf16 %v5320_v38, %v5319_v39 }
 0x39c   : > { %v5987_v63 = vpop.permute.xlu0 %5327 }
 0x39d   : > { %5093 = vmatpush3.bf16.xpose.msk.msra.mxu1 %vm5890_vm14, %v5091_v42  ;;  %5097 = vmatpush3.bf16.xpose.msk.msra.mxu0 %vm5890_vm14, %v5091_v42 }
 0x39e   : > { %v5898_v43 = vpop.permute.xlu1 %5322  ;;  %4647 = vmatprep.subr.mxu1 %v5590_v55  ;;  %4662 = vmatprep.subr.mxu0 %v5590_v55 }
 0x39f   : > { %v5903_v44 = vunpack.i.l.bf16 %v5898_v43 }
 0x3a1   : > { %v1280_v45 = vmul.f32 %v5903_v44, %v5871_v30  ;;  %v1278_v46 = vmul.f32 %v5903_v44, %v5859_v21  ;;  %v1279_v47 = vmul.f32 %v5903_v44, %v5861_v22 }
 0x3a3   : > { %1288 = vrot.lane.b32.xlu1 %v1280_v45, %s5592_s26  ;;  %v5331_v48 = vpack.i.bf16 %v1279_v47, %v1278_v46 }
 0x3a5   : > { %4648 = vmatpush3.xpose.msk.msra.mxu1 %vm818_vm2, %v1001_v40  ;;  %4663 = vmatpush3.xpose.msk.msra.mxu0 %vm818_vm2, %v1001_v40 }
 0x3a6   : > { %5332 = vrot.lane.b32.xlu0 %v5331_v48, %s5592_s26  ;;  %5104 = vmatprep.subr.bf16.mxu0 %v5588_v51 }
 0x3a7   : > { %5098 = vmatprep.subr.bf16.mxu1 %v5588_v51 }
 0x3a8   : > { %4650 = vmatmul.mubr.msk.f32.vlgmr.msra.gmra.mrb[0].mxu1 %vm818_vm2, %v990_v49  ;;  %4665 = vmatmul.mubr.msk.f32.vlgmr.msra.gmra.mrb[8].mxu0 %vm818_vm2, %v1146_v50 }
 0x3a9   : > { %5107 = vmatpush3.bf16.xpose.msk.msra.mxu0 %vm5890_vm14, %v5091_v42  ;;  %4652 = vmatprep.mubr.msk.f32.mxu1 %vm5589_vm3, %v5590_v55 }
 0x3aa   : > { %4667 = vmatprep.mubr.msk.f32.mxu0 %vm5589_vm3, %v5590_v55  ;;  %4707 = vmatprep.subr.mxu0 %v5590_v55 }
 0x3ac   : > { %4653 = vmatmul.mubr.msk.f32.gmra.mrb[2].mxu1 %vm818_vm2, %v991_v52  ;;  %4668 = vmatmul.mubr.msk.f32.gmra.mrb[10].mxu0 %vm818_vm2, %v1147_v53 }
 0x3ad   : > { %4655 = vmatprep.mubr.msk.f32.mxu1 %vm5589_vm3, %v5590_v55  ;;  %4670 = vmatprep.mubr.msk.f32.mxu0 %vm5589_vm3, %v5590_v55 }
 0x3b0   : > { %4656 = vmatmul.mubr.msk.f32.gmra.mrb[4].mxu1 %vm818_vm2, %v992_v54  ;;  %4671 = vmatmul.mubr.msk.f32.gmra.mrb[12].mxu0 %vm818_vm2, %v1148_v56 }
 0x3b1   : > { %4708 = vmatpush3.xpose.msk.msra.mxu0 %vm818_vm2, %v1001_v40  ;;  %4709 = vmatprep.mubr.msk.f32.mxu0 %vm5589_vm3, %v5590_v55 }
 0x3b2   : > { %5111 = vmatprep.subr.bf16.mxu0 %v5588_v51  ;;  %4679 = vmatprep.mubr.msk.f32.mxu1 %vm5589_vm3, %v5590_v55 }
 0x3b4   : > { %4710 = vmatmul.mubr.msk.f32.vlgmr.msra.gmra.mrb[14].mxu0 %vm818_vm2, %v1490_v57 }
 0x3b5   : > { %5114 = vmatpush3.bf16.xpose.msk.msra.mxu0 %vm5890_vm14, %v5091_v42  ;;  %4712 = vmatprep.mubr.msk.f32.mxu0 %vm5589_vm3, %v5590_v55 }
 0x3b6   : > { %4737 = vmatprep.subr.mxu0 %v5590_v55 }
 0x3b8   : > { %4713 = vmatmul.mubr.msk.f32.gmra.mrb[16].mxu0 %vm818_vm2, %v1491_v58 }
 0x3b9   : > { %4715 = vmatprep.mubr.msk.f32.mxu0 %vm5589_vm3, %v5590_v55 }
 0x3bc   : > { %4716 = vmatmul.mubr.msk.f32.gmra.mrb[18].mxu0 %vm818_vm2, %v1492_v59 }
 0x3bd   : > { %4738 = vmatpush3.xpose.msk.msra.mxu0 %vm818_vm2, %v1001_v40  ;;  %4739 = vmatprep.mubr.msk.f32.mxu0 %vm5589_vm3, %v5590_v55 }
 0x3be   : > { %5118 = vmatprep.subr.bf16.mxu0 %v5588_v51 }
 0x3c0   : > { %4740 = vmatmul.mubr.msk.f32.vlgmr.msra.gmra.mrb[20].mxu0 %vm818_vm2, %v1734_v60 }
 0x3c1   : > { %4742 = vmatprep.mubr.msk.f32.mxu0 %vm5589_vm3, %v5590_v55 }
 0x3c4   : > { %4743 = vmatmul.mubr.msk.f32.gmra.mrb[22].mxu0 %vm818_vm2, %v1735_v61 }
 0x3c5   : > { %4745 = vmatprep.mubr.msk.f32.mxu0 %vm5589_vm3, %v5590_v55 }
 0x3c8   : > { %4746 = vmatmul.mubr.msk.f32.gmra.mrb[24].mxu0 %vm818_vm2, %v1736_v62 }
 0x3c9   : > { %4771 = vmatprep.mubr.msk.f32.mxu0 %vm5589_vm3, %v5590_v55 }
 0x415   : > { %v1289_v4 = vpop.permute.xlu1 %1288 }
 0x418   : > { %v5333_v0 = vpop.permute.xlu0 %5332 }
 0x419   : > { %v5335_v1 = vunpack.i.h.bf16 %v5333_v0  ;;  %v5334_v2 = vunpack.i.l.bf16 %v5333_v0 }
 0x41b   : > { %v5099_v3 = vpack.c.bf16 %v5335_v1, %v5334_v2  ;;  %v6033_v1 = vunpack.i.h.bf16 %v5898_v43 }
 0x41d   : > { %5100 = vmatpush3.bf16.msra.mxu1 %v5099_v3  ;;  %v1139_v2 = vmul.f32 %v6033_v1, %v5859_v21  ;;  %v1140_v3 = vmul.f32 %v6033_v1, %v5861_v22 }
 0x41e   : > { %4677 = vmatprep.subr.mxu1 %v5590_v55 }
 0x421   : > { %4678 = vmatpush3.msk.msra.mxu1 %vm1301_vm15, %v1289_v4  ;;  %v1141_v4 = vmul.f32 %v6033_v1, %v5871_v30 }
 0x422   : > { %5101 = vmatprep.subr.bf16.mxu1 %v5588_v51 }
 0x47b   : > { %v1083_v5 = vpop.f32.mrb[0].mxu1  ;;  %v1224_v6 = vpop.f32.mrb[8].mxu0 }
 0x47c   : > { %v5992_v7 = vmul.f32 0.35355338, %v1224_v6  ;;  %v4651_v8 = vpop.f32.mrb[1].mxu1  ;;  %v4666_v9 = vpop.f32.mrb[9].mxu0  ;;  %v5994_v10 = vmul.f32 0.35355338, %v1083_v5  ;;  %v5336_v5 = vpack.i.bf16 %v1140_v3, %v1139_v2 }
 0x47e   : > { %v1241_v11 = vsel %vm1100_vm0, %v5992_v7, -inf  ;;  %v1101_v18 = vsel %vm1100_vm0, %v5994_v10, -inf }
 0x47f   : > { %v1088_v12 = vpop.f32.mrb[2].mxu1  ;;  %1242 = vmax.xlane.f32.xlu1 %v1241_v11  ;;  %v1229_v13 = vpop.f32.mrb[10].mxu0 }
 0x480   : > { %v5998_v14 = vmul.f32 0.35355338, %v1229_v13  ;;  %v4654_v15 = vpop.f32.mrb[3].mxu1  ;;  %v4669_v16 = vpop.f32.mrb[11].mxu0  ;;  %v6000_v17 = vmul.f32 0.35355338, %v1088_v12 }
 0x482   : > { %v1244_v19 = vsel %vm1100_vm0, %v5998_v14, -inf  ;;  %v1104_v37 = vsel %vm1100_vm0, %v6000_v17, -inf }
 0x483   : > { %v1093_v20 = vpop.f32.mrb[4].mxu1  ;;  %1102 = vmax.xlane.f32.xlu1 %v1101_v18  ;;  %1245 = vmax.xlane.f32.xlu0 %v1244_v19  ;;  %v1234_v23 = vpop.f32.mrb[12].mxu0 }
 0x484   : > { %v6006_v24 = vmul.f32 0.35355338, %v1093_v20  ;;  %v4657_v25 = vpop.f32.mrb[5].mxu1  ;;  %v4672_v32 = vpop.f32.mrb[13].mxu0  ;;  %v6008_v33 = vmul.f32 0.35355338, %v1234_v23 }
 0x486   : > { %v1108_v36 = vsel %vm1107_vm4, %v6006_v24, -inf  ;;  %v1247_v42 = vsel %vm1107_vm4, %v6008_v33, -inf }
 0x487   : > { %1109 = vmax.xlane.f32.xlu1 %v1108_v36  ;;  %1105 = vmax.xlane.f32.xlu0 %v1104_v37  ;;  %v1568_v38 = vpop.f32.mrb[14].mxu0 }
 0x488   : > { %v4711_v39 = vpop.f32.mrb[15].mxu0  ;;  %v6014_v40 = vmul.f32 0.35355338, %v1568_v38 }
 0x48a   : > { %v1585_v48 = vsel %vm1100_vm0, %v6014_v40, -inf }
 0x48b   : > { %1248 = vmax.xlane.f32.xlu0 %v1247_v42  ;;  %v1573_v45 = vpop.f32.mrb[16].mxu0 }
 0x48c   : > { %v6018_v46 = vmul.f32 0.35355338, %v1573_v45  ;;  %v4714_v47 = vpop.f32.mrb[17].mxu0 }
 0x48e   : > { %v1588_v49 = vsel %vm1100_vm0, %v6018_v46, -inf }
 0x48f   : > { %1586 = vmax.xlane.f32.xlu0 %v1585_v48  ;;  %1589 = vmax.xlane.f32.xlu1 %v1588_v49  ;;  %v1578_v50 = vpop.f32.mrb[18].mxu0 }
 0x490   : > { %v6024_v52 = vmul.f32 0.35355338, %v1578_v50  ;;  %v4717_v53 = vpop.f32.mrb[19].mxu0 }
 0x492   : > { %v1591_v54 = vsel %vm1107_vm4, %v6024_v52, -inf }
 0x493   : > { %1592 = vmax.xlane.f32.xlu0 %v1591_v54  ;;  %v1812_v56 = vpop.f32.mrb[20].mxu0 }
 0x494   : > { %v6028_v57 = vmul.f32 0.35355338, %v1812_v56  ;;  %v4741_v58 = vpop.f32.mrb[21].mxu0 }
 0x496   : > { %v1829_v59 = vsel %vm1100_vm0, %v6028_v57, -inf }
 0x497   : > { %1830 = vmax.xlane.f32.xlu1 %v1829_v59  ;;  %v1817_v60 = vpop.f32.mrb[22].mxu0 }
 0x498   : > { %v4744_v61 = vpop.f32.mrb[23].mxu0  ;;  %v6043_v6 = vmul.f32 0.35355338, %v1817_v60  ;;  %v6081_v60 = vunpack.i.l.bf16 %v5987_v63 }
 0x49a   : > { %v1832_v43 = vsel %vm1100_vm0, %v6043_v6, -inf  ;;  %v1623_v2 = vmul.f32 %v6081_v60, %v5861_v22 }
 0x49b   : > { %v1822_v62 = vpop.f32.mrb[24].mxu0 }
 0x49c   : > { %v4747_v0 = vpop.f32.mrb[25].mxu0  ;;  %v6045_v8 = vmul.f32 0.35355338, %v1822_v62 }
 0x49d   : > { %v1622_v0 = vmul.f32 %v6081_v60, %v5859_v21 }
 0x49e   : > { %v1835_v9 = vsel %vm1107_vm4, %v6045_v8, -inf }
 0x4a8   : > { %1391 = vrot.lane.b32.xlu1 %v1141_v4, %s5592_s26  ;;  %v5341_v4 = vpack.i.bf16 %v1623_v2, %v1622_v0 }
 0x4a9   : > { %5337 = vrot.lane.b32.xlu0 %v5336_v5, %s5592_s26 }
 0x4c8   : > { %1833 = vmax.xlane.f32.xlu0 %v1832_v43 }
 0x4cc   : > { %1836 = vmax.xlane.f32.xlu0 %v1835_v9  ;;  %v1624_v9 = vmul.f32 %v6081_v60, %v5871_v30 }
 0x50c   : > { %v1243_v11 = vpop.xlane.xlu1 %1242 }
 0x50d   : > { %v1250_v12 = vsub.f32 %v5992_v7, %v1243_v11 }
 0x50f   : > { %v1253_v13 = vmul.f32 1.442695, %v1250_v12 }
 0x510   : > { %v1103_v15 = vpop.xlane.xlu1 %1102  ;;  %v1246_v16 = vpop.xlane.xlu0 %1245 }
 0x511   : > { %5382 = vpow2.f32 %v1253_v13  ;;  %v1111_v18 = vsub.f32 %v5994_v10, %v1103_v15  ;;  %v1251_v19 = vsub.f32 %v5998_v14, %v1246_v16 }
 0x513   : > { %v1114_v20 = vmul.f32 1.442695, %v1111_v18  ;;  %v1255_v23 = vmul.f32 1.442695, %v1251_v19 }
 0x514   : > { %v1110_v25 = vpop.xlane.xlu1 %1109  ;;  %v1106_v32 = vpop.xlane.xlu0 %1105 }
 0x515   : > { %5384 = vpow2.f32 %v1114_v20  ;;  %v1113_v36 = vsub.f32 %v6006_v24, %v1110_v25  ;;  %v1112_v5 = vsub.f32 %v6000_v17, %v1106_v32 }
 0x516   : > { %5386 = vpow2.f32 %v1255_v23 }
 0x517   : > { %v1118_v39 = vmul.f32 1.442695, %v1113_v36  ;;  %v1116_v11 = vmul.f32 1.442695, %v1112_v5 }
 0x518   : > { %v1249_v37 = vpop.xlane.xlu0 %1248 }
 0x519   : > { %v1252_v38 = vsub.f32 %v6008_v33, %v1249_v37 }
 0x51b   : > { %v6056_v7 = vpop.eup %5382  ;;  %v1257_v42 = vmul.f32 1.442695, %v1252_v38 }
 0x51c   : > { %v1587_v45 = vpop.xlane.xlu0 %1586  ;;  %v1590_v47 = vpop.xlane.xlu1 %1589  ;;  %v1259_v10 = vsel %vm1100_vm0, %v6056_v7, 0.0 }
 0x51d   : > { %5388 = vpow2.f32 %v1257_v42  ;;  %v1594_v14 = vsub.f32 %v6014_v40, %v1587_v45  ;;  %1260 = vadd.xlane.f32.xlu1 %v1259_v10  ;;  %v1595_v49 = vsub.f32 %v6018_v46, %v1590_v47  ;;  %v6123_v10 = vunpack.i.h.bf16 %v5987_v63  ;;  %v1975_v63 = vld [vmem:[%s6973_s9 + $0x8] sm:$0xff] }
 0x51e   : > { %5390 = vpow2.f32 %v1118_v39 }
 0x51f   : > { %v6061_v48 = vpop.eup %5384  ;;  %v1597_v24 = vmul.f32 1.442695, %v1594_v14  ;;  %v1599_v54 = vmul.f32 1.442695, %v1595_v49  ;;  %v1866_v14 = vmul.f32 %v6123_v10, %v5859_v21  ;;  %v1976_v21 = vld [vmem:[%s6973_s9 + $0x10] sm:$0xff] }
 0x520   : > { %v6064_v33 = vpop.eup %5386  ;;  %v1120_v50 = vsel %vm1100_vm0, %v6061_v48, 0.0  ;;  %v1593_v43 = vpop.xlane.xlu0 %1592 }
 0x521   : > { %1121 = vadd.xlane.f32.xlu1 %v1120_v50  ;;  %v1262_v53 = vsel %vm1100_vm0, %v6064_v33, 0.0  ;;  %5392 = vpow2.f32 %v1597_v24  ;;  %v1596_v12 = vsub.f32 %v6024_v52, %v1593_v43  ;;  %v1867_v24 = vmul.f32 %v6123_v10, %v5861_v22 }
 0x522   : > { %1263 = vadd.xlane.f32.xlu0 %v1262_v53  ;;  %5394 = vpow2.f32 %v1599_v54  ;;  %v1868_v50 = vmul.f32 %v6123_v10, %v5871_v30  ;;  %v1974_v53 = vld [vmem:[%s6973_s9] sm:$0xff]  ;;  %v1977_v54 = vld [vmem:[%s6973_s9 + $0x18] sm:$0xff] }
 0x523   : > { %5396 = vpow2.f32 %v1116_v11  ;;  %v1601_v15 = vmul.f32 1.442695, %v1596_v12  ;;  %v5346_v49 = vpack.i.bf16 %v1867_v24, %v1866_v14  ;;  %v5119_v22 = vpack.c.bf16 %v1975_v63, %v1974_v53 }
 0x524   : > { %v1831_v13 = vpop.xlane.xlu1 %1830  ;;  %v5338_v19 = vpop.permute.xlu0 %5337  ;;  %v5122_v30 = vpack.c.bf16 %v1977_v54, %v1976_v21 }
 0x525   : > { %v1838_v16 = vsub.f32 %v6028_v57, %v1831_v13  ;;  %5398 = vpow2.f32 %v1601_v15  ;;  %5120 = vmatpush3.bf16.msra.mxu0 %v5119_v22  ;;  %v5340_v2 = vunpack.i.h.bf16 %v5338_v19 }
 0x526   : > { %5121 = vmatprep.subr.bf16.mxu0 %v5588_v51 }
 0x527   : > { %v6070_v40 = vpop.eup %5388  ;;  %v1841_v18 = vmul.f32 1.442695, %v1838_v16 }
 0x528   : > { %v1265_v56 = vsel %vm1107_vm4, %v6070_v40, 0.0  ;;  %v6074_v58 = vpop.eup %5390 }
 0x529   : > { %1266 = vadd.xlane.f32.xlu1 %v1265_v56  ;;  %v1126_v46 = vsel %vm1107_vm4, %v6074_v58, 0.0  ;;  %5400 = vpow2.f32 %v1841_v18  ;;  %5123 = vmatpush3.bf16.msra.mxu0 %v5122_v30  ;;  %v1392_v56 = vpop.permute.xlu1 %1391 }
 0x52a   : > { %5124 = vmatprep.subr.bf16.mxu0 %v5588_v51 }
 0x52b   : > { %v6078_v59 = vpop.eup %5392 }
 0x52c   : > { %v1603_v61 = vsel %vm1100_vm0, %v6078_v59, 0.0  ;;  %v6085_v62 = vpop.eup %5394 }
 0x52d   : > { %1127 = vadd.xlane.f32.xlu1 %v1126_v46  ;;  %v1606_v3 = vsel %vm1100_vm0, %v6085_v62, 0.0  ;;  %v6100_v20 = vpop.eup %5396 }
 0x52e   : > { %v1123_v25 = vsel %vm1100_vm0, %v6100_v20, 0.0 }
 0x52f   : > { %v6105_v52 = vpop.eup %5398 }
 0x530   : > { %v1609_v37 = vsel %vm1107_vm4, %v6105_v52, 0.0 }
 0x531   : > { %1604 = vadd.xlane.f32.xlu1 %v1603_v61 }
 0x533   : > { %v6110_v38 = vpop.eup %5400 }
 0x535   : > { %1607 = vadd.xlane.f32.xlu1 %v1606_v3  ;;  %v5339_v3 = vunpack.i.l.bf16 %v5338_v19 }
 0x538   : > { %5342 = vrot.lane.b32.xlu0 %v5341_v4, %s5592_s26 }
 0x546   : > { %1632 = vrot.lane.b32.xlu1 %v1624_v9, %s5592_s26  ;;  %v5102_v9 = vpack.c.bf16 %v5340_v2, %v5339_v3 }
 0x555   : > { %v1834_v17 = vpop.xlane.xlu0 %1833 }
 0x556   : > { %v1839_v23 = vsub.f32 %v6043_v6, %v1834_v17  ;;  %v1847_v6 = vsel %vm1100_vm0, %v6110_v38, 0.0 }
 0x557   : > { %1124 = vadd.xlane.f32.xlu0 %v1123_v25 }
 0x558   : > { %v1843_v32 = vmul.f32 1.442695, %v1839_v23 }
 0x559   : > { %v1837_v36 = vpop.xlane.xlu0 %1836 }
 0x55a   : > { %5402 = vpow2.f32 %v1843_v32  ;;  %v1840_v57 = vsub.f32 %v6045_v8, %v1837_v36 }
 0x55b   : > { %1610 = vadd.xlane.f32.xlu0 %v1609_v37 }
 0x55c   : > { %v1845_v39 = vmul.f32 1.442695, %v1840_v57 }
 0x55e   : > { %5404 = vpow2.f32 %v1845_v39 }
 0x55f   : > { %1848 = vadd.xlane.f32.xlu0 %v1847_v6 }
 0x564   : > { %v6114_v42 = vpop.eup %5402 }
 0x565   : > { %v1850_v45 = vsel %vm1100_vm0, %v6114_v42, 0.0 }
 0x566   : > { %1851 = vadd.xlane.f32.xlu0 %v1850_v45 }
 0x568   : > { %v6118_v47 = vpop.eup %5404 }
 0x569   : > { %v1853_v8 = vsel %vm1107_vm4, %v6118_v47, 0.0 }
 0x56a   : > { %1854 = vadd.xlane.f32.xlu1 %v1853_v8 }
 0x57c   : > { %5347 = vrot.lane.b32.xlu0 %v5346_v49, %s5592_s26 }
 0x580   : > { %1876 = vrot.lane.b32.xlu0 %v1868_v50, %s5592_s26 }
 0x5aa   : > { %v1261_v46 = vpop.xlane.xlu1 %1260 }
 0x5ab   : > { %5406 = vrcp.f32 %v1261_v46 }
 0x5ae   : > { %v1122_v0 = vpop.xlane.xlu1 %1121 }
 0x5af   : > { %v1264_v61 = vpop.xlane.xlu0 %1263 }
 0x5b0   : > { %5408 = vrcp.f32 %v1264_v61 }
 0x5b5   : > { %v5407_v4 = vpop.eup %5406 }
 0x5b6   : > { %v1269_v5 = vmul.f32 %v5407_v4, %v6056_v7  ;;  %v1267_v43 = vpop.xlane.xlu1 %1266  ;;  %v5343_v7 = vpop.permute.xlu0 %5342  ;;  %v4305_v4 = vld [vmem:[%s6974_s10] ss:$0 sm:$0xff] }
 0x5b7   : > { %5410 = vrcp.f32 %v1267_v43  ;;  %v5345_v17 = vunpack.i.h.bf16 %v5343_v7  ;;  %v5344_v23 = vunpack.i.l.bf16 %v5343_v7 }
 0x5b8   : > { %4680 = vmatmul.mubr.msk.f32.vlgmr.msra.gmra.mrb[6].mxu1 %vm1100_vm0, %v1269_v5  ;;  %5412 = vrcp.f32 %v1122_v0 }
 0x5b9   : > { %5103 = vmatpush3.bf16.msra.mxu1 %v5102_v9  ;;  %4682 = vmatprep.mubr.msk.f32.mxu1 %vm5589_vm3, %v5590_v55  ;;  %v5109_v32 = vpack.c.bf16 %v5345_v17, %v5344_v23 }
 0x5ba   : > { %v5409_v11 = vpop.eup %5408  ;;  %v1128_v12 = vpop.xlane.xlu1 %1127  ;;  %4692 = vmatprep.subr.mxu1 %v5590_v55 }
 0x5bb   : > { %v1271_v13 = vmul.f32 %v5409_v11, %v6064_v33 }
 0x5bd   : > { %4683 = vmatmul.mubr.msk.f32.gmra.mrb[8].mxu1 %vm1100_vm0, %v1271_v13 }
 0x5be   : > { %4693 = vmatpush3.msk.msra.mxu1 %vm1301_vm15, %v1392_v56  ;;  %4685 = vmatprep.mubr.msk.f32.mxu1 %vm5589_vm3, %v5590_v55  ;;  %v1605_v15 = vpop.xlane.xlu1 %1604 }
 0x5bf   : > { %5108 = vmatprep.subr.bf16.mxu1 %v5588_v51 }
 0x5c1   : > { %v5411_v16 = vpop.eup %5410 }
 0x5c2   : > { %v1273_v18 = vmul.f32 %v5411_v16, %v6070_v40  ;;  %v5413_v19 = vpop.eup %5412  ;;  %v1608_v25 = vpop.xlane.xlu1 %1607 }
 0x5c3   : > { %v1130_v33 = vmul.f32 %v5413_v19, %v6061_v48 }
 0x5c4   : > { %4686 = vmatmul.mubr.msk.f32.gmra.mrb[10].mxu1 %vm1100_vm0, %v1273_v18 }
 0x5c5   : > { %4694 = vmatprep.mubr.msk.f32.mxu1 %vm5589_vm3, %v5590_v55 }
 0x5c6   : > { %v1633_v40 = vpop.permute.xlu1 %1632 }
 0x5c8   : > { %4695 = vmatmul.mubr.msk.f32.vlgmr.msra.gmra.mrb[6].mxu1 %vm1100_vm0, %v1130_v33 }
 0x5c9   : > { %5110 = vmatpush3.bf16.msra.mxu1 %v5109_v32  ;;  %4697 = vmatprep.mubr.msk.f32.mxu1 %vm5589_vm3, %v5590_v55 }
 0x5ca   : > { %4722 = vmatprep.subr.mxu1 %v5590_v55 }
 0x5cd   : > { %4723 = vmatpush3.msk.msra.mxu1 %vm1301_vm15, %v1633_v40 }
 0x5ce   : > { %5115 = vmatprep.subr.bf16.mxu1 %v5588_v51 }
 0x5e4   : > { %v1125_v36 = vpop.xlane.xlu0 %1124 }
 0x5e5   : > { %5414 = vrcp.f32 %v1125_v36 }
 0x5e6   : > { %5416 = vrcp.f32 %v1128_v12 }
 0x5e7   : > { %5418 = vrcp.f32 %v1605_v15 }
 0x5e8   : > { %v1611_v57 = vpop.xlane.xlu0 %1610  ;;  %5420 = vrcp.f32 %v1608_v25 }
 0x5e9   : > { %5422 = vrcp.f32 %v1611_v57 }
 0x5ec   : > { %v1849_v37 = vpop.xlane.xlu0 %1848 }
 0x5ed   : > { %5424 = vrcp.f32 %v1849_v37 }
 0x5ef   : > { %v5415_v48 = vpop.eup %5414 }
 0x5f0   : > { %v1132_v39 = vmul.f32 %v5415_v48, %v6100_v20  ;;  %v5417_v6 = vpop.eup %5416 }
 0x5f1   : > { %v1134_v8 = vmul.f32 %v5417_v6, %v6074_v58  ;;  %v5419_v14 = vpop.eup %5418 }
 0x5f2   : > { %4698 = vmatmul.mubr.msk.f32.gmra.mrb[8].mxu1 %vm1100_vm0, %v1132_v39  ;;  %v1613_v20 = vmul.f32 %v5419_v14, %v6078_v59  ;;  %v5421_v53 = vpop.eup %5420 }
 0x5f3   : > { %v1852_v45 = vpop.xlane.xlu0 %1851  ;;  %4700 = vmatprep.mubr.msk.f32.mxu1 %vm5589_vm3, %v5590_v55  ;;  %v1615_v21 = vmul.f32 %v5421_v53, %v6085_v62  ;;  %v5423_v22 = vpop.eup %5422  ;;  %v2138_v53 = vld [vmem:[%s6977_s13 + $0x10] sm:$0xff] }
 0x5f4   : > { %5426 = vrcp.f32 %v1852_v45  ;;  %v1617_v54 = vmul.f32 %v5423_v22, %v6105_v52 }
 0x5f6   : > { %4701 = vmatmul.mubr.msk.f32.gmra.mrb[10].mxu1 %vm1100_vm0, %v1134_v8 }
 0x5f7   : > { %v5348_v24 = vpop.permute.xlu0 %5347  ;;  %4724 = vmatprep.mubr.msk.f32.mxu1 %vm5589_vm3, %v5590_v55  ;;  %v1855_v58 = vpop.xlane.xlu1 %1854 }
 0x5f8   : > { %v5350_v49 = vunpack.i.h.bf16 %v5348_v24  ;;  %v5349_v50 = vunpack.i.l.bf16 %v5348_v24  ;;  %5428 = vrcp.f32 %v1855_v58  ;;  %v5425_v30 = vpop.eup %5424 }
 0x5f9   : > { %v1857_v62 = vmul.f32 %v5425_v30, %v6110_v38 }
 0x5fa   : > { %v5116_v63 = vpack.c.bf16 %v5350_v49, %v5349_v50  ;;  %4725 = vmatmul.mubr.msk.f32.vlgmr.msra.gmra.mrb[6].mxu1 %vm1100_vm0, %v1613_v20  ;;  %v2136_v20 = vld [vmem:[%s6977_s13] sm:$0xff]  ;;  %v2137_v49 = vld [vmem:[%s6977_s13 + $0x8] sm:$0xff] }
 0x5fb   : > { %4727 = vmatprep.mubr.msk.f32.mxu1 %vm5589_vm3, %v5590_v55  ;;  %v1877_v59 = vpop.permute.xlu0 %1876  ;;  %v5125_v50 = vpack.c.bf16 %v2137_v49, %v2136_v20  ;;  %v2331_v20 = vld [vmem:[%s6979_s15 + $0x70] sm:$0xff]  ;;  %v2332_v49 = vld [vmem:[%s6979_s15 + $0x78] sm:$0xff] }
 0x5fc   : > { %5117 = vmatpush3.bf16.msra.mxu1 %v5116_v63  ;;  %v2139_v63 = vld [vmem:[%s6977_s13 + $0x18] sm:$0xff] }
 0x5fd   : > { %4752 = vmatprep.subr.mxu1 %v5590_v55  ;;  %v5128_v58 = vpack.c.bf16 %v2139_v63, %v2138_v53  ;;  %v4311_v53 = vld [vmem:[%s6978_s14] ss:$0 sm:$0xff] }
 0x5fe   : > { %4728 = vmatmul.mubr.msk.f32.gmra.mrb[8].mxu1 %vm1100_vm0, %v1615_v21  ;;  %v5427_v56 = vpop.eup %5426 }
 0x5ff   : > { %4730 = vmatprep.mubr.msk.f32.mxu1 %vm5589_vm3, %v5590_v55  ;;  %v1859_v46 = vmul.f32 %v5427_v56, %v6114_v42 }
 0x600   : > { %4753 = vmatpush3.msk.msra.mxu1 %vm1301_vm15, %v1877_v59 }
 0x601   : > { %5130 = vmatprep.subr.bf16.mxu1 %v5588_v51 }
 0x602   : > { %4731 = vmatmul.mubr.msk.f32.gmra.mrb[10].mxu1 %vm1100_vm0, %v1617_v54  ;;  %v5429_v61 = vpop.eup %5428 }
 0x603   : > { %4754 = vmatprep.mubr.msk.f32.mxu1 %vm5589_vm3, %v5590_v55  ;;  %v1861_v52 = vmul.f32 %v5429_v61, %v6118_v47 }
 0x606   : > { %4755 = vmatmul.mubr.msk.f32.vlgmr.msra.gmra.mrb[6].mxu1 %vm1100_vm0, %v1857_v62 }
 0x607   : > { %4757 = vmatprep.mubr.msk.f32.mxu1 %vm5589_vm3, %v5590_v55 }
 0x60a   : > { %4758 = vmatmul.mubr.msk.f32.gmra.mrb[8].mxu1 %vm1100_vm0, %v1859_v46 }
 0x60b   : > { %4760 = vmatprep.mubr.msk.f32.mxu1 %vm5589_vm3, %v5590_v55 }
 0x60e   : > { %4761 = vmatmul.mubr.msk.f32.gmra.mrb[10].mxu1 %vm1100_vm0, %v1861_v52 }
 0x60f   : > { %4829 = vmatprep.mubr.msk.f32.mxu1 %vm5589_vm3, %v5590_v55 }
 0x6d9   : > { %v1957_v38 = vpop.f32.mrb[6].mxu1 }
 0x6da   : > { %v4756_v0 = vpop.f32.mrb[7].mxu1  ;;  %4772 = vmatmul.mubr.msk.f32.vlgmr.msra.gmra.mrb[26].mxu0 %vm818_vm2, %v1957_v38  ;;  %v4309_v38 = vld [vmem:[%s6975_s11] ss:$0 sm:$0xff] }
 0x6db   : > { %4774 = vmatprep.mubr.msk.f32.mxu0 %vm5589_vm3, %v5590_v55  ;;  %5126 = vmatpush3.bf16.msra.mxu0 %v5125_v50  ;;  %v5152_v50 = vpack.c.bf16 %v2332_v49, %v2331_v20 }
 0x6dc   : > { %5127 = vmatprep.subr.bf16.mxu0 %v5588_v51 }
 0x6dd   : > { %v1962_v42 = vpop.f32.mrb[8].mxu1 }
 0x6de   : > { %v4759_v2 = vpop.f32.mrb[9].mxu1  ;;  %4775 = vmatmul.mubr.msk.f32.gmra.mrb[28].mxu0 %vm818_vm2, %v1962_v42  ;;  %v4310_v42 = vld [vmem:[%s6976_s12] ss:$0 sm:$0xff] }
 0x6df   : > { %4777 = vmatprep.mubr.msk.f32.mxu0 %vm5589_vm3, %v5590_v55  ;;  %5129 = vmatpush3.bf16.msra.mxu0 %v5128_v58 }
 0x6e0   : > { %5154 = vmatprep.subr.bf16.mxu0 %v5588_v51 }
 0x6e1   : > { %v1967_v47 = vpop.f32.mrb[10].mxu1 }
 0x6e2   : > { %v4762_v3 = vpop.f32.mrb[11].mxu1  ;;  %4778 = vmatmul.mubr.msk.f32.gmra.mrb[30].mxu0 %vm818_vm2, %v1967_v47 }
 0x6e3   : > { %4788 = vmatprep.mubr.msk.f32.mxu0 %vm5589_vm3, %v5590_v55 }
 0x7ad   : > { %v2060_v5 = vpop.f32.mrb[26].mxu0 }
 0x7ae   : > { %v2061_v43 = vadd.f32 %v4305_v4, %v2060_v5  ;;  %v4773_v9 = vpop.f32.mrb[27].mxu0 }
 0x7b0   : > { %v6217_v11 = vadd.f32 %v2061_v43, %v5807_v29 }
 0x7b1   : > { %v2065_v12 = vpop.f32.mrb[28].mxu0 }
 0x7b2   : > { %v2066_v13 = vadd.f32 %v4305_v4, %v2065_v12  ;;  %v4776_v7 = vpop.f32.mrb[29].mxu0  ;;  %v2079_v15 = vsel %vm818_vm2, %v6217_v11, 0.0 }
 0x7b3   : > { %2080 = vadd.xlane.f32.xlu0 %v2079_v15  ;;  %v2317_v15 = vld [vmem:[%s6979_s15] sm:$0xff] }
 0x7b4   : > { %v6222_v16 = vadd.f32 %v2066_v13, %v5811_v31 }
 0x7b5   : > { %v2070_v18 = vpop.f32.mrb[30].mxu0 }
 0x7b6   : > { %v2071_v19 = vadd.f32 %v4305_v4, %v2070_v18  ;;  %v4779_v17 = vpop.f32.mrb[31].mxu0  ;;  %v2082_v23 = vsel %vm818_vm2, %v6222_v16, 0.0  ;;  %v2318_v18 = vld [vmem:[%s6979_s15 + $0x8] sm:$0xff] }
 0x7b7   : > { %2083 = vadd.xlane.f32.xlu1 %v2082_v23  ;;  %v2319_v17 = vld [vmem:[%s6979_s15 + $0x10] sm:$0xff]  ;;  %v2320_v23 = vld [vmem:[%s6979_s15 + $0x18] sm:$0xff] }
 0x7b8   : > { %v6227_v29 = vadd.f32 %v2071_v19, %v5803_v27  ;;  %v5131_v19 = vpack.c.bf16 %v2318_v18, %v2317_v15 }
 0x7ba   : > { %v2085_v33 = vsel %vm812_vm1, %v6227_v29, 0.0  ;;  %5132 = vmatpush3.bf16.msra.mxu1 %v5131_v19 }
 0x7bb   : > { %2086 = vadd.xlane.f32.xlu1 %v2085_v33  ;;  %5133 = vmatprep.subr.bf16.mxu1 %v5588_v51  ;;  %v5134_v33 = vpack.c.bf16 %v2320_v23, %v2319_v17 }
 0x7be   : > { %5135 = vmatpush3.bf16.msra.mxu1 %v5134_v33 }
 0x7bf   : > { %5136 = vmatprep.subr.bf16.mxu1 %v5588_v51 }
 0x840   : > { %v2081_v25 = vpop.xlane.xlu0 %2080 }
 0x841   : > { %v2088_v32 = vmul.f32 0.03125, %v2081_v25  ;;  %v2321_v25 = vld [vmem:[%s6979_s15 + $0x20] sm:$0xff] }
 0x843   : > { %v2091_v40 = vsub.f32 %v6217_v11, %v2088_v32  ;;  %v2322_v32 = vld [vmem:[%s6979_s15 + $0x28] sm:$0xff] }
 0x844   : > { %v2084_v31 = vpop.xlane.xlu1 %2083 }
 0x845   : > { %v2089_v36 = vmul.f32 0.03125, %v2084_v31  ;;  %v2094_v57 = vmul.f32 %v2091_v40, %v2091_v40  ;;  %v2323_v31 = vld [vmem:[%s6979_s15 + $0x30] sm:$0xff] }
 0x847   : > { %v2092_v48 = vsub.f32 %v6222_v16, %v2089_v36  ;;  %v2097_v37 = vsel %vm818_vm2, %v2094_v57, 0.0  ;;  %v2324_v36 = vld [vmem:[%s6979_s15 + $0x38] sm:$0xff] }
 0x848   : > { %2098 = vadd.xlane.f32.xlu1 %v2097_v37  ;;  %v2087_v39 = vpop.xlane.xlu1 %2086  ;;  %v5140_v57 = vpack.c.bf16 %v2324_v36, %v2323_v31  ;;  %v2326_v37 = vld [vmem:[%s6979_s15 + $0x48] sm:$0xff] }
 0x849   : > { %v2090_v6 = vmul.f32 0.03125, %v2087_v39  ;;  %v2095_v27 = vmul.f32 %v2092_v48, %v2092_v48 }
 0x84b   : > { %v2093_v45 = vsub.f32 %v6227_v29, %v2090_v6  ;;  %v2100_v8 = vsel %vm818_vm2, %v2095_v27, 0.0  ;;  %v2327_v6 = vld [vmem:[%s6979_s15 + $0x50] sm:$0xff]  ;;  %v2328_v27 = vld [vmem:[%s6979_s15 + $0x58] sm:$0xff] }
 0x84c   : > { %2101 = vadd.xlane.f32.xlu0 %v2100_v8  ;;  %v2329_v8 = vld [vmem:[%s6979_s15 + $0x60] sm:$0xff] }
 0x84d   : > { %v2096_v14 = vmul.f32 %v2093_v45, %v2093_v45 }
 0x84f   : > { %v2103_v24 = vsel %vm812_vm1, %v2096_v14, 0.0  ;;  %v2330_v14 = vld [vmem:[%s6979_s15 + $0x68] sm:$0xff] }
 0x850   : > { %2104 = vadd.xlane.f32.xlu1 %v2103_v24  ;;  %v5149_v24 = vpack.c.bf16 %v2330_v14, %v2329_v8 }
 0x8d5   : > { %v2099_v21 = vpop.xlane.xlu1 %2098 }
 0x8d6   : > { %v2106_v22 = vmul.f32 0.03125, %v2099_v21 }
 0x8d8   : > { %v2109_v59 = vadd.f32 1e-12, %v2106_v22 }
 0x8d9   : > { %v2102_v54 = vpop.xlane.xlu0 %2101 }
 0x8da   : > { %5430 = vrsqrt.f32 %v2109_v59  ;;  %v2107_v30 = vmul.f32 0.03125, %v2102_v54 }
 0x8dc   : > { %v2110_v62 = vadd.f32 1e-12, %v2107_v30 }
 0x8dd   : > { %v2105_v56 = vpop.xlane.xlu1 %2104 }
 0x8de   : > { %5432 = vrsqrt.f32 %v2110_v62  ;;  %v2108_v46 = vmul.f32 0.03125, %v2105_v56 }
 0x8e0   : > { %v2111_v61 = vadd.f32 1e-12, %v2108_v46 }
 0x8e2   : > { %5434 = vrsqrt.f32 %v2111_v61 }
 0x8e4   : > { %v5431_v52 = vpop.eup %5430 }
 0x8e5   : > { %v2115_v0 = vmul.f32 %v5431_v52, %v2091_v40  ;;  %v5137_v40 = vpack.c.bf16 %v2322_v32, %v2321_v25 }
 0x8e7   : > { %v2124_v2 = vmul.f32 %v4309_v38, %v2115_v0  ;;  %5138 = vmatpush3.bf16.msra.mxu1 %v5137_v40 }
 0x8e8   : > { %v5433_v47 = vpop.eup %5432  ;;  %5139 = vmatprep.subr.bf16.mxu1 %v5588_v51 }
 0x8e9   : > { %v2133_v3 = vadd.f32 %v4310_v42, %v2124_v2  ;;  %v2116_v4 = vmul.f32 %v5433_v47, %v2092_v48  ;;  %v2325_v48 = vld [vmem:[%s6979_s15 + $0x40] sm:$0xff] }
 0x8ea   : > { %v5143_v39 = vpack.c.bf16 %v2326_v37, %v2325_v48 }
 0x8eb   : > { %4789 = vmatmul.mubr.msk.f32.vlgmr.msra.gmra.mrb[32].mxu0 %vm818_vm2, %v2133_v3  ;;  %v2125_v5 = vmul.f32 %v4309_v38, %v2116_v4  ;;  %5141 = vmatpush3.bf16.msra.mxu1 %v5140_v57 }
 0x8ec   : > { %v5435_v43 = vpop.eup %5434  ;;  %4791 = vmatprep.mubr.msk.f32.mxu0 %vm5589_vm3, %v5590_v55  ;;  %5142 = vmatprep.subr.bf16.mxu1 %v5588_v51 }
 0x8ed   : > { %v2134_v9 = vadd.f32 %v4310_v42, %v2125_v5  ;;  %v2117_v12 = vmul.f32 %v5435_v43, %v2093_v45  ;;  %v5146_v45 = vpack.c.bf16 %v2328_v27, %v2327_v6 }
 0x8ef   : > { %4792 = vmatmul.mubr.msk.f32.gmra.mrb[34].mxu0 %vm818_vm2, %v2134_v9  ;;  %v2126_v13 = vmul.f32 %v4309_v38, %v2117_v12  ;;  %5144 = vmatpush3.bf16.msra.mxu1 %v5143_v39 }
 0x8f0   : > { %4794 = vmatprep.mubr.msk.f32.mxu0 %vm5589_vm3, %v5590_v55  ;;  %5145 = vmatprep.subr.bf16.mxu1 %v5588_v51 }
 0x8f1   : > { %v2135_v7 = vadd.f32 %v4310_v42, %v2126_v13 }
 0x8f3   : > { %4795 = vmatmul.mubr.msk.f32.gmra.mrb[36].mxu0 %vm818_vm2, %v2135_v7  ;;  %5147 = vmatpush3.bf16.msra.mxu1 %v5146_v45 }
 0x8f4   : > { %4846 = vmatprep.mubr.msk.f32.mxu0 %vm5589_vm3, %v5590_v55  ;;  %5148 = vmatprep.subr.bf16.mxu1 %v5588_v51 }
 0x8f7   : > { %5150 = vmatpush3.bf16.msra.mxu1 %v5149_v24 }
 0x8f8   : > { %5151 = vmatprep.subr.bf16.mxu1 %v5588_v51 }
 0x8fb   : > { %5153 = vmatpush3.bf16.msra.mxu1 %v5152_v50 }
 0x8fc   : > { %5168 = vmatprep.subr.bf16.mxu1 %v5588_v51 }
 0x9be   : > { %v2222_v63 = vpop.f32.mrb[32].mxu0 }
 0x9bf   : > { %v6325_v58 = vadd.f32 %v4311_v53, %v2222_v63  ;;  %v4790_v21 = vpop.f32.mrb[33].mxu0 }
 0x9c1   : > { %v6328_v22 = vmul.f32 0.70710677, %v6325_v58 }
 0x9c2   : > { %v2227_v59 = vpop.f32.mrb[34].mxu0 }
 0x9c3   : > { %v2242_v54 = vand.u32 2147483647, %v6328_v22  ;;  %v6331_v30 = vadd.f32 %v4311_v53, %v2227_v59  ;;  %v4793_v62 = vpop.f32.mrb[35].mxu0  ;;  %vm2302_vm5 = vcmp.lt.f32.partialorder %v6328_v22, 0.0 }
 0x9c5   : > { %v2245_v56 = vmul.f32 0.3275911, %v2242_v54  ;;  %v6334_v46 = vmul.f32 0.70710677, %v6331_v30  ;;  %v2284_v43 = vsub.f32 0.0, %v2242_v54 }
 0x9c6   : > { %v2232_v61 = vpop.f32.mrb[36].mxu0 }
 0x9c7   : > { %v2248_v52 = vadd.f32 1.0, %v2245_v56  ;;  %v2243_v38 = vand.u32 2147483647, %v6334_v46  ;;  %v4796_v0 = vpop.f32.mrb[37].mxu0  ;;  %v6337_v42 = vadd.f32 %v4311_v53, %v2232_v61  ;;  %v2287_v13 = vmul.f32 %v2284_v43, %v2242_v54 }
 0x9c8   : > { %vm2303_vm6 = vcmp.lt.f32.partialorder %v6334_v46, 0.0 }
 0x9c9   : > { %5436 = vrcp.f32 %v2248_v52  ;;  %v2246_v2 = vmul.f32 0.3275911, %v2243_v38  ;;  %v6340_v47 = vmul.f32 0.70710677, %v6337_v42  ;;  %v2285_v7 = vsub.f32 0.0, %v2243_v38 }
 0x9ca   : > { %v2290_v17 = vmul.f32 1.442695, %v2287_v13 }
 0x9cb   : > { %v2249_v3 = vadd.f32 1.0, %v2246_v2  ;;  %v2244_v4 = vand.u32 2147483647, %v6340_v47  ;;  %v2288_v23 = vmul.f32 %v2285_v7, %v2243_v38  ;;  %vm2304_vm7 = vcmp.lt.f32.partialorder %v6340_v47, 0.0 }
 0x9cd   : > { %5438 = vrcp.f32 %v2249_v3  ;;  %v2247_v5 = vmul.f32 0.3275911, %v2244_v4  ;;  %v2286_v25 = vsub.f32 0.0, %v2244_v4  ;;  %v2292_v36 = vmul.f32 1.442695, %v2288_v23 }
 0x9cf   : > { %v2250_v9 = vadd.f32 1.0, %v2247_v5  ;;  %v2289_v37 = vmul.f32 %v2286_v25, %v2244_v4  ;;  %v2237_v25 = vmul.f32 0.5, %v6331_v30  ;;  %v4315_v30 = vld [vmem:[%s6980_s16] ss:$0 sm:$0xff] }
 0x9d1   : > { %5440 = vrcp.f32 %v2250_v9  ;;  %v2294_v24 = vmul.f32 1.442695, %v2289_v37 }
 0x9d2   : > { %5442 = vpow2.f32 %v2290_v17 }
 0x9d3   : > { %v5437_v12 = vpop.eup %5436  ;;  %5444 = vpow2.f32 %v2292_v36  ;;  %v2238_v36 = vmul.f32 0.5, %v6337_v42 }
 0x9d4   : > { %v2257_v15 = vmul.f32 1.0614054, %v5437_v12  ;;  %5446 = vpow2.f32 %v2294_v24 }
 0x9d6   : > { %v2260_v18 = vadd.f32 -1.4531521, %v2257_v15 }
 0x9d7   : > { %v5439_v19 = vpop.eup %5438 }
 0x9d8   : > { %v2263_v33 = vmul.f32 %v5437_v12, %v2260_v18  ;;  %v2258_v32 = vmul.f32 1.0614054, %v5439_v19 }
 0x9da   : > { %v2266_v40 = vadd.f32 1.4214138, %v2263_v33  ;;  %v2261_v31 = vadd.f32 -1.4531521, %v2258_v32 }
 0x9db   : > { %v5441_v57 = vpop.eup %5440 }
 0x9dc   : > { %v2269_v48 = vmul.f32 %v5437_v12, %v2266_v40  ;;  %v2264_v39 = vmul.f32 %v5439_v19, %v2261_v31  ;;  %v2259_v6 = vmul.f32 1.0614054, %v5441_v57  ;;  %v5443_v54 = vpop.eup %5442 }
 0x9dd   : > { %v5445_v2 = vpop.eup %5444 }
 0x9de   : > { %v2272_v27 = vadd.f32 -0.28449672, %v2269_v48  ;;  %v2267_v45 = vadd.f32 1.4214138, %v2264_v39  ;;  %v2262_v8 = vadd.f32 -1.4531521, %v2259_v6  ;;  %v5447_v18 = vpop.eup %5446 }
 0x9e0   : > { %v2275_v14 = vmul.f32 %v5437_v12, %v2272_v27  ;;  %v2270_v20 = vmul.f32 %v5439_v19, %v2267_v45  ;;  %v2265_v49 = vmul.f32 %v5441_v57, %v2262_v8 }
 0x9e2   : > { %v2278_v50 = vadd.f32 0.2548296, %v2275_v14  ;;  %v2273_v53 = vadd.f32 -0.28449672, %v2270_v20  ;;  %v2268_v63 = vadd.f32 1.4214138, %v2265_v49 }
 0x9e4   : > { %v2281_v21 = vmul.f32 %v5437_v12, %v2278_v50  ;;  %v2276_v59 = vmul.f32 %v5439_v19, %v2273_v53  ;;  %v2271_v62 = vmul.f32 %v5441_v57, %v2268_v63  ;;  %v2236_v12 = vmul.f32 0.5, %v6325_v58 }
 0x9e6   : > { %v2296_v56 = vmul.f32 %v5443_v54, %v2281_v21  ;;  %v2279_v61 = vadd.f32 0.2548296, %v2276_v59  ;;  %v2274_v52 = vadd.f32 -0.28449672, %v2271_v62 }
 0x9e8   : > { %v2299_v38 = vsub.f32 1.0, %v2296_v56  ;;  %v2282_v0 = vmul.f32 %v5439_v19, %v2279_v61  ;;  %v2277_v3 = vmul.f32 %v5441_v57, %v2274_v52 }
 0x9ea   : > { %v2305_v4 = vsub.f32 0.0, %v2299_v38  ;;  %v2297_v5 = vmul.f32 %v5445_v2, %v2282_v0  ;;  %v2280_v43 = vadd.f32 0.2548296, %v2277_v3 }
 0x9ec   : > { %v2308_v9 = vsel %vm2302_vm5, %v2305_v4, %v2299_v38  ;;  %v2300_v13 = vsub.f32 1.0, %v2297_v5  ;;  %v2283_v15 = vmul.f32 %v5441_v57, %v2280_v43  ;;  %v4320_v4 = vld [vmem:[%s7026_s3 + $0x20] sm:$0xff]  ;;  %v4321_v5 = vld [vmem:[%s7026_s3 + $0x28] sm:$0xff] }
 0x9ed   : > { %v2311_v7 = vadd.f32 1.0, %v2308_v9  ;;  %v5155_v43 = vpack.c.bf16 %v4321_v5, %v4320_v4  ;;  %v4322_v9 = vld [vmem:[%s7026_s3 + $0x30] sm:$0xff] }
 0x9ee   : > { %v2306_v17 = vsub.f32 0.0, %v2300_v13  ;;  %v2298_v33 = vmul.f32 %v5447_v18, %v2283_v15 }
 0x9ef   : > { %v2314_v23 = vmul.f32 %v2311_v7, %v2236_v12  ;;  %5156 = vmatpush3.bf16.msra.mxu0 %v5155_v43 }
 0x9f0   : > { %v2309_v19 = vsel %vm2303_vm6, %v2306_v17, %v2300_v13  ;;  %v2301_v40 = vsub.f32 1.0, %v2298_v33  ;;  %5157 = vmatprep.subr.bf16.mxu0 %v5588_v51  ;;  %v4323_v13 = vld [vmem:[%s7026_s3 + $0x38] sm:$0xff] }
 0x9f1   : > { %4830 = vmatmul.mubr.f32.vlgmr.msra.gmra.mrb[12].mxu1 %v2314_v23  ;;  %v2312_v32 = vadd.f32 1.0, %v2309_v19  ;;  %v5158_v12 = vpack.c.bf16 %v4323_v13, %v4322_v9 }
 0x9f2   : > { %4832 = vmatprep.mubr.msk.f32.mxu1 %vm5589_vm3, %v5590_v55  ;;  %v2307_v31 = vsub.f32 0.0, %v2301_v40 }
 0x9f3   : > { %v2315_v22 = vmul.f32 %v2312_v32, %v2237_v25  ;;  %5159 = vmatpush3.bf16.msra.mxu0 %v5158_v12 }
 0x9f4   : > { %v2310_v58 = vsel %vm2304_vm7, %v2307_v31, %v2301_v40  ;;  %5160 = vmatprep.subr.bf16.mxu0 %v5588_v51 }
 0x9f5   : > { %4833 = vmatmul.mubr.f32.gmra.mrb[14].mxu1 %v2315_v22  ;;  %v2313_v46 = vadd.f32 1.0, %v2310_v58  ;;  %v4318_v22 = vld [vmem:[%s7027_s29 + $0x1] ss:$0 sm:$0xff] }
 0x9f6   : > { %4835 = vmatprep.mubr.msk.f32.mxu1 %vm5589_vm3, %v5590_v55  ;;  %v4319_v58 = vld [vmem:[%s7028_s2 + $0x1] ss:$0 sm:$0xff]  ;;  %s5528_s2 = sshll.u32 %s5593_s5, 4  ;;  %s5529_s2 = int_to_ptr.vmem [resolvable:$false] %s5528_s2 }
 0x9f7   : > { %v2316_v57 = vmul.f32 %v2313_v46, %v2238_v36  ;;  %s5530_s3 = scalar_lea.vmem %s5529_s2, 32 }
 0x9f9   : > { %4836 = vmatmul.mubr.f32.gmra.mrb[16].mxu1 %v2316_v57 }
 0x9fa   : > { %4891 = vmatprep.mubr.msk.f32.mxu1 %vm5589_vm3, %v5590_v55 }
 0xac4   : > { %v2406_v48 = vpop.f32.mrb[12].mxu1 }
 0xac5   : > { %v2407_v37 = vadd.f32 %v4315_v30, %v2406_v48  ;;  %v4831_v47 = vpop.f32.mrb[13].mxu1 }
 0xac7   : > { %v6359_v39 = vadd.f32 %v2407_v37, %v6217_v11 }
 0xac8   : > { %v2411_v42 = vpop.f32.mrb[14].mxu1 }
 0xac9   : > { %v2412_v6 = vadd.f32 %v4315_v30, %v2411_v42  ;;  %v4834_v27 = vpop.f32.mrb[15].mxu1  ;;  %v2427_v45 = vsel %vm818_vm2, %v6359_v39, 0.0 }
 0xaca   : > { %2428 = vadd.xlane.f32.xlu0 %v2427_v45  ;;  %v4325_v45 = vld [vmem:[%s6972_s8 + $0x1] ss:$0 sm:$0xff] }
 0xacb   : > { %v6364_v8 = vadd.f32 %v2412_v6, %v6222_v16 }
 0xacc   : > { %v2416_v14 = vpop.f32.mrb[16].mxu1 }
 0xacd   : > { %v2430_v24 = vsel %vm818_vm2, %v6364_v8, 0.0  ;;  %v2417_v20 = vadd.f32 %v4315_v30, %v2416_v14  ;;  %v4837_v49 = vpop.f32.mrb[17].mxu1 }
 0xace   : > { %2431 = vadd.xlane.f32.xlu1 %v2430_v24 }
 0xacf   : > { %v6369_v11 = vadd.f32 %v2417_v20, %v6227_v29 }
 0xad1   : > { %v2433_v50 = vsel %vm812_vm1, %v6369_v11, 0.0 }
 0xad2   : > { %2434 = vadd.xlane.f32.xlu0 %v2433_v50 }
 0xb57   : > { %v2429_v53 = vpop.xlane.xlu0 %2428 }
 0xb58   : > { %v2436_v63 = vmul.f32 0.03125, %v2429_v53 }
 0xb5a   : > { %v2439_v21 = vsub.f32 %v6359_v39, %v2436_v63 }
 0xb5b   : > { %v2432_v16 = vpop.xlane.xlu1 %2431 }
 0xb5c   : > { %v2437_v59 = vmul.f32 0.03125, %v2432_v16  ;;  %v2442_v54 = vmul.f32 %v2439_v21, %v2439_v21 }
 0xb5e   : > { %v2440_v62 = vsub.f32 %v6364_v8, %v2437_v59  ;;  %v2445_v56 = vsel %vm818_vm2, %v2442_v54, 0.0 }
 0xb5f   : > { %2446 = vadd.xlane.f32.xlu1 %v2445_v56  ;;  %v2435_v61 = vpop.xlane.xlu0 %2434 }
 0xb60   : > { %v2443_v52 = vmul.f32 %v2440_v62, %v2440_v62  ;;  %v2438_v29 = vmul.f32 0.03125, %v2435_v61 }
 0xb62   : > { %v2448_v38 = vsel %vm818_vm2, %v2443_v52, 0.0  ;;  %v2441_v0 = vsub.f32 %v6369_v11, %v2438_v29 }
 0xb63   : > { %2449 = vadd.xlane.f32.xlu0 %v2448_v38 }
 0xb64   : > { %v2444_v2 = vmul.f32 %v2441_v0, %v2441_v0 }
 0xb66   : > { %v2451_v3 = vsel %vm812_vm1, %v2444_v2, 0.0 }
 0xb67   : > { %2452 = vadd.xlane.f32.xlu1 %v2451_v3 }
 0xbec   : > { %v2447_v7 = vpop.xlane.xlu1 %2446 }
 0xbed   : > { %v2454_v15 = vmul.f32 0.03125, %v2447_v7 }
 0xbef   : > { %v2457_v18 = vadd.f32 1e-12, %v2454_v15 }
 0xbf0   : > { %v2450_v17 = vpop.xlane.xlu0 %2449 }
 0xbf1   : > { %5448 = vrsqrt.f32 %v2457_v18  ;;  %v2455_v23 = vmul.f32 0.03125, %v2450_v17 }
 0xbf3   : > { %v2458_v33 = vadd.f32 1e-12, %v2455_v23 }
 0xbf4   : > { %v2453_v19 = vpop.xlane.xlu1 %2452 }
 0xbf5   : > { %5450 = vrsqrt.f32 %v2458_v33  ;;  %v2456_v25 = vmul.f32 0.03125, %v2453_v19 }
 0xbf7   : > { %v2459_v32 = vadd.f32 1e-12, %v2456_v25 }
 0xbf9   : > { %5452 = vrsqrt.f32 %v2459_v32 }
 0xbfb   : > { %v5449_v40 = vpop.eup %5448 }
 0xbfc   : > { %v2463_v31 = vmul.f32 %v5449_v40, %v2439_v21 }
 0xbfe   : > { %v2472_v36 = vmul.f32 %v4318_v22, %v2463_v31 }
 0xbff   : > { %v5451_v46 = vpop.eup %5450 }
 0xc00   : > { %v2481_v57 = vadd.f32 %v4319_v58, %v2472_v36  ;;  %v2464_v30 = vmul.f32 %v5451_v46, %v2440_v62 }
 0xc02   : > { %4847 = vmatmul.mubr.msk.f32.vlgmr.msra.gmra.mrb[38].mxu0 %vm818_vm2, %v2481_v57  ;;  %v2473_v48 = vmul.f32 %v4318_v22, %v2464_v30 }
 0xc03   : > { %4849 = vmatprep.mubr.msk.f32.mxu0 %vm5589_vm3, %v5590_v55  ;;  %v5453_v37 = vpop.eup %5452 }
 0xc04   : > { %v2482_v47 = vadd.f32 %v4319_v58, %v2473_v48  ;;  %v2465_v42 = vmul.f32 %v5453_v37, %v2441_v0 }
 0xc06   : > { %4850 = vmatmul.mubr.msk.f32.gmra.mrb[40].mxu0 %vm818_vm2, %v2482_v47  ;;  %v2474_v6 = vmul.f32 %v4318_v22, %v2465_v42 }
 0xc07   : > { %4852 = vmatprep.mubr.msk.f32.mxu0 %vm5589_vm3, %v5590_v55 }
 0xc08   : > { %v2483_v27 = vadd.f32 %v4319_v58, %v2474_v6 }
 0xc0a   : > { %4853 = vmatmul.mubr.msk.f32.gmra.mrb[42].mxu0 %vm818_vm2, %v2483_v27 }
 0xc0b   : > { %4861 = vmatprep.mubr.msk.f32.mxu0 %vm5589_vm3, %v5590_v55 }
 0xcd5   : > { %v2572_v14 = vpop.f32.mrb[38].mxu0 }
 0xcd6   : > { %v4848_v24 = vpop.f32.mrb[39].mxu0  ;;  %v6411_v20 = vadd.f32 %v4325_v45, %v2572_v14 }
 0xcd8   : > { %v6419_v21 = vmul.f32 %v5903_v44, %v6411_v20  ;;  %v6423_v16 = vmul.f32 %v6033_v1, %v6411_v20  ;;  %v6435_v62 = vmul.f32 %v6123_v10, %v6411_v20  ;;  %v6444_v52 = vmul.f32 %v6081_v60, %v6411_v20 }
 0xcd9   : > { %v2577_v49 = vpop.f32.mrb[40].mxu0  ;;  %v2586_v15 = vmul.f32 %v6411_v20, %v5877_v34  ;;  %v2732_v23 = vmul.f32 %v6411_v20, %v5880_v35  ;;  %v3067_v19 = vmul.f32 %v6411_v20, %v5866_v26  ;;  %v3303_v41 = vmul.f32 %v6411_v20, %v5869_v28 }
 0xcda   : > { %v6413_v50 = vadd.f32 %v4325_v45, %v2577_v49  ;;  %v4851_v53 = vpop.f32.mrb[41].mxu0 }
 0xcdc   : > { %v5351_v63 = vpack.i.bf16 %v6413_v50, %v6411_v20  ;;  %v6427_v59 = vmul.f32 %v5903_v44, %v6413_v50  ;;  %v6431_v54 = vmul.f32 %v6033_v1, %v6413_v50  ;;  %v6439_v56 = vmul.f32 %v6123_v10, %v6413_v50 }
 0xcdd   : > { %v2582_v61 = vpop.f32.mrb[42].mxu0  ;;  %v6448_v29 = vmul.f32 %v6081_v60, %v6413_v50  ;;  %v2587_v18 = vmul.f32 %v6413_v50, %v5877_v34 }
 0xcde   : > { %5352 = vrot.lane.b32.xlu0 %v5351_v63, %s7031_s0  ;;  %v6450_v38 = vadd.f32 %v4325_v45, %v2582_v61  ;;  %v4854_v0 = vpop.f32.mrb[43].mxu0  ;;  %v5356_v2 = vpack.i.bf16 %v6427_v59, %v6419_v21  ;;  %v5361_v3 = vpack.i.bf16 %v6431_v54, %v6423_v16  ;;  %v5371_v4 = vpack.i.bf16 %v6439_v56, %v6435_v62 }
 0xcdf   : > { %v5366_v5 = vpack.i.bf16 %v6448_v29, %v6444_v52 }
 0xce0   : > { %2596 = vrot.lane.b32.xlu1 %v6450_v38, %s7031_s0  ;;  %v2588_v17 = vmul.f32 %v6450_v38, %v5877_v34  ;;  %v2733_v34 = vmul.f32 %v6413_v50, %v5880_v35  ;;  %v2734_v33 = vmul.f32 %v6450_v38, %v5880_v35  ;;  %v3068_v35 = vmul.f32 %v6413_v50, %v5866_v26  ;;  %s701_s0 = sand.u32 1, %s5578_s30  }
 0xce1   : > { %v3069_v25 = vmul.f32 %v6450_v38, %v5866_v26  ;;  %v3304_v26 = vmul.f32 %v6413_v50, %v5869_v28  ;;  %v3305_v32 = vmul.f32 %v6450_v38, %v5869_v28  ;;  %s702_s28 = scalar_lea.vmem [#allocation3], %s701_s0 }
 0xce2   : > { %s4193_s25 = sshll.u32 %s702_s28, 4  ;;  %s6924_s25 = int_to_ptr.vmem [resolvable:$true] %s4193_s25 }
 0xce3   : > { %s5524_s1 = scalar_lea.vmem %s6924_s25, 16  ;;  %p5531_p0 = scmp.lt.s32.totalorder %s6924_s25, %s5529_s2 }
 0xce4   : > { %p5525_p11 = scmp.ne.s32.totalorder %s6924_s25, %s5524_s1  ;;  %p5532_p1 = scmp.lt.s32.totalorder %s5530_s3, %s5524_s1 }
 0xce6   : > { %p5526_p12 = pnand %p5525_p11, %p5752_p5  ;;  %p5533_p2 = por %p5532_p1, %p5531_p0 }
 0xce8   : > { %p5527_p13 = pneg %p5526_p12 }
 0xcea   : > { %p5534_p3 = pnand %p5533_p2, %p5527_p13 }
 0xd50   : > { %v5353_v43 = vpop.permute.xlu0 %5352 }
 0xd51   : > { %v5355_v9 = vunpack.i.h.bf16 %v5353_v43  ;;  %v5354_v13 = vunpack.i.l.bf16 %v5353_v43 }
 0xd52   : > { %v2597_v7 = vpop.permute.xlu1 %2596 }
 0xd53   : > { %v5161_v12 = vpack.c.bf16 %v5355_v9, %v5354_v13 }
 0xd55   : > { %5163 = vmatpush3.bf16.xpose.msk.msra.mxu0 %vm5890_vm14, %v5161_v12 }
 0xd56   : > { %4859 = vmatprep.subr.mxu0 %v5590_v55 }
 0xd5d   : > { %4860 = vmatpush3.xpose.msk.msra.mxu0 %vm818_vm2, %v2597_v7 }
 0xd5e   : > { %5164 = vmatprep.subr.bf16.mxu0 %v5588_v51 }
 0xd60   : > { %4862 = vmatmul.mubr.msk.f32.vlgmr.msra.gmra.mrb[44].mxu0 %vm818_vm2, %v2586_v15 }
 0xd61   : > { %5167 = vmatpush3.bf16.xpose.msk.msra.mxu0 %vm5890_vm14, %v5161_v12  ;;  %4864 = vmatprep.mubr.msk.f32.mxu0 %vm5589_vm3, %v5590_v55 }
 0xd62   : > { %4874 = vmatprep.subr.mxu0 %v5590_v55 }
 0xd64   : > { %4865 = vmatmul.mubr.msk.f32.gmra.mrb[46].mxu0 %vm818_vm2, %v2587_v18 }
 0xd65   : > { %4867 = vmatprep.mubr.msk.f32.mxu0 %vm5589_vm3, %v5590_v55 }
 0xd68   : > { %4868 = vmatmul.mubr.msk.f32.gmra.mrb[48].mxu0 %vm818_vm2, %v2588_v17 }
 0xd69   : > { %4875 = vmatpush3.xpose.msk.msra.mxu0 %vm818_vm2, %v2597_v7  ;;  %4876 = vmatprep.mubr.msk.f32.mxu0 %vm5589_vm3, %v5590_v55 }
 0xd6a   : > { %5174 = vmatprep.subr.bf16.mxu0 %v5588_v51 }
 0xd6c   : > { %4877 = vmatmul.mubr.msk.f32.vlgmr.msra.gmra.mrb[50].mxu0 %vm818_vm2, %v2732_v23 }
 0xd6d   : > { %5177 = vmatpush3.bf16.xpose.msk.msra.mxu0 %vm5890_vm14, %v5161_v12  ;;  %4879 = vmatprep.mubr.msk.f32.mxu0 %vm5589_vm3, %v5590_v55 }
 0xd6e   : > { %4919 = vmatprep.subr.mxu0 %v5590_v55 }
 0xd70   : > { %4880 = vmatmul.mubr.msk.f32.gmra.mrb[52].mxu0 %vm818_vm2, %v2733_v34 }
 0xd71   : > { %4882 = vmatprep.mubr.msk.f32.mxu0 %vm5589_vm3, %v5590_v55 }
 0xd74   : > { %4883 = vmatmul.mubr.msk.f32.gmra.mrb[54].mxu0 %vm818_vm2, %v2734_v33 }
 0xd75   : > { %4920 = vmatpush3.xpose.msk.msra.mxu0 %vm818_vm2, %v2597_v7  ;;  %4921 = vmatprep.mubr.msk.f32.mxu0 %vm5589_vm3, %v5590_v55 }
 0xd76   : > { %5181 = vmatprep.subr.bf16.mxu0 %v5588_v51 }
 0xd78   : > { %4922 = vmatmul.mubr.msk.f32.vlgmr.msra.gmra.mrb[56].mxu0 %vm818_vm2, %v3067_v19 }
 0xd79   : > { %5184 = vmatpush3.bf16.xpose.msk.msra.mxu0 %vm5890_vm14, %v5161_v12  ;;  %4924 = vmatprep.mubr.msk.f32.mxu0 %vm5589_vm3, %v5590_v55 }
 0xd7a   : > { %4949 = vmatprep.subr.mxu0 %v5590_v55 }
 0xd7c   : > { %4925 = vmatmul.mubr.msk.f32.gmra.mrb[58].mxu0 %vm818_vm2, %v3068_v35 }
 0xd7d   : > { %4927 = vmatprep.mubr.msk.f32.mxu0 %vm5589_vm3, %v5590_v55 }
 0xd80   : > { %4928 = vmatmul.mubr.msk.f32.gmra.mrb[60].mxu0 %vm818_vm2, %v3069_v25 }
 0xd81   : > { %4950 = vmatpush3.xpose.msk.msra.mxu0 %vm818_vm2, %v2597_v7  ;;  %4951 = vmatprep.mubr.msk.f32.mxu0 %vm5589_vm3, %v5590_v55 }
 0xd82   : > { %5188 = vmatprep.subr.bf16.mxu0 %v5588_v51 }
 0xd84   : > { %4952 = vmatmul.mubr.msk.f32.vlgmr.msra.gmra.mrb[62].mxu0 %vm818_vm2, %v3303_v41 }
 0xd85   : > { %4954 = vmatprep.mubr.msk.f32.mxu0 %vm5589_vm3, %v5590_v55 }
 0xd88   : > { %4955 = vmatmul.mubr.msk.f32.gmra.mrb[64].mxu0 %vm818_vm2, %v3304_v26  ;;  %v2862_v26 = vmul.f32 %v5903_v44, %v6450_v38 }
 0xd89   : > { %4957 = vmatprep.mubr.msk.f32.mxu0 %vm5589_vm3, %v5590_v55 }
 0xd8c   : > { %4958 = vmatmul.mubr.msk.f32.gmra.mrb[66].mxu0 %vm818_vm2, %v3305_v32 }
 0xd8d   : > { %4983 = vmatprep.mubr.msk.f32.mxu0 %vm5589_vm3, %v5590_v55 }
 0xe33   : > { %v2679_v40 = vpop.f32.mrb[44].mxu0 }
 0xe34   : > { %v2693_v22 = vmul.f32 0.35355338, %v2679_v40  ;;  %v4863_v31 = vpop.f32.mrb[45].mxu0 }
 0xe36   : > { %v2696_v58 = vsel %vm1100_vm0, %v2693_v22, -inf }
 0xe37   : > { %2697 = vmax.xlane.f32.xlu1 %v2696_v58  ;;  %v2684_v36 = vpop.f32.mrb[46].mxu0 }
 0xe38   : > { %v2694_v46 = vmul.f32 0.35355338, %v2684_v36  ;;  %v4866_v57 = vpop.f32.mrb[47].mxu0 }
 0xe3a   : > { %v2699_v30 = vsel %vm1100_vm0, %v2694_v46, -inf }
 0xe3b   : > { %2700 = vmax.xlane.f32.xlu0 %v2699_v30  ;;  %v2689_v48 = vpop.f32.mrb[48].mxu0 }
 0xe3c   : > { %v2695_v37 = vmul.f32 0.35355338, %v2689_v48  ;;  %v4869_v28 = vpop.f32.mrb[49].mxu0 }
 0xe3e   : > { %v2702_v47 = vsel %vm1107_vm4, %v2695_v37, -inf }
 0xe3f   : > { %2703 = vmax.xlane.f32.xlu1 %v2702_v47  ;;  %v2810_v42 = vpop.f32.mrb[50].mxu0 }
 0xe40   : > { %v2824_v6 = vmul.f32 0.35355338, %v2810_v42  ;;  %v4878_v27 = vpop.f32.mrb[51].mxu0 }
 0xe42   : > { %v2827_v45 = vsel %vm1100_vm0, %v2824_v6, -inf }
 0xe43   : > { %2828 = vmax.xlane.f32.xlu1 %v2827_v45  ;;  %v2815_v14 = vpop.f32.mrb[52].mxu0 }
 0xe44   : > { %v2825_v24 = vmul.f32 0.35355338, %v2815_v14  ;;  %v4881_v20 = vpop.f32.mrb[53].mxu0 }
 0xe46   : > { %v2830_v49 = vsel %vm1100_vm0, %v2825_v24, -inf }
 0xe47   : > { %2831 = vmax.xlane.f32.xlu0 %v2830_v49  ;;  %v2820_v50 = vpop.f32.mrb[54].mxu0 }
 0xe48   : > { %v6547_v53 = vmul.f32 0.35355338, %v2820_v50  ;;  %v4884_v63 = vpop.f32.mrb[55].mxu0 }
 0xe4a   : > { %v2833_v61 = vsel %vm1107_vm4, %v6547_v53, -inf }
 0xe4b   : > { %2834 = vmax.xlane.f32.xlu0 %v2833_v61  ;;  %v3145_v0 = vpop.f32.mrb[56].mxu0 }
 0xe4c   : > { %v6551_v43 = vmul.f32 0.35355338, %v3145_v0  ;;  %v4923_v9 = vpop.f32.mrb[57].mxu0 }
 0xe4e   : > { %v3162_v13 = vsel %vm1100_vm0, %v6551_v43, -inf }
 0xe4f   : > { %3163 = vmax.xlane.f32.xlu0 %v3162_v13  ;;  %v3150_v12 = vpop.f32.mrb[58].mxu0 }
 0xe50   : > { %v6555_v7 = vmul.f32 0.35355338, %v3150_v12  ;;  %v4926_v15 = vpop.f32.mrb[59].mxu0 }
 0xe52   : > { %v3165_v18 = vsel %vm1100_vm0, %v6555_v7, -inf }
 0xe53   : > { %3166 = vmax.xlane.f32.xlu1 %v3165_v18  ;;  %v3155_v17 = vpop.f32.mrb[60].mxu0 }
 0xe54   : > { %v4929_v23 = vpop.f32.mrb[61].mxu0  ;;  %v6570_v32 = vmul.f32 0.35355338, %v3155_v17 }
 0xe56   : > { %v3168_v31 = vsel %vm1107_vm4, %v6570_v32, -inf }
 0xe57   : > { %v3381_v34 = vpop.f32.mrb[62].mxu0 }
 0xe58   : > { %v4953_v33 = vpop.f32.mrb[63].mxu0  ;;  %v6572_v40 = vmul.f32 0.35355338, %v3381_v34 }
 0xe59   : > { %v2731_v33 = vmul.f32 %v6033_v1, %v6450_v38 }
 0xe5a   : > { %v3398_v58 = vsel %vm1100_vm0, %v6572_v40, -inf }
 0xe5b   : > { %v6559_v19 = vpop.f32.mrb[64].mxu0 }
 0xe5c   : > { %v4956_v35 = vpop.f32.mrb[65].mxu0 }
 0xe5f   : > { %v6561_v25 = vpop.f32.mrb[66].mxu0 }
 0xe60   : > { %v4959_v41 = vpop.f32.mrb[67].mxu0 }
 0xe64   : > { %2870 = vrot.lane.b32.xlu1 %v2862_v26, %s5592_s26 }
 0xe65   : > { %5357 = vrot.lane.b32.xlu0 %v5356_v2, %s5592_s26 }
 0xe84   : > { %3169 = vmax.xlane.f32.xlu0 %v3168_v31 }
 0xe88   : > { %3399 = vmax.xlane.f32.xlu1 %v3398_v58 }
 0xec4   : > { %v2698_v44 = vpop.xlane.xlu1 %2697 }
 0xec5   : > { %v2705_v36 = vsub.f32 %v2693_v22, %v2698_v44 }
 0xec7   : > { %v2708_v57 = vmul.f32 1.442695, %v2705_v36 }
 0xec8   : > { %v2701_v30 = vpop.xlane.xlu0 %2700 }
 0xec9   : > { %5454 = vpow2.f32 %v2708_v57  ;;  %v2706_v48 = vsub.f32 %v2694_v46, %v2701_v30 }
 0xecb   : > { %v2710_v21 = vmul.f32 1.442695, %v2706_v48 }
 0xecc   : > { %v2704_v59 = vpop.xlane.xlu1 %2703 }
 0xecd   : > { %5456 = vpow2.f32 %v2710_v21  ;;  %v2707_v2 = vsub.f32 %v2695_v37, %v2704_v59 }
 0xecf   : > { %v2712_v28 = vmul.f32 1.442695, %v2707_v2 }
 0xed0   : > { %v2829_v47 = vpop.xlane.xlu1 %2828 }
 0xed1   : > { %5458 = vpow2.f32 %v2712_v28  ;;  %v2836_v42 = vsub.f32 %v2824_v6, %v2829_v47  ;;  %v3197_v28 = vmul.f32 %v6081_v60, %v6450_v38  ;;  %v3433_v47 = vmul.f32 %v6123_v10, %v6450_v38 }
 0xed2   : > { %v6651_v60 = vmul.f32 0.35355338, %v6561_v25 }
 0xed3   : > { %v6578_v27 = vpop.eup %5454  ;;  %v2839_v45 = vmul.f32 1.442695, %v2836_v42  ;;  %v6648_v42 = vmul.f32 0.35355338, %v6559_v19 }
 0xed4   : > { %v2832_v14 = vpop.xlane.xlu0 %2831  ;;  %v2714_v20 = vsel %vm1100_vm0, %v6578_v27, 0.0  ;;  %v3404_v56 = vsel %vm1107_vm4, %v6651_v60, -inf }
 0xed5   : > { %5460 = vpow2.f32 %v2839_v45  ;;  %v2837_v22 = vsub.f32 %v2825_v24, %v2832_v14  ;;  %2715 = vadd.xlane.f32.xlu1 %v2714_v20  ;;  %v3401_v62 = vsel %vm1100_vm0, %v6648_v42, -inf }
 0xed7   : > { %v6582_v49 = vpop.eup %5456  ;;  %v2841_v46 = vmul.f32 1.442695, %v2837_v22 }
 0xed8   : > { %v2835_v50 = vpop.xlane.xlu0 %2834  ;;  %v2717_v37 = vsel %vm1100_vm0, %v6582_v49, 0.0 }
 0xed9   : > { %5462 = vpow2.f32 %v2841_v46  ;;  %2718 = vadd.xlane.f32.xlu0 %v2717_v37  ;;  %v2838_v35 = vsub.f32 %v6547_v53, %v2835_v50 }
 0xedb   : > { %v6586_v6 = vpop.eup %5458  ;;  %v2843_v41 = vmul.f32 1.442695, %v2838_v35 }
 0xedc   : > { %v3164_v63 = vpop.xlane.xlu0 %3163  ;;  %v2720_v61 = vsel %vm1107_vm4, %v6586_v6, 0.0 }
 0xedd   : > { %2721 = vadd.xlane.f32.xlu1 %v2720_v61  ;;  %v3171_v26 = vsub.f32 %v6551_v43, %v3164_v63  ;;  %5464 = vpow2.f32 %v2843_v41 }
 0xedf   : > { %v6590_v0 = vpop.eup %5460  ;;  %v3174_v31 = vmul.f32 1.442695, %v3171_v26 }
 0xee0   : > { %v5358_v24 = vpop.permute.xlu0 %5357  ;;  %v2845_v9 = vsel %vm1100_vm0, %v6590_v0, 0.0  ;;  %v3167_v15 = vpop.xlane.xlu1 %3166 }
 0xee1   : > { %v5360_v13 = vunpack.i.h.bf16 %v5358_v24  ;;  %v5359_v12 = vunpack.i.l.bf16 %v5358_v24  ;;  %2846 = vadd.xlane.f32.xlu0 %v2845_v9  ;;  %v3172_v58 = vsub.f32 %v6555_v7, %v3167_v15  ;;  %5466 = vpow2.f32 %v3174_v31 }
 0xee3   : > { %v6594_v18 = vpop.eup %5462  ;;  %v5169_v17 = vpack.c.bf16 %v5360_v13, %v5359_v12  ;;  %v3176_v44 = vmul.f32 1.442695, %v3172_v58 }
 0xee4   : > { %v2848_v23 = vsel %vm1100_vm0, %v6594_v18, 0.0  ;;  %v2871_v34 = vpop.permute.xlu1 %2870 }
 0xee5   : > { %5170 = vmatpush3.bf16.msra.mxu1 %v5169_v17  ;;  %2849 = vadd.xlane.f32.xlu1 %v2848_v23  ;;  %5468 = vpow2.f32 %v3176_v44 }
 0xee6   : > { %4889 = vmatprep.subr.mxu1 %v5590_v55 }
 0xee7   : > { %v6611_v36 = vpop.eup %5464 }
 0xee8   : > { %v2851_v54 = vsel %vm1107_vm4, %v6611_v36, 0.0 }
 0xee9   : > { %4890 = vmatpush3.msk.msra.mxu1 %vm1301_vm15, %v2871_v34 }
 0xeea   : > { %5171 = vmatprep.subr.bf16.mxu1 %v5588_v51 }
 0xef6   : > { %2972 = vrot.lane.b32.xlu1 %v2731_v33, %s5592_s26 }
 0xef7   : > { %5362 = vrot.lane.b32.xlu0 %v5361_v3, %s5592_s26  ;;  %v6616_v3 = vpop.eup %5466 }
 0xef8   : > { %v3180_v7 = vsel %vm1100_vm0, %v6616_v3, 0.0  ;;  %v6621_v48 = vpop.eup %5468 }
 0xf11   : > { %v3170_v1 = vpop.xlane.xlu0 %3169 }
 0xf12   : > { %v3173_v57 = vsub.f32 %v6570_v32, %v3170_v1  ;;  %v3183_v32 = vsel %vm1100_vm0, %v6621_v48, 0.0 }
 0xf14   : > { %v3178_v30 = vmul.f32 1.442695, %v3173_v57 }
 0xf15   : > { %v3400_v16 = vpop.xlane.xlu1 %3399 }
 0xf16   : > { %5470 = vpow2.f32 %v3178_v30  ;;  %v3407_v53 = vsub.f32 %v6572_v40, %v3400_v16  ;;  %2852 = vadd.xlane.f32.xlu0 %v2851_v54 }
 0xf18   : > { %v3410_v43 = vmul.f32 1.442695, %v3407_v53 }
 0xf1a   : > { %5472 = vpow2.f32 %v3410_v43  ;;  %3181 = vadd.xlane.f32.xlu1 %v3180_v7 }
 0xf1e   : > { %3184 = vadd.xlane.f32.xlu1 %v3183_v32 }
 0xf20   : > { %v6625_v21 = vpop.eup %5470 }
 0xf21   : > { %v3186_v59 = vsel %vm1107_vm4, %v6625_v21, 0.0 }
 0xf22   : > { %3187 = vadd.xlane.f32.xlu0 %v3186_v59 }
 0xf24   : > { %v6629_v40 = vpop.eup %5472 }
 0xf25   : > { %v3416_v2 = vsel %vm1100_vm0, %v6629_v40, 0.0 }
 0xf26   : > { %3417 = vadd.xlane.f32.xlu0 %v3416_v2 }
 0xf2f   : > { %3205 = vrot.lane.b32.xlu1 %v3197_v28, %s5592_s26 }
 0xf33   : > { %5372 = vrot.lane.b32.xlu1 %v5371_v4, %s5592_s26 }
 0xf37   : > { %3441 = vrot.lane.b32.xlu1 %v3433_v47, %s5592_s26 }
 0xf3c   : > { %5367 = vrot.lane.b32.xlu0 %v5366_v5, %s5592_s26  ;;  %s4181_s26 = scalar_lea.sflag [#allocation4], %s701_s0 }
 0xf5b   : > { %3402 = vmax.xlane.f32.xlu0 %v3401_v62  ;;  %3405 = vmax.xlane.f32.xlu1 %v3404_v56  ;;  %v4369_v62 = vld [vmem:[%s6973_s9 + $0x20] sm:$0xff] }
 0xf62   : > { %v2716_v10 = vpop.xlane.xlu1 %2715 }
 0xf66   : > { %v2719_v38 = vpop.xlane.xlu0 %2718 }
 0xf6a   : > { %v2722_v4 = vpop.xlane.xlu1 %2721 }
 0xf6e   : > { %v2847_v45 = vpop.xlane.xlu0 %2846 }
 0xf6f   : > { %5474 = vrcp.f32 %v2847_v45 }
 0xf72   : > { %v2850_v52 = vpop.xlane.xlu1 %2849  ;;  %v5363_v29 = vpop.permute.xlu0 %5362 }
 0xf73   : > { %5476 = vrcp.f32 %v2850_v52  ;;  %v5365_v5 = vunpack.i.h.bf16 %v5363_v29  ;;  %v5364_v19 = vunpack.i.l.bf16 %v5363_v29 }
 0xf75   : > { %v5172_v20 = vpack.c.bf16 %v5365_v5, %v5364_v19 }
 0xf76   : > { %v2973_v50 = vpop.permute.xlu1 %2972 }
 0xf79   : > { %v5475_v25 = vpop.eup %5474 }
 0xf7a   : > { %v2855_v14 = vmul.f32 %v5475_v25, %v6590_v0 }
 0xf7c   : > { %4892 = vmatmul.mubr.msk.f32.vlgmr.msra.gmra.mrb[18].mxu1 %vm1100_vm0, %v2855_v14 }
 0xf7d   : > { %v5477_v22 = vpop.eup %5476  ;;  %5173 = vmatpush3.bf16.msra.mxu1 %v5172_v20  ;;  %4894 = vmatprep.mubr.msk.f32.mxu1 %vm5589_vm3, %v5590_v55 }
 0xf7e   : > { %4904 = vmatprep.subr.mxu1 %v5590_v55  ;;  %v2857_v46 = vmul.f32 %v5477_v22, %v6594_v18 }
 0xf80   : > { %4895 = vmatmul.mubr.msk.f32.gmra.mrb[20].mxu1 %vm1100_vm0, %v2857_v46 }
 0xf81   : > { %4905 = vmatpush3.msk.msra.mxu1 %vm1301_vm15, %v2973_v50  ;;  %4897 = vmatprep.mubr.msk.f32.mxu1 %vm5589_vm3, %v5590_v55 }
 0xf82   : > { %5178 = vmatprep.subr.bf16.mxu1 %v5588_v51 }
 0xfa3   : > { %v2853_v37 = vpop.xlane.xlu0 %2852 }
 0xfa4   : > { %5478 = vrcp.f32 %v2853_v37  ;;  %v4374_v37 = vld [vmem:[%s6974_s10 + $0x1] ss:$0 sm:$0xff] }
 0xfa5   : > { %5480 = vrcp.f32 %v2716_v10  ;;  %v4372_v10 = vld [vmem:[%s6973_s9 + $0x38] sm:$0xff] }
 0xfa6   : > { %5482 = vrcp.f32 %v2719_v38 }
 0xfa7   : > { %v3182_v63 = vpop.xlane.xlu1 %3181  ;;  %5484 = vrcp.f32 %v2722_v4 }
 0xfa8   : > { %5486 = vrcp.f32 %v3182_v63 }
 0xfab   : > { %v3185_v61 = vpop.xlane.xlu1 %3184 }
 0xfac   : > { %5488 = vrcp.f32 %v3185_v61 }
 0xfae   : > { %v5479_v0 = vpop.eup %5478 }
 0xfaf   : > { %v3188_v24 = vpop.xlane.xlu0 %3187  ;;  %v2859_v9 = vmul.f32 %v5479_v0, %v6611_v36  ;;  %v5481_v13 = vpop.eup %5480 }
 0xfb0   : > { %v2724_v12 = vmul.f32 %v5481_v13, %v6578_v27  ;;  %v3206_v15 = vpop.permute.xlu1 %3205  ;;  %v5483_v17 = vpop.eup %5482  ;;  %5490 = vrcp.f32 %v3188_v24 }
 0xfb1   : > { %4898 = vmatmul.mubr.msk.f32.gmra.mrb[22].mxu1 %vm1100_vm0, %v2859_v9  ;;  %v2726_v34 = vmul.f32 %v5483_v17, %v6582_v49  ;;  %v5485_v33 = vpop.eup %5484 }
 0xfb2   : > { %4906 = vmatprep.mubr.msk.f32.mxu1 %vm5589_vm3, %v5590_v55  ;;  %v2728_v31 = vmul.f32 %v5485_v33, %v6586_v6  ;;  %v5487_v58 = vpop.eup %5486  ;;  %v4384_v33 = vld [vmem:[%s6977_s13 + $0x30] sm:$0xff] }
 0xfb3   : > { %v3418_v18 = vpop.xlane.xlu0 %3417  ;;  %v3190_v49 = vmul.f32 %v5487_v58, %v6616_v3 }
 0xfb4   : > { %v5373_v26 = vpop.permute.xlu1 %5372  ;;  %5492 = vrcp.f32 %v3418_v18 }
 0xfb5   : > { %4907 = vmatmul.mubr.msk.f32.vlgmr.msra.gmra.mrb[18].mxu1 %vm1100_vm0, %v2724_v12  ;;  %v5375_v44 = vunpack.i.h.bf16 %v5373_v26  ;;  %v5374_v1 = vunpack.i.l.bf16 %v5373_v26 }
 0xfb6   : > { %4909 = vmatprep.mubr.msk.f32.mxu1 %vm5589_vm3, %v5590_v55  ;;  %v5489_v36 = vpop.eup %5488 }
 0xfb7   : > { %v5368_v23 = vpop.permute.xlu0 %5367  ;;  %v5186_v57 = vpack.c.bf16 %v5375_v44, %v5374_v1  ;;  %v3192_v6 = vmul.f32 %v5489_v36, %v6621_v48 }
 0xfb8   : > { %v5370_v35 = vunpack.i.h.bf16 %v5368_v23  ;;  %v5369_v41 = vunpack.i.l.bf16 %v5368_v23  ;;  %v3442_v16 = vpop.permute.xlu1 %3441  ;;  %v4382_v23 = vld [vmem:[%s6977_s13 + $0x20] sm:$0xff] }
 0xfb9   : > { %4910 = vmatmul.mubr.msk.f32.gmra.mrb[20].mxu1 %vm1100_vm0, %v2726_v34 }
 0xfba   : > { %v5179_v27 = vpack.c.bf16 %v5370_v35, %v5369_v41  ;;  %4912 = vmatprep.mubr.msk.f32.mxu1 %vm5589_vm3, %v5590_v55  ;;  %v5491_v30 = vpop.eup %5490  ;;  %v4385_v35 = vld [vmem:[%s6977_s13 + $0x38] sm:$0xff] }
 0xfbb   : > { %v3194_v54 = vmul.f32 %v5491_v30, %v6625_v21  ;;  %v5198_v41 = vpack.c.bf16 %v4385_v35, %v4384_v33 }
 0xfbc   : > { %5180 = vmatpush3.bf16.msra.mxu1 %v5179_v27 }
 0xfbd   : > { %4913 = vmatmul.mubr.msk.f32.gmra.mrb[22].mxu1 %vm1100_vm0, %v2728_v31  ;;  %4934 = vmatprep.subr.mxu1 %v5590_v55 }
 0xfbe   : > { %4936 = vmatprep.mubr.msk.f32.mxu1 %vm5589_vm3, %v5590_v55  ;;  %v5493_v3 = vpop.eup %5492 }
 0xfbf   : > { %v3426_v53 = vmul.f32 %v5493_v3, %v6629_v40 }
 0xfc0   : > { %4935 = vmatpush3.msk.msra.mxu1 %vm1301_vm15, %v3206_v15 }
 0xfc1   : > { %4937 = vmatmul.mubr.msk.f32.vlgmr.msra.gmra.mrb[18].mxu1 %vm1100_vm0, %v3190_v49  ;;  %5185 = vmatprep.subr.bf16.mxu1 %v5588_v51 }
 0xfc2   : > { %5187 = vmatpush3.bf16.msra.mxu1 %v5186_v57  ;;  %4939 = vmatprep.mubr.msk.f32.mxu1 %vm5589_vm3, %v5590_v55 }
 0xfc3   : > { %4964 = vmatprep.subr.mxu1 %v5590_v55 }
 0xfc5   : > { %4940 = vmatmul.mubr.msk.f32.gmra.mrb[20].mxu1 %vm1100_vm0, %v3192_v6 }
 0xfc6   : > { %4965 = vmatpush3.msk.msra.mxu1 %vm1301_vm15, %v3442_v16  ;;  %4942 = vmatprep.mubr.msk.f32.mxu1 %vm5589_vm3, %v5590_v55 }
 0xfc7   : > { %5200 = vmatprep.subr.bf16.mxu1 %v5588_v51 }
 0xfc9   : > { %4943 = vmatmul.mubr.msk.f32.gmra.mrb[22].mxu1 %vm1100_vm0, %v3194_v54 }
 0xfca   : > { %4966 = vmatprep.mubr.msk.f32.mxu1 %vm5589_vm3, %v5590_v55 }
 0xfcd   : > { %4967 = vmatmul.mubr.msk.f32.vlgmr.msra.gmra.mrb[18].mxu1 %vm1100_vm0, %v3426_v53 }
 0xfce   : > { %4969 = vmatprep.mubr.msk.f32.mxu1 %vm5589_vm3, %v5590_v55 }
 0xfe8   : > { %v3403_v43 = vpop.xlane.xlu0 %3402  ;;  %v3406_v7 = vpop.xlane.xlu1 %3405 }
 0xfe9   : > { %v3408_v48 = vsub.f32 %v6648_v42, %v3403_v43  ;;  %v3409_v32 = vsub.f32 %v6651_v60, %v3406_v7  ;;  %v4370_v42 = vld [vmem:[%s6973_s9 + $0x28] sm:$0xff]  ;;  %v4371_v60 = vld [vmem:[%s6973_s9 + $0x30] sm:$0xff] }
 0xfea   : > { %v5189_v56 = vpack.c.bf16 %v4370_v42, %v4369_v62  ;;  %v5192_v38 = vpack.c.bf16 %v4372_v10, %v4371_v60  ;;  %v4393_v62 = vld [vmem:[%s6979_s15 + $0x90] sm:$0xff]  ;;  %v4394_v42 = vld [vmem:[%s6979_s15 + $0x98] sm:$0xff]  ;;  %v4396_v10 = vld [vmem:[%s6979_s15 + $0xa8] sm:$0xff] }
 0xfeb   : > { %v3412_v21 = vmul.f32 1.442695, %v3408_v48  ;;  %v3414_v59 = vmul.f32 1.442695, %v3409_v32  ;;  %v5204_v60 = vpack.c.bf16 %v4394_v42, %v4393_v62 }
 0xfec   : > { %5190 = vmatpush3.bf16.msra.mxu0 %v5189_v56  ;;  %v4395_v56 = vld [vmem:[%s6979_s15 + $0xa0] sm:$0xff] }
 0xfed   : > { %5494 = vpow2.f32 %v3412_v21  ;;  %5191 = vmatprep.subr.bf16.mxu0 %v5588_v51 }
 0xfee   : > { %5496 = vpow2.f32 %v3414_v59 }
 0xff0   : > { %5193 = vmatpush3.bf16.msra.mxu0 %v5192_v38  ;;  %v5207_v38 = vpack.c.bf16 %v4396_v10, %v4395_v56 }
 0xff1   : > { %5194 = vmatprep.subr.bf16.mxu0 %v5588_v51 }
 0xff7   : > { %v5495_v2 = vpop.eup %5494 }
 0xff8   : > { %v3419_v28 = vsel %vm1100_vm0, %v5495_v2, 0.0  ;;  %v5497_v47 = vpop.eup %5496 }
 0xff9   : > { %3420 = vadd.xlane.f32.xlu0 %v3419_v28  ;;  %v3422_v40 = vsel %vm1107_vm4, %v5497_v47, 0.0  ;;  %v4391_v28 = vld [vmem:[%s6979_s15 + $0x80] sm:$0xff] }
 0xffd   : > { %3423 = vadd.xlane.f32.xlu0 %v3422_v40 }
0x1086   : > { %v3421_v4 = vpop.xlane.xlu0 %3420 }
0x1087   : > { %5498 = vrcp.f32 %v3421_v4  ;;  %v4397_v4 = vld [vmem:[%s6979_s15 + $0xb0] sm:$0xff] }
0x108a   : > { %v3424_v45 = vpop.xlane.xlu0 %3423 }
0x108b   : > { %5500 = vrcp.f32 %v3424_v45  ;;  %v4398_v45 = vld [vmem:[%s6979_s15 + $0xb8] sm:$0xff] }
0x1091   : > { %v5499_v52 = vpop.eup %5498 }
0x1092   : > { %v3428_v29 = vmul.f32 %v5499_v52, %v5495_v2  ;;  %v5210_v52 = vpack.c.bf16 %v4398_v45, %v4397_v4 }
0x1094   : > { %4970 = vmatmul.mubr.msk.f32.gmra.mrb[20].mxu1 %vm1100_vm0, %v3428_v29  ;;  %v4399_v29 = vld [vmem:[%s6979_s15 + $0xc0] sm:$0xff] }
0x1095   : > { %v5501_v5 = vpop.eup %5500  ;;  %4972 = vmatprep.mubr.msk.f32.mxu1 %vm5589_vm3, %v5590_v55 }
0x1096   : > { %v3430_v19 = vmul.f32 %v5501_v5, %v5497_v47  ;;  %v4392_v47 = vld [vmem:[%s6979_s15 + $0x88] sm:$0xff] }
0x1097   : > { %v5201_v40 = vpack.c.bf16 %v4392_v47, %v4391_v28  ;;  %v4400_v5 = vld [vmem:[%s6979_s15 + $0xc8] sm:$0xff] }
0x1098   : > { %4973 = vmatmul.mubr.msk.f32.gmra.mrb[22].mxu1 %vm1100_vm0, %v3430_v19  ;;  %v5213_v19 = vpack.c.bf16 %v4400_v5, %v4399_v29 }
0x1099   : > { %5041 = vmatprep.mubr.msk.f32.mxu1 %vm5589_vm3, %v5590_v55  ;;  %5202 = vmatpush3.bf16.msra.mxu1 %v5201_v40 }
0x109a   : > { %5203 = vmatprep.subr.bf16.mxu1 %v5588_v51 }
0x109d   : > { %5205 = vmatpush3.bf16.msra.mxu1 %v5204_v60 }
0x109e   : > { %5206 = vmatprep.subr.bf16.mxu1 %v5588_v51 }
0x10a0   : > { %v3522_v25 = vpop.f32.mrb[18].mxu1 }
0x10a1   : > { %v4968_v14 = vpop.f32.mrb[19].mxu1  ;;  %4984 = vmatmul.mubr.msk.f32.vlgmr.msra.gmra.mrb[68].mxu0 %vm818_vm2, %v3522_v25  ;;  %5208 = vmatpush3.bf16.msra.mxu1 %v5207_v38  ;;  %v4401_v25 = vld [vmem:[%s6979_s15 + $0xd0] sm:$0xff] }
0x10a2   : > { %4986 = vmatprep.mubr.msk.f32.mxu0 %vm5589_vm3, %v5590_v55  ;;  %5209 = vmatprep.subr.bf16.mxu1 %v5588_v51  ;;  %v4402_v14 = vld [vmem:[%s6979_s15 + $0xd8] sm:$0xff] }
0x10a5   : > { %5211 = vmatpush3.bf16.msra.mxu1 %v5210_v52 }
0x10a6   : > { %5212 = vmatprep.subr.bf16.mxu1 %v5588_v51 }
0x10a9   : > { %5214 = vmatpush3.bf16.msra.mxu1 %v5213_v19 }
0x10aa   : > { %5215 = vmatprep.subr.bf16.mxu1 %v5588_v51 }
0x1167   : > { %v3527_v20 = vpop.f32.mrb[20].mxu1 }
0x1168   : > { %v4971_v22 = vpop.f32.mrb[21].mxu1  ;;  %4987 = vmatmul.mubr.msk.f32.gmra.mrb[70].mxu0 %vm818_vm2, %v3527_v20  ;;  %v5216_v20 = vpack.c.bf16 %v4402_v14, %v4401_v25 }
0x1169   : > { %4989 = vmatprep.mubr.msk.f32.mxu0 %vm5589_vm3, %v5590_v55  ;;  %v4403_v22 = vld [vmem:[%s6979_s15 + $0xe0] sm:$0xff] }
0x116a   : > { %5217 = vmatpush3.bf16.msra.mxu1 %v5216_v20 }
0x116b   : > { %v3532_v46 = vpop.f32.mrb[22].mxu1  ;;  %5218 = vmatprep.subr.bf16.mxu1 %v5588_v51 }
0x116c   : > { %v4974_v50 = vpop.f32.mrb[23].mxu1  ;;  %4990 = vmatmul.mubr.msk.f32.gmra.mrb[72].mxu0 %vm818_vm2, %v3532_v46  ;;  %v4404_v46 = vld [vmem:[%s6979_s15 + $0xe8] sm:$0xff] }
0x116d   : > { %5000 = vmatprep.mubr.msk.f32.mxu0 %vm5589_vm3, %v5590_v55  ;;  %v5219_v50 = vpack.c.bf16 %v4404_v46, %v4403_v22 }
0x116f   : > { %5220 = vmatpush3.bf16.msra.mxu1 %v5219_v50 }
0x1170   : > { %5221 = vmatprep.subr.bf16.mxu1 %v5588_v51 }
0x1174   : > { %v3627_v63 = vpop.f32.mrb[68].mxu0 }
0x1175   : > { %v3628_v61 = vadd.f32 %v4374_v37, %v3627_v63  ;;  %v4985_v0 = vpop.f32.mrb[69].mxu0  ;;  %v4406_v63 = vld [vmem:[%s6979_s15 + $0xf8] sm:$0xff] }
0x1177   : > { %v6743_v24 = vadd.f32 %v3628_v61, %v6359_v39  ;;  %v4383_v39 = vld [vmem:[%s6977_s13 + $0x28] sm:$0xff] }
0x1178   : > { %v5195_v34 = vpack.c.bf16 %v4383_v39, %v4382_v23  ;;  %v6851_v39 = vld [vmem:[%s6978_s14 + $0x1] ss:$0 sm:$0xff] }
0x1179   : > { %v3648_v9 = vsel %vm818_vm2, %v6743_v24, 0.0 }
0x117a   : > { %3649 = vadd.xlane.f32.xlu0 %v3648_v9  ;;  %5196 = vmatpush3.bf16.msra.mxu0 %v5195_v34 }
0x117b   : > { %5197 = vmatprep.subr.bf16.mxu0 %v5588_v51 }
0x117e   : > { %5199 = vmatpush3.bf16.msra.mxu0 %v5198_v41 }
0x117f   : > { %5224 = vmatprep.subr.bf16.mxu0 %v5588_v51 }
0x1207   : > { %v3650_v13 = vpop.xlane.xlu0 %3649 }
0x1208   : > { %v3657_v12 = vmul.f32 0.03125, %v3650_v13 }
0x120a   : > { %v3660_v15 = vsub.f32 %v6743_v24, %v3657_v12 }
0x120c   : > { %v3663_v18 = vmul.f32 %v3660_v15, %v3660_v15 }
0x120e   : > { %v3666_v17 = vsel %vm818_vm2, %v3663_v18, 0.0 }
0x120f   : > { %3667 = vadd.xlane.f32.xlu1 %v3666_v17 }
0x123b   : > { %v3632_v26 = vpop.f32.mrb[70].mxu0 }
0x123c   : > { %v3633_v27 = vadd.f32 %v4374_v37, %v3632_v26  ;;  %v4988_v31 = vpop.f32.mrb[71].mxu0 }
0x123e   : > { %v3642_v58 = vadd.f32 %v3633_v27, %v6364_v8  ;;  %v6773_v8 = vld [vmem:[%s6975_s11 + $0x1] ss:$0 sm:$0xff] }
0x123f   : > { %v3637_v44 = vpop.f32.mrb[72].mxu0 }
0x1240   : > { %v3638_v1 = vadd.f32 %v4374_v37, %v3637_v44  ;;  %v4991_v49 = vpop.f32.mrb[73].mxu0  ;;  %v3651_v36 = vsel %vm818_vm2, %v3642_v58, 0.0  ;;  %v4405_v37 = vld [vmem:[%s6979_s15 + $0xf0] sm:$0xff] }
0x1241   : > { %3652 = vadd.xlane.f32.xlu0 %v3651_v36  ;;  %v5222_v61 = vpack.c.bf16 %v4406_v63, %v4405_v37 }
0x1242   : > { %v6766_v57 = vadd.f32 %v3638_v1, %v6369_v11  ;;  %v6778_v11 = vld [vmem:[%s6976_s12 + $0x1] ss:$0 sm:$0xff] }
0x1243   : > { %5223 = vmatpush3.bf16.msra.mxu1 %v5222_v61 }
0x1244   : > { %v3654_v6 = vsel %vm812_vm1, %v6766_v57, 0.0 }
0x1245   : > { %3655 = vadd.xlane.f32.xlu1 %v3654_v6 }
0x129c   : > { %v3668_v30 = vpop.xlane.xlu1 %3667 }
0x129d   : > { %v3675_v16 = vmul.f32 0.03125, %v3668_v30 }
0x129f   : > { %v3678_v54 = vadd.f32 1e-12, %v3675_v16 }
0x12a1   : > { %5502 = vrsqrt.f32 %v3678_v54 }
0x12ab   : > { %v5503_v3 = vpop.eup %5502 }
0x12ac   : > { %v3684_v53 = vmul.f32 %v5503_v3, %v3660_v15 }
0x12ae   : > { %v3693_v43 = vmul.f32 %v6773_v8, %v3684_v53 }
0x12b0   : > { %v3702_v7 = vadd.f32 %v6778_v11, %v3693_v43 }
0x12b2   : > { %5001 = vmatmul.mubr.msk.f32.vlgmr.msra.gmra.mrb[74].mxu0 %vm818_vm2, %v3702_v7 }
0x12b3   : > { %5003 = vmatprep.mubr.msk.f32.mxu0 %vm5589_vm3, %v5590_v55 }
0x12ce   : > { %v3653_v48 = vpop.xlane.xlu0 %3652 }
0x12cf   : > { %v3658_v32 = vmul.f32 0.03125, %v3653_v48 }
0x12d1   : > { %v3661_v21 = vsub.f32 %v3642_v58, %v3658_v32 }
0x12d2   : > { %v6841_v0 = vpop.xlane.xlu1 %3655 }
0x12d3   : > { %v3664_v59 = vmul.f32 %v3661_v21, %v3661_v21 }
0x12d5   : > { %v3669_v2 = vsel %vm818_vm2, %v3664_v59, 0.0 }
0x12d6   : > { %3670 = vadd.xlane.f32.xlu1 %v3669_v2 }
0x1363   : > { %v3671_v9 = vpop.xlane.xlu1 %3670 }
0x1364   : > { %v3676_v13 = vmul.f32 0.03125, %v3671_v9 }
0x1366   : > { %v3679_v12 = vadd.f32 1e-12, %v3676_v13 }
0x1368   : > { %5504 = vrsqrt.f32 %v3679_v12 }
0x1372   : > { %v5505_v15 = vpop.eup %5504 }
0x1373   : > { %v3685_v18 = vmul.f32 %v5505_v15, %v3661_v21 }
0x1375   : > { %v3694_v17 = vmul.f32 %v6773_v8, %v3685_v18 }
0x1377   : > { %v3703_v23 = vadd.f32 %v6778_v11, %v3694_v17 }
0x1379   : > { %5004 = vmatmul.mubr.msk.f32.gmra.mrb[76].mxu0 %vm818_vm2, %v3703_v23 }
0x137a   : > { %5006 = vmatprep.mubr.msk.f32.mxu0 %vm5589_vm3, %v5590_v55 }
0x1385   : > { %v3793_v34 = vpop.f32.mrb[74].mxu0 }
0x1386   : > { %v3794_v33 = vadd.f32 %v6851_v39, %v3793_v34  ;;  %v5002_v35 = vpop.f32.mrb[75].mxu0  ;;  %v3659_v34 = vmul.f32 0.03125, %v6841_v0 }
0x1388   : > { %v3810_v41 = vmul.f32 0.70710677, %v3794_v33  ;;  %v3807_v28 = vmul.f32 0.5, %v3794_v33  ;;  %v4408_v33 = vld [vmem:[%s6980_s16 + $0x1] ss:$0 sm:$0xff] }
0x138a   : > { %v3813_v26 = vand.u32 2147483647, %v3810_v41  ;;  %vm3873_vm8 = vcmp.lt.f32.partialorder %v3810_v41, 0.0  ;;  %v3662_v41 = vsub.f32 %v6766_v57, %v3659_v34 }
0x138c   : > { %v3816_v27 = vmul.f32 0.3275911, %v3813_v26  ;;  %v3855_v58 = vsub.f32 0.0, %v3813_v26 }
0x138e   : > { %v3819_v31 = vadd.f32 1.0, %v3816_v27  ;;  %v3858_v1 = vmul.f32 %v3855_v58, %v3813_v26 }
0x1390   : > { %5506 = vrcp.f32 %v3819_v31  ;;  %v3861_v6 = vmul.f32 1.442695, %v3858_v1 }
0x1392   : > { %5508 = vpow2.f32 %v3861_v6 }
0x139a   : > { %v5507_v44 = vpop.eup %5506 }
0x139b   : > { %v3828_v49 = vmul.f32 1.0614054, %v5507_v44 }
0x139c   : > { %v5509_v48 = vpop.eup %5508 }
0x139d   : > { %v3831_v36 = vadd.f32 -1.4531521, %v3828_v49 }
0x139f   : > { %v3834_v30 = vmul.f32 %v5507_v44, %v3831_v36 }
0x13a1   : > { %v3837_v16 = vadd.f32 1.4214138, %v3834_v30 }
0x13a3   : > { %v3840_v54 = vmul.f32 %v5507_v44, %v3837_v16 }
0x13a5   : > { %v3843_v3 = vadd.f32 -0.28449672, %v3840_v54 }
0x13a7   : > { %v3846_v53 = vmul.f32 %v5507_v44, %v3843_v3 }
0x13a9   : > { %v3849_v43 = vadd.f32 0.2548296, %v3846_v53 }
0x13ab   : > { %v3852_v7 = vmul.f32 %v5507_v44, %v3849_v43  ;;  %v3665_v44 = vmul.f32 %v3662_v41, %v3662_v41 }
0x13ad   : > { %v3867_v32 = vmul.f32 %v5509_v48, %v3852_v7  ;;  %v3672_v1 = vsel %vm812_vm1, %v3665_v44, 0.0  ;;  %v4021_v7 = vld [vmem:[%s6983_s19] sm:$0xff]  ;;  %v4022_v48 = vld [vmem:[%s6983_s19 + $0x8] sm:$0xff] }
0x13af   : > { %v3870_v21 = vsub.f32 1.0, %v3867_v32  ;;  %v5225_v32 = vpack.c.bf16 %v4022_v48, %v4021_v7 }
0x13b1   : > { %v3876_v59 = vsub.f32 0.0, %v3870_v21  ;;  %5226 = vmatpush3.bf16.msra.mxu0 %v5225_v32 }
0x13b2   : > { %5227 = vmatprep.subr.bf16.mxu0 %v5588_v51 }
0x13b3   : > { %v3879_v2 = vsel %vm3873_vm8, %v3876_v59, %v3870_v21 }
0x13b4   : > { %v3882_v47 = vadd.f32 1.0, %v3879_v2 }
0x13b6   : > { %v3885_v40 = vmul.f32 %v3882_v47, %v3807_v28 }
0x13b8   : > { %5042 = vmatmul.mubr.f32.vlgmr.msra.gmra.mrb[24].mxu1 %v3885_v40 }
0x13b9   : > { %5044 = vmatprep.mubr.msk.f32.mxu1 %vm5589_vm3, %v5590_v55 }
0x144c   : > { %v3798_v62 = vpop.f32.mrb[76].mxu0 }
0x144d   : > { %v3799_v42 = vadd.f32 %v6851_v39, %v3798_v62  ;;  %v5005_v60 = vpop.f32.mrb[77].mxu0 }
0x144f   : > { %v3811_v56 = vmul.f32 0.70710677, %v3799_v42  ;;  %v3808_v18 = vmul.f32 0.5, %v3799_v42  ;;  %v4409_v42 = vld [vmem:[%s6981_s17] ss:$0 sm:$0xff] }
0x1451   : > { %v3814_v10 = vand.u32 2147483647, %v3811_v56  ;;  %vm3874_vm9 = vcmp.lt.f32.partialorder %v3811_v56, 0.0  ;;  %v4410_v56 = vld [vmem:[%s6982_s18] ss:$0 sm:$0xff] }
0x1453   : > { %v3817_v38 = vmul.f32 0.3275911, %v3814_v10  ;;  %v3856_v45 = vsub.f32 0.0, %v3814_v10 }
0x1455   : > { %v3820_v4 = vadd.f32 1.0, %v3817_v38  ;;  %v3859_v29 = vmul.f32 %v3856_v45, %v3814_v10 }
0x1457   : > { %5510 = vrcp.f32 %v3820_v4  ;;  %v3863_v25 = vmul.f32 1.442695, %v3859_v29 }
0x1459   : > { %5512 = vpow2.f32 %v3863_v25 }
0x1461   : > { %v5511_v52 = vpop.eup %5510 }
0x1462   : > { %v3829_v5 = vmul.f32 1.0614054, %v5511_v52 }
0x1463   : > { %v5513_v61 = vpop.eup %5512 }
0x1464   : > { %v3832_v19 = vadd.f32 -1.4531521, %v3829_v5 }
0x1466   : > { %v3835_v14 = vmul.f32 %v5511_v52, %v3832_v19 }
0x1468   : > { %v3838_v20 = vadd.f32 1.4214138, %v3835_v14 }
0x146a   : > { %v3841_v22 = vmul.f32 %v5511_v52, %v3838_v20  ;;  %v4100_v20 = vld [vmem:[%s6985_s21] sm:$0xff] }
0x146c   : > { %v3844_v46 = vadd.f32 -0.28449672, %v3841_v22  ;;  %v4101_v22 = vld [vmem:[%s6985_s21 + $0x8] sm:$0xff] }
0x146e   : > { %v3847_v50 = vmul.f32 %v5511_v52, %v3844_v46 }
0x1470   : > { %v3850_v37 = vadd.f32 0.2548296, %v3847_v50  ;;  %v5231_v50 = vpack.c.bf16 %v4101_v22, %v4100_v20 }
0x1472   : > { %v3853_v63 = vmul.f32 %v5511_v52, %v3850_v37  ;;  %v4103_v37 = vld [vmem:[%s6985_s21 + $0x18] sm:$0xff] }
0x1474   : > { %v3868_v9 = vmul.f32 %v5513_v61, %v3853_v63 }
0x1476   : > { %v3871_v13 = vsub.f32 1.0, %v3868_v9 }
0x1478   : > { %v3877_v12 = vsub.f32 0.0, %v3871_v13 }
0x147a   : > { %v3880_v15 = vsel %vm3874_vm9, %v3877_v12, %v3871_v13 }
0x147b   : > { %v3883_v17 = vadd.f32 1.0, %v3880_v15 }
0x147d   : > { %v3886_v23 = vmul.f32 %v3883_v17, %v3808_v18 }
0x147f   : > { %5045 = vmatmul.mubr.f32.gmra.mrb[26].mxu1 %v3886_v23 }
0x1480   : > { %5047 = vmatprep.mubr.msk.f32.mxu1 %vm5589_vm3, %v5590_v55 }
0x148b   : > { %v3979_v35 = vpop.f32.mrb[24].mxu1 }
0x148c   : > { %v3980_v26 = vadd.f32 %v4408_v33, %v3979_v35  ;;  %v5043_v27 = vpop.f32.mrb[25].mxu1 }
0x148e   : > { %v3991_v31 = vadd.f32 %v3980_v26, %v6743_v24 }
0x1490   : > { %v3994_v58 = vsel %vm818_vm2, %v3991_v31, 0.0 }
0x1491   : > { %3995 = vadd.xlane.f32.xlu0 %v3994_v58 }
0x1495   : > { %3673 = vadd.xlane.f32.xlu0 %v3672_v1  ;;  %v4025_v1 = vld [vmem:[%s6984_s20] sm:$0x1] }
0x151e   : > { %v3996_v49 = vpop.xlane.xlu0 %3995 }
0x151f   : > { %v3997_v0 = vmul.f32 0.03125, %v3996_v49 }
0x1521   : > { %v3998_v36 = vsub.f32 %v3991_v31, %v3997_v0 }
0x1522   : > { %v3674_v6 = vpop.xlane.xlu0 %3673 }
0x1523   : > { %v3677_v30 = vmul.f32 0.03125, %v3674_v6  ;;  %v3999_v16 = vmul.f32 %v3998_v36, %v3998_v36 }
0x1525   : > { %v3680_v54 = vadd.f32 1e-12, %v3677_v30  ;;  %v4000_v57 = vsel %vm818_vm2, %v3999_v16, 0.0 }
0x1526   : > { %4001 = vadd.xlane.f32.xlu1 %v4000_v57 }
0x1527   : > { %5514 = vrsqrt.f32 %v3680_v54  ;;  %v4104_v54 = vld [vmem:[%s6986_s22] sm:$0x1] }
0x1531   : > { %v5515_v3 = vpop.eup %5514 }
0x1532   : > { %v3686_v24 = vmul.f32 %v5515_v3, %v3662_v41 }
0x1534   : > { %v3695_v53 = vmul.f32 %v6773_v8, %v3686_v24  ;;  %v4023_v8 = vld [vmem:[%s6983_s19 + $0x10] sm:$0xff] }
0x1536   : > { %v3704_v43 = vadd.f32 %v6778_v11, %v3695_v53  ;;  %v4024_v11 = vld [vmem:[%s6983_s19 + $0x18] sm:$0xff] }
0x1537   : > { %v5228_v21 = vpack.c.bf16 %v4024_v11, %v4023_v8 }
0x1538   : > { %5007 = vmatmul.mubr.msk.f32.gmra.mrb[78].mxu0 %vm818_vm2, %v3704_v43 }
0x1539   : > { %5058 = vmatprep.mubr.msk.f32.mxu0 %vm5589_vm3, %v5590_v55  ;;  %5229 = vmatpush3.bf16.msra.mxu0 %v5228_v21 }
0x153a   : > { %5230 = vmatprep.subr.bf16.mxu0 %v5588_v51 }
0x1552   : > { %v3984_v59 = vpop.f32.mrb[26].mxu1 }
0x1553   : > { %v5046_v2 = vpop.f32.mrb[27].mxu1 }
0x15b3   : > { %v4002_v28 = vpop.xlane.xlu1 %4001 }
0x15b4   : > { %v4003_v47 = vmul.f32 0.03125, %v4002_v28 }
0x15b6   : > { %v4004_v40 = vadd.f32 1e-12, %v4003_v47 }
0x15b8   : > { %5516 = vrsqrt.f32 %v4004_v40 }
0x15c2   : > { %v5517_v62 = vpop.eup %5516 }
0x15c3   : > { %v4006_v60 = vmul.f32 %v5517_v62, %v3998_v36 }
0x15c5   : > { %v4013_v10 = vmul.f32 %v4409_v42, %v4006_v60 }
0x15c7   : > { %v4020_v38 = vadd.f32 %v4410_v56, %v4013_v10 }
0x15c9   : > { %5059 = vmatmul.mubr.msk.f32.vlgmr.msra.gmra.mrb[80].mxu0 %vm818_vm2, %v4020_v38 }
0x15ca   : > { %5069 = vmatprep.mubr.msk.f32.mxu0 %vm5589_vm3, %v5590_v55  ;;  %v4102_v55 = vld [vmem:[%s6985_s21 + $0x10] sm:$0xff]  ;;  %5232 = vmatpush3.bf16.msra.mxu0 %v5231_v50  ;;  %vm4178_vm3 = vcmask 32768  }
0x15cb   : > { %v5234_v61 = vpack.c.bf16 %v4103_v37, %v4102_v55  ;;  %5233 = vmatprep.subr.bf16.mxu0 %v5588_v51 }
0x15ce   : > { %5235 = vmatpush3.bf16.msra.mxu0 %v5234_v61 }
0x160b   : > { %v3803_v4 = vpop.f32.mrb[78].mxu0 }
0x160c   : > { %v3804_v45 = vadd.f32 %v6851_v39, %v3803_v4  ;;  %v5008_v52 = vpop.f32.mrb[79].mxu0 }
0x160e   : > { %v3812_v29 = vmul.f32 0.70710677, %v3804_v45  ;;  %v3809_v58 = vmul.f32 0.5, %v3804_v45 }
0x1610   : > { %v3815_v5 = vand.u32 2147483647, %v3812_v29  ;;  %vm3875_vm1 = vcmp.lt.f32.partialorder %v3812_v29, 0.0 }
0x1612   : > { %v3818_v19 = vmul.f32 0.3275911, %v3815_v5  ;;  %v3857_v14 = vsub.f32 0.0, %v3815_v5 }
0x1614   : > { %v3821_v25 = vadd.f32 1.0, %v3818_v19  ;;  %v3860_v46 = vmul.f32 %v3857_v14, %v3815_v5 }
0x1616   : > { %5518 = vrcp.f32 %v3821_v25  ;;  %v3865_v13 = vmul.f32 1.442695, %v3860_v46 }
0x1618   : > { %5520 = vpow2.f32 %v3865_v13 }
0x1620   : > { %v5519_v39 = vpop.eup %5518 }
0x1621   : > { %v3830_v63 = vmul.f32 1.0614054, %v5519_v39 }
0x1622   : > { %v5521_v35 = vpop.eup %5520 }
0x1623   : > { %v3833_v9 = vadd.f32 -1.4531521, %v3830_v63 }
0x1625   : > { %v3836_v12 = vmul.f32 %v5519_v39, %v3833_v9 }
0x1627   : > { %v3839_v15 = vadd.f32 1.4214138, %v3836_v12 }
0x1629   : > { %v3842_v18 = vmul.f32 %v5519_v39, %v3839_v15 }
0x162b   : > { %v3845_v17 = vadd.f32 -0.28449672, %v3842_v18 }
0x162d   : > { %v3848_v23 = vmul.f32 %v5519_v39, %v3845_v17 }
0x162f   : > { %v3851_v34 = vadd.f32 0.2548296, %v3848_v23 }
0x1631   : > { %v3854_v33 = vmul.f32 %v5519_v39, %v3851_v34 }
0x1633   : > { %v3869_v41 = vmul.f32 %v5521_v35, %v3854_v33 }
0x1635   : > { %v3872_v26 = vsub.f32 1.0, %v3869_v41 }
0x1637   : > { %v3878_v27 = vsub.f32 0.0, %v3872_v26 }
0x1639   : > { %v3881_v31 = vsel %vm3875_vm1, %v3878_v27, %v3872_v26 }
0x163a   : > { %v3884_v51 = vadd.f32 1.0, %v3881_v31 }
0x163c   : > { %v3887_v44 = vmul.f32 %v3884_v51, %v3809_v58 }
0x163e   : > { %5048 = vmatmul.mubr.f32.gmra.mrb[28].mxu1 %v3887_v44 }
0x169c   : > { %v4095_v49 = vpop.f32.mrb[80].mxu0 }
0x169d   : > { %v4096_v0 = vadd.f32 %v4095_v49, %v4025_v1  ;;  %v5060_v36 = vpop.f32.mrb[81].mxu0 }
0x169f   : > { %5522 = vtanh.f32 %v4096_v0 }
0x16a9   : > { %v5523_v6 = vpop.eup %5522 }
0x16aa   : > { %5070 = vmatmul.mubr.msk.f32.vlgmr.msra.gmra.mrb[82].mxu0 %vm818_vm2, %v5523_v6 }
0x1711   : > { %v3988_v30 = vpop.f32.mrb[28].mxu1 }
0x1712   : > { %v5049_v16 = vpop.f32.mrb[29].mxu1 }
0x177d   : > { %v4174_v57 = vpop.f32.mrb[82].mxu0 }
0x177e   : > { %v4175_v3 = vadd.f32 %v4174_v57, %v4104_v54  ;;  %v5071_v24 = vpop.f32.mrb[83].mxu0 }
0x1780   : > { %4179 = vst.msk [vmem:[%s702_s28] sm:$0x1] %vm4178_vm3, %v4175_v3 }
0x1781   : > { %5537 = shalt.err (!%p5534_p3)
}
0x1782   : > { %s5538_s0 = scalar_lea.hbm %s6922_s24, 16  ;;  %s5542_s27 = scalar_lea.hbm %s6987_s23, 32 }
0x1783   : > { %p5539_p4 = scmp.ne.s32.totalorder %s6922_s24, %s5538_s0  ;;  %p5543_p9 = scmp.lt.u32.totalorder %s6922_s24, %s6987_s23 }
0x1784   : > { %p5544_p10 = scmp.lt.u32.totalorder %s5542_s27, %s5538_s0  ;;  %p5546_p12 = scmp.lt.u32.totalorder %s5538_s0, %s6922_s24 }
0x1785   : > { %p5540_p7 = pnand %p5539_p4, %p5752_p5 }
0x1786   : > { %p5545_p11 = por %p5544_p10, %p5543_p9 }
0x1787   : > { %p5541_p8 = pneg %p5540_p7 }
0x1788   : > { %p5547_p13 = por %p5546_p12, %p5545_p11 }
0x178a   : > { %p5548_p0 = pnand %p5547_p13, %p5541_p8 }
0x178c   : > { %5551 = shalt.err (!%p5548_p0)
}
0x178d   : > { %5272 = dma.vmem_to_hbm [thread:$0]  (%p5752_p5), %s6924_s25, 16, %s6922_s24, %s4181_s26  }
0x178e PF: > { %s7032_s3 = sld [smem:[#allocation8_spill]]  ;;  %s7033_s1 = sld [smem:[#allocation6_spill]] }
0x1794   : > { %p5278_p1 = scmp.ge.s32.totalorder %s7032_s3, 2  ;;  %s4205_s4 = sand.u32 1, %s7033_s1  }
0x1795   : > { %s4206_s28 = scalar_lea.sflag [#allocation4], %s4205_s4 }
0x1796   : > { %p5275_p2 = pnand %p5278_p1, %p5756_p6 }
0x1798   : > { %5569 = dma.done.wait (!%p5275_p2), %s4206_s28, 16  }
0x1799   : > { %5571 = vsyncadd (!%p5275_p2), %s4206_s28, 4294967280  ;;  %s7035_s25 = sld [smem:[#allocation9_spill]]  ;;  %s7036_s0 = sld [smem:[#allocation7_spill]] }
0x179a   : > { %s7037_s24 = sld [smem:[#allocation10_spill]]  ;;  %s7038_s4 = smov %s5578_s30 }
0x179f   : > { %p33_p3 = scmp.ge.s32.totalorder %s7035_s25, 4   ;;  %s7039_s30 = smov %s7036_s0 }
0x17a1   :  { %35 = sbr.rel (!%p33_p3) target bundleno = 12 (0xc), region = 159 }
0x17a8   :  { %4210 = vsyncpa [#allocation4], 1 }
0x17a9   :  { %4212 = vsyncpa [#allocation4 + $0x1], 1 }

</bundles_post_ra>
